<compile_context>
chip_gen: v6e
topology: v6e:2x2x1
jax: 0.10.0
libtpu: 0.0.40
codegen_flags: <defaults>
</compile_context>

<pallas_src>
import functools

import numpy as np
import jax
import jax.numpy as jnp
from jax.experimental import pallas as pl
from jax.experimental.pallas import tpu as pltpu


def _round_up(x, m):
    return (x + m - 1) // m * m


def _vmem_capacity_bytes():
    try:
        return int(pltpu.get_tpu_info().vmem_capacity_bytes)
    except Exception:
        return 128 * 1024 * 1024


def _tap_group_size():
    """Taps per MXU call: 2 on 256x256-MXU chips (v6e/v7x), 1 on 128x128 MXUs."""
    try:
        kind = jax.devices()[0].device_kind.lower()
    except Exception:
        return 2
    if any(t in kind for t in ("v2", "v3", "v4", "v5")):
        return 1
    return 2


# ---------------------------------------------------------------------------
# Pallas kernel: one ResNetBasicBlock (conv121 + BN (+ shortcut) + ReLU)
# ---------------------------------------------------------------------------
def _resblock_kernel(x_ref, w_ref, b_ref, *rest,
                     S, TL, RC, NGRP, G, SLAB, Q_SC, P_SC, proj):
    """x_ref : (S, MPH, Cin_p)  bf16  stride-phase-split, zero-padded x (1 batch)
       w_ref : (S, NGRP, G*Cin_p, Cout_p) bf16  VMEM-resident BN-folded taps
       b_ref : (1, Cout_p) f32  folded conv-BN (+ shortcut-BN) shift
       ws_ref: (Cin_p, Cout_p) bf16  folded projection shortcut (only if proj)
       out   : (TL, Cout_p) bf16."""
    if proj:
        ws_ref, out_ref = rest
    else:
        (out_ref,) = rest

    i = pl.program_id(1)                      # output-length tile index
    cout_p = out_ref.shape[-1]
    bias = b_ref[...]                         # (1, Cout_p) f32, hoisted

    for rc in range(TL // RC):                # 128-row register chunks
        row0 = i * TL + rc * RC               # global output row of chunk
        base = pl.multiple_of(row0, 8)

        acc = jnp.zeros((RC, cout_p), jnp.float32)
        for p in range(S):                    # stride phases (static)
            # one aligned slab load per (chunk, phase); per-tap shifted slices
            # of this value feed the MXU.  (pltpu.roll-based shifting is a
            # possible further micro-opt if ld/st becomes the binding slot.)
            slab = x_ref[p, pl.ds(base, SLAB), :]          # (SLAB, Cin_p) bf16
            for u in range(NGRP):             # tap groups (static, unrolled)
                o = u * G
                if G == 1:
                    lhs = slab[o:o + RC, :]
                else:                         # 2 taps -> 256-deep contraction
                    lhs = jnp.concatenate(
                        [slab[o + g:o + g + RC, :] for g in range(G)], axis=-1)
                acc = acc + jnp.dot(lhs, w_ref[p, u],
                                    preferred_element_type=jnp.float32)

        # Shortcut rows: x at positions r*stride, i.e. phase P_SC, sublane
        # offset Q_SC (aligned ref load + static slice, no unaligned dyn load).
        a0 = (Q_SC // 8) * 8
        sslab = x_ref[P_SC, pl.ds(pl.multiple_of(row0 + a0, 8), RC + 8), :]
        xres = sslab[Q_SC - a0:Q_SC - a0 + RC, :]
        if proj:
            res = jnp.dot(xres, ws_ref[...], preferred_element_type=jnp.float32)
        else:                                 # identity shortcut: plain add
            res = xres.astype(jnp.float32)

        y = acc + bias + res
        out_ref[pl.ds(rc * RC, RC), :] = jnp.maximum(y, 0.0).astype(out_ref.dtype)


def resnet_block_pallas(x_cl, prep, *, tl_target=512):
    """x_cl: (N, L, Cin_p) bf16 channels-last -> (N, Lo, Cout_p) bf16."""
    n, length, cin_p = x_cl.shape
    assert cin_p == prep["cin_p"]
    s, pad = prep["stride"], prep["pad"]
    cout_p, g = prep["cout_p"], prep["G"]
    noff_g, ngrp = prep["NOFF_G"], prep["NGRP"]

    lo = (length - 1) // s + 1
    tl = min(tl_target, _round_up(lo, 8))
    if tl > 128:
        tl = _round_up(tl, 128)               # keep 128-row chunking exact
    rc = min(128, tl)
    lo_pad = _round_up(lo, tl)

    slab = _round_up(rc + noff_g, 8)          # conv slab rows per (chunk,phase)
    q_sc, p_sc = pad // s, pad % s
    mph = _round_up(lo_pad + max(slab, q_sc + 16), 8)
    ltot = mph * s
    assert ltot >= length + pad

    # zero-pad length (conv padding + tiling slack) and split into stride phases
    xp = jnp.pad(x_cl, ((0, 0), (pad, ltot - length - pad), (0, 0)))
    xph = xp.reshape(n, mph, s, cin_p).transpose(0, 2, 1, 3)   # (N, S, Mph, C)

    proj = prep["ws"] is not None

    # ---- generation-aware VMEM budgeting --------------------------------
    cap = _vmem_capacity_bytes()                     # 128 MiB (v5e/v6e), 64 MiB (v7x)
    budget = min(48 * 1024 * 1024, int(0.55 * cap))
    w_bytes = int(prep["wq"].size) * 2               # bf16, VMEM-resident
    x_bytes = s * mph * cin_p * 2                    # batch-resident slab
    o_bytes = tl * cout_p * 2
    w_buf = 1 if 2 * w_bytes > budget // 3 else 2    # single-buffer big resident blocks
    x_buf = 1 if 2 * x_bytes > budget // 3 else 2    # (their index_maps barely change)
    need = w_buf * w_bytes + x_buf * x_bytes + 2 * o_bytes + (2 << 20)
    vmem_limit = min(int(0.85 * cap), max(budget, need + (4 << 20)))
    assert need <= int(0.85 * cap), (
        "activation slab too large for VMEM; window the length axis (see TODO)")

    def _spec(block, imap, nbuf):
        if nbuf == 2:
            return pl.BlockSpec(block, imap)
        return pl.BlockSpec(block, imap, pipeline_mode=pl.Buffered(nbuf))

    kernel = functools.partial(
        _resblock_kernel, S=s, TL=tl, RC=rc, NGRP=ngrp, G=g, SLAB=slab,
        Q_SC=q_sc, P_SC=p_sc, proj=proj)

    in_specs = [
        _spec((None, s, mph, cin_p), lambda b, i: (b, 0, 0, 0), x_buf),
        _spec((s, ngrp, g * cin_p, cout_p), lambda b, i: (0, 0, 0, 0), w_buf),
        pl.BlockSpec((1, cout_p), lambda b, i: (0, 0)),
    ]
    args = [xph, prep["wq"], prep["bias"]]
    if proj:
        in_specs.append(pl.BlockSpec((cin_p, cout_p), lambda b, i: (0, 0)))
        args.append(prep["ws"])

    out = pl.pallas_call(
        kernel,
        out_shape=jax.ShapeDtypeStruct((n, lo_pad, cout_p), jnp.bfloat16),
        grid_spec=pltpu.PrefetchScalarGridSpec(
            num_scalar_prefetch=0,
            grid=(n, lo_pad // tl),
            in_specs=in_specs,
            out_specs=pl.BlockSpec((None, tl, cout_p), lambda b, i: (b, i, 0)),
        ),
        compiler_params=pltpu.CompilerParams(
            dimension_semantics=("parallel", "parallel"),
            vmem_limit_bytes=vmem_limit,
        ),
    )(*args)
    return out[:, :lo, :]


# ---------------------------------------------------------------------------
# Parameter preparation (fold eval-mode BN, pad channels, pair taps, bf16)
# ---------------------------------------------------------------------------
def _fold_bn(bn):
    gamma, beta, mean, var, eps = bn
    scale = gamma / jnp.sqrt(var + eps)
    return scale, beta - mean * scale


def prepare_block(blk, cin, *, group=None):
    conv_w = blk["conv_w"]                            # (Cout, Cin, K)
    cout, _, k = conv_w.shape
    s = blk["stride"]
    pad = k // 2
    cin_p, cout_p = _round_up(cin, 128), _round_up(cout, 128)
    g = _tap_group_size() if group is None else group

    noff = -(-k // s)                                 # offsets per stride phase
    noff_g = _round_up(noff, g)
    ngrp = noff_g // g

    scale_c, shift_c = _fold_bn(blk["bn_c"])
    w_taps = np.asarray(conv_w.transpose(2, 1, 0) * scale_c[None, None, :],
                        np.float32)                   # (K, Cin, Cout), BN folded

    # per-tap padded copy (kept for the matched-precision reference)
    w_full = np.zeros((k, cin_p, cout_p), np.float32)
    w_full[:, :cin, :cout] = w_taps

    # grouped layout: wq[p, u, gg*Cin_p:(gg+1)*Cin_p, :] = W[tap (u*G+gg)*s + p]
    wq = np.zeros((s, ngrp, g * cin_p, cout_p), np.float32)
    for p in range(s):
        for o in range(noff_g):
            j = o * s + p
            if j < k:
                u, gg = divmod(o, g)
                wq[p, u, gg * cin_p:gg * cin_p + cin, :cout] = w_taps[j]
    wq = jnp.asarray(wq, jnp.bfloat16)
    # Resident-weight footprint guard (fall back to tap streaming only if this
    # ever fails -- not the case for this model's channel counts).
    assert wq.size * 2 < 24 * 1024 * 1024, "folded conv weight too large for VMEM"

    bias = shift_c
    if blk["sc_w"] is not None:                       # projection shortcut
        scale_s, shift_s = _fold_bn(blk["bn_s"])
        ws = blk["sc_w"][:, :, 0].T * scale_s[None, :]            # (Cin, Cout)
        ws_p = jnp.zeros((cin_p, cout_p), jnp.float32)
        ws_p = ws_p.at[:cin, :cout].set(ws).astype(jnp.bfloat16)
        bias = bias + shift_s
    else:
        assert cin_p == cout_p
        ws_p = None
    bias_p = jnp.zeros((1, cout_p), jnp.float32).at[0, :cout].set(bias)

    return dict(wq=wq, bias=bias_p, ws=ws_p,
                w_taps=jnp.asarray(w_full).astype(jnp.bfloat16),
                stride=s, K=k, pad=pad, G=g, NOFF_G=noff_g, NGRP=ngrp,
                cin_p=cin_p, cout_p=cout_p, cout=cout)


def prepare_layer(params, in_channels):
    preps, cin = [], in_channels
    for blk in params:
        prep = prepare_block(blk, cin)
        preps.append(prep)
        cin = prep["cout"]
    return preps


# ---------------------------------------------------------------------------
# ResNetLayer forward (Pallas) and matched-precision pure-JAX reference
# ---------------------------------------------------------------------------
def resnet_layer_forward(x_ncl, preps):
    cin = x_ncl.shape[1]
    cin_p = preps[0]["cin_p"]
    x_cl = jnp.transpose(x_ncl, (0, 2, 1))
    x_cl = jnp.pad(x_cl, ((0, 0), (0, 0), (0, cin_p - cin))).astype(jnp.bfloat16)
    for prep in preps:
        x_cl = resnet_block_pallas(x_cl, prep)
    cout = preps[-1]["cout"]
    return jnp.transpose(x_cl[:, :, :cout].astype(jnp.float32), (0, 2, 1))


def _ref_block(x_cl, prep):
    n, length, cin_p = x_cl.shape
    s, k, pad = prep["stride"], prep["K"], prep["pad"]
    lo = (length - 1) // s + 1
    xf = x_cl.astype(jnp.float32)
    xp = jnp.pad(xf, ((0, 0), (pad, pad), (0, 0)))
    w = prep["w_taps"].astype(jnp.float32)            # (K, Cin_p, Cout_p)
    idx = jnp.arange(lo)[:, None] * s + jnp.arange(k)[None, :]
    patches = xp[:, idx, :]                           # (N, Lo, K, Cin_p)
    y = jnp.einsum("nlkc,kcd->nld", patches, w,
                   precision=jax.lax.Precision.HIGHEST)
    y = y + prep["bias"]
    xs = xf[:, ::s, :][:, :lo, :]
    if prep["ws"] is not None:
        r = jnp.einsum("nlc,cd->nld", xs, prep["ws"].astype(jnp.float32),
                       precision=jax.lax.Precision.HIGHEST)
    else:
        r = xs
    return jnp.maximum(y + r, 0.0).astype(jnp.bfloat16)


def resnet_layer_ref(x_ncl, preps):
    cin = x_ncl.shape[1]
    cin_p = preps[0]["cin_p"]
    x_cl = jnp.transpose(x_ncl, (0, 2, 1))
    x_cl = jnp.pad(x_cl, ((0, 0), (0, 0), (0, cin_p - cin))).astype(jnp.bfloat16)
    for prep in preps:
        x_cl = _ref_block(x_cl, prep)
    cout = preps[-1]["cout"]
    return jnp.transpose(x_cl[:, :, :cout].astype(jnp.float32), (0, 2, 1))


# ---------------------------------------------------------------------------
# Deterministic parameter init (shapes match ResNetLayer.__init__)
# ---------------------------------------------------------------------------
def init_params(key, in_channels, out_channels, n, kernel_size=121):
    blocks = []
    c_in = in_channels
    layer_downsampling = 2 if in_channels != out_channels else 1
    for b in range(n):
        stride = layer_downsampling if b == 0 else 1
        key, k1, k2, k3, k4, k5, k6, k7, k8 = jax.random.split(key, 9)
        conv_w = jax.random.normal(
            k1, (out_channels, c_in, kernel_size), jnp.float32) * 0.05
        bn_c = (
            jax.random.uniform(k2, (out_channels,), jnp.float32, 0.5, 1.5),
            jax.random.normal(k3, (out_channels,), jnp.float32) * 0.1,
            jax.random.normal(k4, (out_channels,), jnp.float32) * 0.1,
            jax.random.uniform(k5, (out_channels,), jnp.float32, 0.5, 1.5),
            1e-5,
        )
        if c_in != out_channels:   # projection shortcut: Conv1d(k=1) + BN
            sc_w = jax.random.normal(
                k6, (out_channels, c_in, 1), jnp.float32) * 0.05
            bn_s = (
                jax.random.uniform(k7, (out_channels,), jnp.float32, 0.5, 1.5),
                jax.random.normal(k8, (out_channels,), jnp.float32) * 0.1,
                jnp.zeros((out_channels,), jnp.float32),
                jnp.ones((out_channels,), jnp.float32),
                1e-5,
            )
        else:
            sc_w, bn_s = None, None
        blocks.append(dict(conv_w=conv_w, bn_c=bn_c, sc_w=sc_w, bn_s=bn_s,
                           stride=stride))
        c_in = out_channels
    return blocks


if __name__ == "__main__":
    key = jax.random.PRNGKey(0)
    kx, kp = jax.random.split(key)

    # small shapes: batch=2, in_channels=4, out_channels=8, seq_len=16, n=2
    N, CIN, COUT, L, NBLOCKS = 2, 4, 8, 16, 2
    x = jax.random.normal(kx, (N, CIN, L), jnp.float32)
    params = init_params(kp, CIN, COUT, NBLOCKS)
    preps = prepare_layer(params, CIN)

    y = resnet_layer_forward(x, preps)
    y = jax.block_until_ready(y)

    y_ref = resnet_layer_ref(x, preps)
    err = float(jnp.max(jnp.abs(y - y_ref)))
    assert y.shape == (N, COUT, (L - 1) // 2 + 1), y.shape
    assert jnp.allclose(y, y_ref, atol=2e-2, rtol=2e-2), f"max err {err}"

    print("KERNEL_OK")
</pallas_src>

<mosaic_0001>
module attributes {stable_mosaic.version = 11 : i64} {
  func.func @_resblock_kernel(%arg0: i32, %arg1: i32, %arg2: memref<1x2x80x128xbf16, #tpu.memory_space<vmem>>, %arg3: memref<2x31x256x128xbf16, #tpu.memory_space<vmem>>, %arg4: memref<1x128xf32, #tpu.memory_space<vmem>>, %arg5: memref<128x128xbf16, #tpu.memory_space<vmem>>, %arg6: memref<1x8x128xbf16, #tpu.memory_space<vmem>>) attributes {dimension_semantics = [#tpu.dimension_semantics<parallel>, #tpu.dimension_semantics<parallel>], iteration_bounds = array<i64: 2, 1>, scalar_prefetch = 0 : i64, scratch_operands = 0 : i64, tpu.core_type = #tpu.core_type<tc>, window_params = [{transform_indices = @transform_0, window_bounds = array<i64: 1, 2, 80, 128>}, {pipeline_mode = #tpu.pipeline_mode<synchronous>, transform_indices = @transform_1, window_bounds = array<i64: 2, 31, 256, 128>}, {pipeline_mode = #tpu.pipeline_mode<synchronous>, transform_indices = @transform_2, window_bounds = array<i64: 1, 128>}, {pipeline_mode = #tpu.pipeline_mode<synchronous>, transform_indices = @transform_3, window_bounds = array<i64: 128, 128>}, {transform_indices = @transform_4, window_bounds = array<i64: 1, 8, 128>}]} {
    %c0 = arith.constant 0 : index
    %c0_0 = arith.constant 0 : index
    %0 = vector.load %arg4[%c0, %c0_0] : memref<1x128xf32, #tpu.memory_space<vmem>>, vector<1x128xf32>
    %c8_i32 = arith.constant 8 : i32
    %1 = arith.muli %arg1, %c8_i32 : i32
    %c0_i32 = arith.constant 0 : i32
    %2 = arith.addi %1, %c0_i32 : i32
    %3 = tpu.assume_multiple %2, 8 : i32
    %cst = arith.constant 0.000000e+00 : f32
    %4 = vector.broadcast %cst : f32 to vector<8x128xf32>
    %c0_1 = arith.constant 0 : index
    %c0_2 = arith.constant 0 : index
    %5 = arith.index_cast %3 : i32 to index
    %c0_3 = arith.constant 0 : index
    %6 = vector.load %arg2[%c0_1, %c0_2, %5, %c0_3] : memref<1x2x80x128xbf16, #tpu.memory_space<vmem>>, vector<1x1x72x128xbf16>
    %7 = vector.shape_cast %6 : vector<1x1x72x128xbf16> to vector<72x128xbf16>
    %8 = vector.extract_strided_slice %7 {offsets = [0, 0], sizes = [8, 128], strides = [1, 1]} : vector<72x128xbf16> to vector<8x128xbf16>
    %9 = vector.extract_strided_slice %7 {offsets = [1, 0], sizes = [8, 128], strides = [1, 1]} : vector<72x128xbf16> to vector<8x128xbf16>
    %10 = tpu.concatenate %8, %9 in 1 : vector<8x128xbf16>, vector<8x128xbf16> -> vector<8x256xbf16>
    %c0_4 = arith.constant 0 : index
    %c0_5 = arith.constant 0 : index
    %c0_6 = arith.constant 0 : index
    %c0_7 = arith.constant 0 : index
    %11 = vector.load %arg3[%c0_4, %c0_5, %c0_6, %c0_7] : memref<2x31x256x128xbf16, #tpu.memory_space<vmem>>, vector<1x1x256x128xbf16>
    %12 = vector.shape_cast %11 : vector<1x1x256x128xbf16> to vector<256x128xbf16>
    %cst_8 = arith.constant dense<0.000000e+00> : vector<8x128xf32>
    %13 = tpu.matmul %10, %12, %cst_8 {dimension_numbers = #tpu.dot_dimension_numbers<[1], [0], [0], [1], [0, 0, 1, 1], [], []>} : vector<8x256xbf16>, vector<256x128xbf16>, vector<8x128xf32> -> vector<8x128xf32>
    %14 = arith.addf %4, %13 : vector<8x128xf32>
    %15 = vector.extract_strided_slice %7 {offsets = [2, 0], sizes = [8, 128], strides = [1, 1]} : vector<72x128xbf16> to vector<8x128xbf16>
    %16 = vector.extract_strided_slice %7 {offsets = [3, 0], sizes = [8, 128], strides = [1, 1]} : vector<72x128xbf16> to vector<8x128xbf16>
    %17 = tpu.concatenate %15, %16 in 1 : vector<8x128xbf16>, vector<8x128xbf16> -> vector<8x256xbf16>
    %c0_9 = arith.constant 0 : index
    %c1 = arith.constant 1 : index
    %c0_10 = arith.constant 0 : index
    %c0_11 = arith.constant 0 : index
    %18 = vector.load %arg3[%c0_9, %c1, %c0_10, %c0_11] : memref<2x31x256x128xbf16, #tpu.memory_space<vmem>>, vector<1x1x256x128xbf16>
    %19 = vector.shape_cast %18 : vector<1x1x256x128xbf16> to vector<256x128xbf16>
    %cst_12 = arith.constant dense<0.000000e+00> : vector<8x128xf32>
    %20 = tpu.matmul %17, %19, %cst_12 {dimension_numbers = #tpu.dot_dimension_numbers<[1], [0], [0], [1], [0, 0, 1, 1], [], []>} : vector<8x256xbf16>, vector<256x128xbf16>, vector<8x128xf32> -> vector<8x128xf32>
    %21 = arith.addf %14, %20 : vector<8x128xf32>
    %22 = vector.extract_strided_slice %7 {offsets = [4, 0], sizes = [8, 128], strides = [1, 1]} : vector<72x128xbf16> to vector<8x128xbf16>
    %23 = vector.extract_strided_slice %7 {offsets = [5, 0], sizes = [8, 128], strides = [1, 1]} : vector<72x128xbf16> to vector<8x128xbf16>
    %24 = tpu.concatenate %22, %23 in 1 : vector<8x128xbf16>, vector<8x128xbf16> -> vector<8x256xbf16>
    %c0_13 = arith.constant 0 : index
    %c2 = arith.constant 2 : index
    %c0_14 = arith.constant 0 : index
    %c0_15 = arith.constant 0 : index
    %25 = vector.load %arg3[%c0_13, %c2, %c0_14, %c0_15] : memref<2x31x256x128xbf16, #tpu.memory_space<vmem>>, vector<1x1x256x128xbf16>
    %26 = vector.shape_cast %25 : vector<1x1x256x128xbf16> to vector<256x128xbf16>
    %cst_16 = arith.constant dense<0.000000e+00> : vector<8x128xf32>
    %27 = tpu.matmul %24, %26, %cst_16 {dimension_numbers = #tpu.dot_dimension_numbers<[1], [0], [0], [1], [0, 0, 1, 1], [], []>} : vector<8x256xbf16>, vector<256x128xbf16>, vector<8x128xf32> -> vector<8x128xf32>
    %28 = arith.addf %21, %27 : vector<8x128xf32>
    %29 = vector.extract_strided_slice %7 {offsets = [6, 0], sizes = [8, 128], strides = [1, 1]} : vector<72x128xbf16> to vector<8x128xbf16>
    %30 = vector.extract_strided_slice %7 {offsets = [7, 0], sizes = [8, 128], strides = [1, 1]} : vector<72x128xbf16> to vector<8x128xbf16>
    %31 = tpu.concatenate %29, %30 in 1 : vector<8x128xbf16>, vector<8x128xbf16> -> vector<8x256xbf16>
    %c0_17 = arith.constant 0 : index
    %c3 = arith.constant 3 : index
    %c0_18 = arith.constant 0 : index
    %c0_19 = arith.constant 0 : index
    %32 = vector.load %arg3[%c0_17, %c3, %c0_18, %c0_19] : memref<2x31x256x128xbf16, #tpu.memory_space<vmem>>, vector<1x1x256x128xbf16>
    %33 = vector.shape_cast %32 : vector<1x1x256x128xbf16> to vector<256x128xbf16>
    %cst_20 = arith.constant dense<0.000000e+00> : vector<8x128xf32>
    %34 = tpu.matmul %31, %33, %cst_20 {dimension_numbers = #tpu.dot_dimension_numbers<[1], [0], [0], [1], [0, 0, 1, 1], [], []>} : vector<8x256xbf16>, vector<256x128xbf16>, vector<8x128xf32> -> vector<8x128xf32>
    %35 = arith.addf %28, %34 : vector<8x128xf32>
    %36 = vector.extract_strided_slice %7 {offsets = [8, 0], sizes = [8, 128], strides = [1, 1]} : vector<72x128xbf16> to vector<8x128xbf16>
    %37 = vector.extract_strided_slice %7 {offsets = [9, 0], sizes = [8, 128], strides = [1, 1]} : vector<72x128xbf16> to vector<8x128xbf16>
    %38 = tpu.concatenate %36, %37 in 1 : vector<8x128xbf16>, vector<8x128xbf16> -> vector<8x256xbf16>
    %c0_21 = arith.constant 0 : index
    %c4 = arith.constant 4 : index
    %c0_22 = arith.constant 0 : index
    %c0_23 = arith.constant 0 : index
    %39 = vector.load %arg3[%c0_21, %c4, %c0_22, %c0_23] : memref<2x31x256x128xbf16, #tpu.memory_space<vmem>>, vector<1x1x256x128xbf16>
    %40 = vector.shape_cast %39 : vector<1x1x256x128xbf16> to vector<256x128xbf16>
    %cst_24 = arith.constant dense<0.000000e+00> : vector<8x128xf32>
    %41 = tpu.matmul %38, %40, %cst_24 {dimension_numbers = #tpu.dot_dimension_numbers<[1], [0], [0], [1], [0, 0, 1, 1], [], []>} : vector<8x256xbf16>, vector<256x128xbf16>, vector<8x128xf32> -> vector<8x128xf32>
    %42 = arith.addf %35, %41 : vector<8x128xf32>
    %43 = vector.extract_strided_slice %7 {offsets = [10, 0], sizes = [8, 128], strides = [1, 1]} : vector<72x128xbf16> to vector<8x128xbf16>
    %44 = vector.extract_strided_slice %7 {offsets = [11, 0], sizes = [8, 128], strides = [1, 1]} : vector<72x128xbf16> to vector<8x128xbf16>
    %45 = tpu.concatenate %43, %44 in 1 : vector<8x128xbf16>, vector<8x128xbf16> -> vector<8x256xbf16>
    %c0_25 = arith.constant 0 : index
    %c5 = arith.constant 5 : index
    %c0_26 = arith.constant 0 : index
    %c0_27 = arith.constant 0 : index
    %46 = vector.load %arg3[%c0_25, %c5, %c0_26, %c0_27] : memref<2x31x256x128xbf16, #tpu.memory_space<vmem>>, vector<1x1x256x128xbf16>
    %47 = vector.shape_cast %46 : vector<1x1x256x128xbf16> to vector<256x128xbf16>
    %cst_28 = arith.constant dense<0.000000e+00> : vector<8x128xf32>
    %48 = tpu.matmul %45, %47, %cst_28 {dimension_numbers = #tpu.dot_dimension_numbers<[1], [0], [0], [1], [0, 0, 1, 1], [], []>} : vector<8x256xbf16>, vector<256x128xbf16>, vector<8x128xf32> -> vector<8x128xf32>
    %49 = arith.addf %42, %48 : vector<8x128xf32>
    %50 = vector.extract_strided_slice %7 {offsets = [12, 0], sizes = [8, 128], strides = [1, 1]} : vector<72x128xbf16> to vector<8x128xbf16>
    %51 = vector.extract_strided_slice %7 {offsets = [13, 0], sizes = [8, 128], strides = [1, 1]} : vector<72x128xbf16> to vector<8x128xbf16>
    %52 = tpu.concatenate %50, %51 in 1 : vector<8x128xbf16>, vector<8x128xbf16> -> vector<8x256xbf16>
    %c0_29 = arith.constant 0 : index
    %c6 = arith.constant 6 : index
    %c0_30 = arith.constant 0 : index
    %c0_31 = arith.constant 0 : index
    %53 = vector.load %arg3[%c0_29, %c6, %c0_30, %c0_31] : memref<2x31x256x128xbf16, #tpu.memory_space<vmem>>, vector<1x1x256x128xbf16>
    %54 = vector.shape_cast %53 : vector<1x1x256x128xbf16> to vector<256x128xbf16>
    %cst_32 = arith.constant dense<0.000000e+00> : vector<8x128xf32>
    %55 = tpu.matmul %52, %54, %cst_32 {dimension_numbers = #tpu.dot_dimension_numbers<[1], [0], [0], [1], [0, 0, 1, 1], [], []>} : vector<8x256xbf16>, vector<256x128xbf16>, vector<8x128xf32> -> vector<8x128xf32>
    %56 = arith.addf %49, %55 : vector<8x128xf32>
    %57 = vector.extract_strided_slice %7 {offsets = [14, 0], sizes = [8, 128], strides = [1, 1]} : vector<72x128xbf16> to vector<8x128xbf16>
    %58 = vector.extract_strided_slice %7 {offsets = [15, 0], sizes = [8, 128], strides = [1, 1]} : vector<72x128xbf16> to vector<8x128xbf16>
    %59 = tpu.concatenate %57, %58 in 1 : vector<8x128xbf16>, vector<8x128xbf16> -> vector<8x256xbf16>
    %c0_33 = arith.constant 0 : index
    %c7 = arith.constant 7 : index
    %c0_34 = arith.constant 0 : index
    %c0_35 = arith.constant 0 : index
    %60 = vector.load %arg3[%c0_33, %c7, %c0_34, %c0_35] : memref<2x31x256x128xbf16, #tpu.memory_space<vmem>>, vector<1x1x256x128xbf16>
    %61 = vector.shape_cast %60 : vector<1x1x256x128xbf16> to vector<256x128xbf16>
    %cst_36 = arith.constant dense<0.000000e+00> : vector<8x128xf32>
    %62 = tpu.matmul %59, %61, %cst_36 {dimension_numbers = #tpu.dot_dimension_numbers<[1], [0], [0], [1], [0, 0, 1, 1], [], []>} : vector<8x256xbf16>, vector<256x128xbf16>, vector<8x128xf32> -> vector<8x128xf32>
    %63 = arith.addf %56, %62 : vector<8x128xf32>
    %64 = vector.extract_strided_slice %7 {offsets = [16, 0], sizes = [8, 128], strides = [1, 1]} : vector<72x128xbf16> to vector<8x128xbf16>
    %65 = vector.extract_strided_slice %7 {offsets = [17, 0], sizes = [8, 128], strides = [1, 1]} : vector<72x128xbf16> to vector<8x128xbf16>
    %66 = tpu.concatenate %64, %65 in 1 : vector<8x128xbf16>, vector<8x128xbf16> -> vector<8x256xbf16>
    %c0_37 = arith.constant 0 : index
    %c8 = arith.constant 8 : index
    %c0_38 = arith.constant 0 : index
    %c0_39 = arith.constant 0 : index
    %67 = vector.load %arg3[%c0_37, %c8, %c0_38, %c0_39] : memref<2x31x256x128xbf16, #tpu.memory_space<vmem>>, vector<1x1x256x128xbf16>
    %68 = vector.shape_cast %67 : vector<1x1x256x128xbf16> to vector<256x128xbf16>
    %cst_40 = arith.constant dense<0.000000e+00> : vector<8x128xf32>
    %69 = tpu.matmul %66, %68, %cst_40 {dimension_numbers = #tpu.dot_dimension_numbers<[1], [0], [0], [1], [0, 0, 1, 1], [], []>} : vector<8x256xbf16>, vector<256x128xbf16>, vector<8x128xf32> -> vector<8x128xf32>
    %70 = arith.addf %63, %69 : vector<8x128xf32>
    %71 = vector.extract_strided_slice %7 {offsets = [18, 0], sizes = [8, 128], strides = [1, 1]} : vector<72x128xbf16> to vector<8x128xbf16>
    %72 = vector.extract_strided_slice %7 {offsets = [19, 0], sizes = [8, 128], strides = [1, 1]} : vector<72x128xbf16> to vector<8x128xbf16>
    %73 = tpu.concatenate %71, %72 in 1 : vector<8x128xbf16>, vector<8x128xbf16> -> vector<8x256xbf16>
    %c0_41 = arith.constant 0 : index
    %c9 = arith.constant 9 : index
    %c0_42 = arith.constant 0 : index
    %c0_43 = arith.constant 0 : index
    %74 = vector.load %arg3[%c0_41, %c9, %c0_42, %c0_43] : memref<2x31x256x128xbf16, #tpu.memory_space<vmem>>, vector<1x1x256x128xbf16>
    %75 = vector.shape_cast %74 : vector<1x1x256x128xbf16> to vector<256x128xbf16>
    %cst_44 = arith.constant dense<0.000000e+00> : vector<8x128xf32>
    %76 = tpu.matmul %73, %75, %cst_44 {dimension_numbers = #tpu.dot_dimension_numbers<[1], [0], [0], [1], [0, 0, 1, 1], [], []>} : vector<8x256xbf16>, vector<256x128xbf16>, vector<8x128xf32> -> vector<8x128xf32>
    %77 = arith.addf %70, %76 : vector<8x128xf32>
    %78 = vector.extract_strided_slice %7 {offsets = [20, 0], sizes = [8, 128], strides = [1, 1]} : vector<72x128xbf16> to vector<8x128xbf16>
    %79 = vector.extract_strided_slice %7 {offsets = [21, 0], sizes = [8, 128], strides = [1, 1]} : vector<72x128xbf16> to vector<8x128xbf16>
    %80 = tpu.concatenate %78, %79 in 1 : vector<8x128xbf16>, vector<8x128xbf16> -> vector<8x256xbf16>
    %c0_45 = arith.constant 0 : index
    %c10 = arith.constant 10 : index
    %c0_46 = arith.constant 0 : index
    %c0_47 = arith.constant 0 : index
    %81 = vector.load %arg3[%c0_45, %c10, %c0_46, %c0_47] : memref<2x31x256x128xbf16, #tpu.memory_space<vmem>>, vector<1x1x256x128xbf16>
    %82 = vector.shape_cast %81 : vector<1x1x256x128xbf16> to vector<256x128xbf16>
    %cst_48 = arith.constant dense<0.000000e+00> : vector<8x128xf32>
    %83 = tpu.matmul %80, %82, %cst_48 {dimension_numbers = #tpu.dot_dimension_numbers<[1], [0], [0], [1], [0, 0, 1, 1], [], []>} : vector<8x256xbf16>, vector<256x128xbf16>, vector<8x128xf32> -> vector<8x128xf32>
    %84 = arith.addf %77, %83 : vector<8x128xf32>
    %85 = vector.extract_strided_slice %7 {offsets = [22, 0], sizes = [8, 128], strides = [1, 1]} : vector<72x128xbf16> to vector<8x128xbf16>
    %86 = vector.extract_strided_slice %7 {offsets = [23, 0], sizes = [8, 128], strides = [1, 1]} : vector<72x128xbf16> to vector<8x128xbf16>
    %87 = tpu.concatenate %85, %86 in 1 : vector<8x128xbf16>, vector<8x128xbf16> -> vector<8x256xbf16>
    %c0_49 = arith.constant 0 : index
    %c11 = arith.constant 11 : index
    %c0_50 = arith.constant 0 : index
    %c0_51 = arith.constant 0 : index
    %88 = vector.load %arg3[%c0_49, %c11, %c0_50, %c0_51] : memref<2x31x256x128xbf16, #tpu.memory_space<vmem>>, vector<1x1x256x128xbf16>
    %89 = vector.shape_cast %88 : vector<1x1x256x128xbf16> to vector<256x128xbf16>
    %cst_52 = arith.constant dense<0.000000e+00> : vector<8x128xf32>
    %90 = tpu.matmul %87, %89, %cst_52 {dimension_numbers = #tpu.dot_dimension_numbers<[1], [0], [0], [1], [0, 0, 1, 1], [], []>} : vector<8x256xbf16>, vector<256x128xbf16>, vector<8x128xf32> -> vector<8x128xf32>
    %91 = arith.addf %84, %90 : vector<8x128xf32>
    %92 = vector.extract_strided_slice %7 {offsets = [24, 0], sizes = [8, 128], strides = [1, 1]} : vector<72x128xbf16> to vector<8x128xbf16>
    %93 = vector.extract_strided_slice %7 {offsets = [25, 0], sizes = [8, 128], strides = [1, 1]} : vector<72x128xbf16> to vector<8x128xbf16>
    %94 = tpu.concatenate %92, %93 in 1 : vector<8x128xbf16>, vector<8x128xbf16> -> vector<8x256xbf16>
    %c0_53 = arith.constant 0 : index
    %c12 = arith.constant 12 : index
    %c0_54 = arith.constant 0 : index
    %c0_55 = arith.constant 0 : index
    %95 = vector.load %arg3[%c0_53, %c12, %c0_54, %c0_55] : memref<2x31x256x128xbf16, #tpu.memory_space<vmem>>, vector<1x1x256x128xbf16>
    %96 = vector.shape_cast %95 : vector<1x1x256x128xbf16> to vector<256x128xbf16>
    %cst_56 = arith.constant dense<0.000000e+00> : vector<8x128xf32>
    %97 = tpu.matmul %94, %96, %cst_56 {dimension_numbers = #tpu.dot_dimension_numbers<[1], [0], [0], [1], [0, 0, 1, 1], [], []>} : vector<8x256xbf16>, vector<256x128xbf16>, vector<8x128xf32> -> vector<8x128xf32>
    %98 = arith.addf %91, %97 : vector<8x128xf32>
    %99 = vector.extract_strided_slice %7 {offsets = [26, 0], sizes = [8, 128], strides = [1, 1]} : vector<72x128xbf16> to vector<8x128xbf16>
    %100 = vector.extract_strided_slice %7 {offsets = [27, 0], sizes = [8, 128], strides = [1, 1]} : vector<72x128xbf16> to vector<8x128xbf16>
    %101 = tpu.concatenate %99, %100 in 1 : vector<8x128xbf16>, vector<8x128xbf16> -> vector<8x256xbf16>
    %c0_57 = arith.constant 0 : index
    %c13 = arith.constant 13 : index
    %c0_58 = arith.constant 0 : index
    %c0_59 = arith.constant 0 : index
    %102 = vector.load %arg3[%c0_57, %c13, %c0_58, %c0_59] : memref<2x31x256x128xbf16, #tpu.memory_space<vmem>>, vector<1x1x256x128xbf16>
    %103 = vector.shape_cast %102 : vector<1x1x256x128xbf16> to vector<256x128xbf16>
    %cst_60 = arith.constant dense<0.000000e+00> : vector<8x128xf32>
    %104 = tpu.matmul %101, %103, %cst_60 {dimension_numbers = #tpu.dot_dimension_numbers<[1], [0], [0], [1], [0, 0, 1, 1], [], []>} : vector<8x256xbf16>, vector<256x128xbf16>, vector<8x128xf32> -> vector<8x128xf32>
    %105 = arith.addf %98, %104 : vector<8x128xf32>
    %106 = vector.extract_strided_slice %7 {offsets = [28, 0], sizes = [8, 128], strides = [1, 1]} : vector<72x128xbf16> to vector<8x128xbf16>
    %107 = vector.extract_strided_slice %7 {offsets = [29, 0], sizes = [8, 128], strides = [1, 1]} : vector<72x128xbf16> to vector<8x128xbf16>
    %108 = tpu.concatenate %106, %107 in 1 : vector<8x128xbf16>, vector<8x128xbf16> -> vector<8x256xbf16>
    %c0_61 = arith.constant 0 : index
    %c14 = arith.constant 14 : index
    %c0_62 = arith.constant 0 : index
    %c0_63 = arith.constant 0 : index
    %109 = vector.load %arg3[%c0_61, %c14, %c0_62, %c0_63] : memref<2x31x256x128xbf16, #tpu.memory_space<vmem>>, vector<1x1x256x128xbf16>
    %110 = vector.shape_cast %109 : vector<1x1x256x128xbf16> to vector<256x128xbf16>
    %cst_64 = arith.constant dense<0.000000e+00> : vector<8x128xf32>
    %111 = tpu.matmul %108, %110, %cst_64 {dimension_numbers = #tpu.dot_dimension_numbers<[1], [0], [0], [1], [0, 0, 1, 1], [], []>} : vector<8x256xbf16>, vector<256x128xbf16>, vector<8x128xf32> -> vector<8x128xf32>
    %112 = arith.addf %105, %111 : vector<8x128xf32>
    %113 = vector.extract_strided_slice %7 {offsets = [30, 0], sizes = [8, 128], strides = [1, 1]} : vector<72x128xbf16> to vector<8x128xbf16>
    %114 = vector.extract_strided_slice %7 {offsets = [31, 0], sizes = [8, 128], strides = [1, 1]} : vector<72x128xbf16> to vector<8x128xbf16>
    %115 = tpu.concatenate %113, %114 in 1 : vector<8x128xbf16>, vector<8x128xbf16> -> vector<8x256xbf16>
    %c0_65 = arith.constant 0 : index
    %c15 = arith.constant 15 : index
    %c0_66 = arith.constant 0 : index
    %c0_67 = arith.constant 0 : index
    %116 = vector.load %arg3[%c0_65, %c15, %c0_66, %c0_67] : memref<2x31x256x128xbf16, #tpu.memory_space<vmem>>, vector<1x1x256x128xbf16>
    %117 = vector.shape_cast %116 : vector<1x1x256x128xbf16> to vector<256x128xbf16>
    %cst_68 = arith.constant dense<0.000000e+00> : vector<8x128xf32>
    %118 = tpu.matmul %115, %117, %cst_68 {dimension_numbers = #tpu.dot_dimension_numbers<[1], [0], [0], [1], [0, 0, 1, 1], [], []>} : vector<8x256xbf16>, vector<256x128xbf16>, vector<8x128xf32> -> vector<8x128xf32>
    %119 = arith.addf %112, %118 : vector<8x128xf32>
    %120 = vector.extract_strided_slice %7 {offsets = [32, 0], sizes = [8, 128], strides = [1, 1]} : vector<72x128xbf16> to vector<8x128xbf16>
    %121 = vector.extract_strided_slice %7 {offsets = [33, 0], sizes = [8, 128], strides = [1, 1]} : vector<72x128xbf16> to vector<8x128xbf16>
    %122 = tpu.concatenate %120, %121 in 1 : vector<8x128xbf16>, vector<8x128xbf16> -> vector<8x256xbf16>
    %c0_69 = arith.constant 0 : index
    %c16 = arith.constant 16 : index
    %c0_70 = arith.constant 0 : index
    %c0_71 = arith.constant 0 : index
    %123 = vector.load %arg3[%c0_69, %c16, %c0_70, %c0_71] : memref<2x31x256x128xbf16, #tpu.memory_space<vmem>>, vector<1x1x256x128xbf16>
    %124 = vector.shape_cast %123 : vector<1x1x256x128xbf16> to vector<256x128xbf16>
    %cst_72 = arith.constant dense<0.000000e+00> : vector<8x128xf32>
    %125 = tpu.matmul %122, %124, %cst_72 {dimension_numbers = #tpu.dot_dimension_numbers<[1], [0], [0], [1], [0, 0, 1, 1], [], []>} : vector<8x256xbf16>, vector<256x128xbf16>, vector<8x128xf32> -> vector<8x128xf32>
    %126 = arith.addf %119, %125 : vector<8x128xf32>
    %127 = vector.extract_strided_slice %7 {offsets = [34, 0], sizes = [8, 128], strides = [1, 1]} : vector<72x128xbf16> to vector<8x128xbf16>
    %128 = vector.extract_strided_slice %7 {offsets = [35, 0], sizes = [8, 128], strides = [1, 1]} : vector<72x128xbf16> to vector<8x128xbf16>
    %129 = tpu.concatenate %127, %128 in 1 : vector<8x128xbf16>, vector<8x128xbf16> -> vector<8x256xbf16>
    %c0_73 = arith.constant 0 : index
    %c17 = arith.constant 17 : index
    %c0_74 = arith.constant 0 : index
    %c0_75 = arith.constant 0 : index
    %130 = vector.load %arg3[%c0_73, %c17, %c0_74, %c0_75] : memref<2x31x256x128xbf16, #tpu.memory_space<vmem>>, vector<1x1x256x128xbf16>
    %131 = vector.shape_cast %130 : vector<1x1x256x128xbf16> to vector<256x128xbf16>
    %cst_76 = arith.constant dense<0.000000e+00> : vector<8x128xf32>
    %132 = tpu.matmul %129, %131, %cst_76 {dimension_numbers = #tpu.dot_dimension_numbers<[1], [0], [0], [1], [0, 0, 1, 1], [], []>} : vector<8x256xbf16>, vector<256x128xbf16>, vector<8x128xf32> -> vector<8x128xf32>
    %133 = arith.addf %126, %132 : vector<8x128xf32>
    %134 = vector.extract_strided_slice %7 {offsets = [36, 0], sizes = [8, 128], strides = [1, 1]} : vector<72x128xbf16> to vector<8x128xbf16>
    %135 = vector.extract_strided_slice %7 {offsets = [37, 0], sizes = [8, 128], strides = [1, 1]} : vector<72x128xbf16> to vector<8x128xbf16>
    %136 = tpu.concatenate %134, %135 in 1 : vector<8x128xbf16>, vector<8x128xbf16> -> vector<8x256xbf16>
    %c0_77 = arith.constant 0 : index
    %c18 = arith.constant 18 : index
    %c0_78 = arith.constant 0 : index
    %c0_79 = arith.constant 0 : index
    %137 = vector.load %arg3[%c0_77, %c18, %c0_78, %c0_79] : memref<2x31x256x128xbf16, #tpu.memory_space<vmem>>, vector<1x1x256x128xbf16>
    %138 = vector.shape_cast %137 : vector<1x1x256x128xbf16> to vector<256x128xbf16>
    %cst_80 = arith.constant dense<0.000000e+00> : vector<8x128xf32>
    %139 = tpu.matmul %136, %138, %cst_80 {dimension_numbers = #tpu.dot_dimension_numbers<[1], [0], [0], [1], [0, 0, 1, 1], [], []>} : vector<8x256xbf16>, vector<256x128xbf16>, vector<8x128xf32> -> vector<8x128xf32>
    %140 = arith.addf %133, %139 : vector<8x128xf32>
    %141 = vector.extract_strided_slice %7 {offsets = [38, 0], sizes = [8, 128], strides = [1, 1]} : vector<72x128xbf16> to vector<8x128xbf16>
    %142 = vector.extract_strided_slice %7 {offsets = [39, 0], sizes = [8, 128], strides = [1, 1]} : vector<72x128xbf16> to vector<8x128xbf16>
    %143 = tpu.concatenate %141, %142 in 1 : vector<8x128xbf16>, vector<8x128xbf16> -> vector<8x256xbf16>
    %c0_81 = arith.constant 0 : index
    %c19 = arith.constant 19 : index
    %c0_82 = arith.constant 0 : index
    %c0_83 = arith.constant 0 : index
    %144 = vector.load %arg3[%c0_81, %c19, %c0_82, %c0_83] : memref<2x31x256x128xbf16, #tpu.memory_space<vmem>>, vector<1x1x256x128xbf16>
    %145 = vector.shape_cast %144 : vector<1x1x256x128xbf16> to vector<256x128xbf16>
    %cst_84 = arith.constant dense<0.000000e+00> : vector<8x128xf32>
    %146 = tpu.matmul %143, %145, %cst_84 {dimension_numbers = #tpu.dot_dimension_numbers<[1], [0], [0], [1], [0, 0, 1, 1], [], []>} : vector<8x256xbf16>, vector<256x128xbf16>, vector<8x128xf32> -> vector<8x128xf32>
    %147 = arith.addf %140, %146 : vector<8x128xf32>
    %148 = vector.extract_strided_slice %7 {offsets = [40, 0], sizes = [8, 128], strides = [1, 1]} : vector<72x128xbf16> to vector<8x128xbf16>
    %149 = vector.extract_strided_slice %7 {offsets = [41, 0], sizes = [8, 128], strides = [1, 1]} : vector<72x128xbf16> to vector<8x128xbf16>
    %150 = tpu.concatenate %148, %149 in 1 : vector<8x128xbf16>, vector<8x128xbf16> -> vector<8x256xbf16>
    %c0_85 = arith.constant 0 : index
    %c20 = arith.constant 20 : index
    %c0_86 = arith.constant 0 : index
    %c0_87 = arith.constant 0 : index
    %151 = vector.load %arg3[%c0_85, %c20, %c0_86, %c0_87] : memref<2x31x256x128xbf16, #tpu.memory_space<vmem>>, vector<1x1x256x128xbf16>
    %152 = vector.shape_cast %151 : vector<1x1x256x128xbf16> to vector<256x128xbf16>
    %cst_88 = arith.constant dense<0.000000e+00> : vector<8x128xf32>
    %153 = tpu.matmul %150, %152, %cst_88 {dimension_numbers = #tpu.dot_dimension_numbers<[1], [0], [0], [1], [0, 0, 1, 1], [], []>} : vector<8x256xbf16>, vector<256x128xbf16>, vector<8x128xf32> -> vector<8x128xf32>
    %154 = arith.addf %147, %153 : vector<8x128xf32>
    %155 = vector.extract_strided_slice %7 {offsets = [42, 0], sizes = [8, 128], strides = [1, 1]} : vector<72x128xbf16> to vector<8x128xbf16>
    %156 = vector.extract_strided_slice %7 {offsets = [43, 0], sizes = [8, 128], strides = [1, 1]} : vector<72x128xbf16> to vector<8x128xbf16>
    %157 = tpu.concatenate %155, %156 in 1 : vector<8x128xbf16>, vector<8x128xbf16> -> vector<8x256xbf16>
    %c0_89 = arith.constant 0 : index
    %c21 = arith.constant 21 : index
    %c0_90 = arith.constant 0 : index
    %c0_91 = arith.constant 0 : index
    %158 = vector.load %arg3[%c0_89, %c21, %c0_90, %c0_91] : memref<2x31x256x128xbf16, #tpu.memory_space<vmem>>, vector<1x1x256x128xbf16>
    %159 = vector.shape_cast %158 : vector<1x1x256x128xbf16> to vector<256x128xbf16>
    %cst_92 = arith.constant dense<0.000000e+00> : vector<8x128xf32>
    %160 = tpu.matmul %157, %159, %cst_92 {dimension_numbers = #tpu.dot_dimension_numbers<[1], [0], [0], [1], [0, 0, 1, 1], [], []>} : vector<8x256xbf16>, vector<256x128xbf16>, vector<8x128xf32> -> vector<8x128xf32>
    %161 = arith.addf %154, %160 : vector<8x128xf32>
    %162 = vector.extract_strided_slice %7 {offsets = [44, 0], sizes = [8, 128], strides = [1, 1]} : vector<72x128xbf16> to vector<8x128xbf16>
    %163 = vector.extract_strided_slice %7 {offsets = [45, 0], sizes = [8, 128], strides = [1, 1]} : vector<72x128xbf16> to vector<8x128xbf16>
    %164 = tpu.concatenate %162, %163 in 1 : vector<8x128xbf16>, vector<8x128xbf16> -> vector<8x256xbf16>
    %c0_93 = arith.constant 0 : index
    %c22 = arith.constant 22 : index
    %c0_94 = arith.constant 0 : index
    %c0_95 = arith.constant 0 : index
    %165 = vector.load %arg3[%c0_93, %c22, %c0_94, %c0_95] : memref<2x31x256x128xbf16, #tpu.memory_space<vmem>>, vector<1x1x256x128xbf16>
    %166 = vector.shape_cast %165 : vector<1x1x256x128xbf16> to vector<256x128xbf16>
    %cst_96 = arith.constant dense<0.000000e+00> : vector<8x128xf32>
    %167 = tpu.matmul %164, %166, %cst_96 {dimension_numbers = #tpu.dot_dimension_numbers<[1], [0], [0], [1], [0, 0, 1, 1], [], []>} : vector<8x256xbf16>, vector<256x128xbf16>, vector<8x128xf32> -> vector<8x128xf32>
    %168 = arith.addf %161, %167 : vector<8x128xf32>
    %169 = vector.extract_strided_slice %7 {offsets = [46, 0], sizes = [8, 128], strides = [1, 1]} : vector<72x128xbf16> to vector<8x128xbf16>
    %170 = vector.extract_strided_slice %7 {offsets = [47, 0], sizes = [8, 128], strides = [1, 1]} : vector<72x128xbf16> to vector<8x128xbf16>
    %171 = tpu.concatenate %169, %170 in 1 : vector<8x128xbf16>, vector<8x128xbf16> -> vector<8x256xbf16>
    %c0_97 = arith.constant 0 : index
    %c23 = arith.constant 23 : index
    %c0_98 = arith.constant 0 : index
    %c0_99 = arith.constant 0 : index
    %172 = vector.load %arg3[%c0_97, %c23, %c0_98, %c0_99] : memref<2x31x256x128xbf16, #tpu.memory_space<vmem>>, vector<1x1x256x128xbf16>
    %173 = vector.shape_cast %172 : vector<1x1x256x128xbf16> to vector<256x128xbf16>
    %cst_100 = arith.constant dense<0.000000e+00> : vector<8x128xf32>
    %174 = tpu.matmul %171, %173, %cst_100 {dimension_numbers = #tpu.dot_dimension_numbers<[1], [0], [0], [1], [0, 0, 1, 1], [], []>} : vector<8x256xbf16>, vector<256x128xbf16>, vector<8x128xf32> -> vector<8x128xf32>
    %175 = arith.addf %168, %174 : vector<8x128xf32>
    %176 = vector.extract_strided_slice %7 {offsets = [48, 0], sizes = [8, 128], strides = [1, 1]} : vector<72x128xbf16> to vector<8x128xbf16>
    %177 = vector.extract_strided_slice %7 {offsets = [49, 0], sizes = [8, 128], strides = [1, 1]} : vector<72x128xbf16> to vector<8x128xbf16>
    %178 = tpu.concatenate %176, %177 in 1 : vector<8x128xbf16>, vector<8x128xbf16> -> vector<8x256xbf16>
    %c0_101 = arith.constant 0 : index
    %c24 = arith.constant 24 : index
    %c0_102 = arith.constant 0 : index
    %c0_103 = arith.constant 0 : index
    %179 = vector.load %arg3[%c0_101, %c24, %c0_102, %c0_103] : memref<2x31x256x128xbf16, #tpu.memory_space<vmem>>, vector<1x1x256x128xbf16>
    %180 = vector.shape_cast %179 : vector<1x1x256x128xbf16> to vector<256x128xbf16>
    %cst_104 = arith.constant dense<0.000000e+00> : vector<8x128xf32>
    %181 = tpu.matmul %178, %180, %cst_104 {dimension_numbers = #tpu.dot_dimension_numbers<[1], [0], [0], [1], [0, 0, 1, 1], [], []>} : vector<8x256xbf16>, vector<256x128xbf16>, vector<8x128xf32> -> vector<8x128xf32>
    %182 = arith.addf %175, %181 : vector<8x128xf32>
    %183 = vector.extract_strided_slice %7 {offsets = [50, 0], sizes = [8, 128], strides = [1, 1]} : vector<72x128xbf16> to vector<8x128xbf16>
    %184 = vector.extract_strided_slice %7 {offsets = [51, 0], sizes = [8, 128], strides = [1, 1]} : vector<72x128xbf16> to vector<8x128xbf16>
    %185 = tpu.concatenate %183, %184 in 1 : vector<8x128xbf16>, vector<8x128xbf16> -> vector<8x256xbf16>
    %c0_105 = arith.constant 0 : index
    %c25 = arith.constant 25 : index
    %c0_106 = arith.constant 0 : index
    %c0_107 = arith.constant 0 : index
    %186 = vector.load %arg3[%c0_105, %c25, %c0_106, %c0_107] : memref<2x31x256x128xbf16, #tpu.memory_space<vmem>>, vector<1x1x256x128xbf16>
    %187 = vector.shape_cast %186 : vector<1x1x256x128xbf16> to vector<256x128xbf16>
    %cst_108 = arith.constant dense<0.000000e+00> : vector<8x128xf32>
    %188 = tpu.matmul %185, %187, %cst_108 {dimension_numbers = #tpu.dot_dimension_numbers<[1], [0], [0], [1], [0, 0, 1, 1], [], []>} : vector<8x256xbf16>, vector<256x128xbf16>, vector<8x128xf32> -> vector<8x128xf32>
    %189 = arith.addf %182, %188 : vector<8x128xf32>
    %190 = vector.extract_strided_slice %7 {offsets = [52, 0], sizes = [8, 128], strides = [1, 1]} : vector<72x128xbf16> to vector<8x128xbf16>
    %191 = vector.extract_strided_slice %7 {offsets = [53, 0], sizes = [8, 128], strides = [1, 1]} : vector<72x128xbf16> to vector<8x128xbf16>
    %192 = tpu.concatenate %190, %191 in 1 : vector<8x128xbf16>, vector<8x128xbf16> -> vector<8x256xbf16>
    %c0_109 = arith.constant 0 : index
    %c26 = arith.constant 26 : index
    %c0_110 = arith.constant 0 : index
    %c0_111 = arith.constant 0 : index
    %193 = vector.load %arg3[%c0_109, %c26, %c0_110, %c0_111] : memref<2x31x256x128xbf16, #tpu.memory_space<vmem>>, vector<1x1x256x128xbf16>
    %194 = vector.shape_cast %193 : vector<1x1x256x128xbf16> to vector<256x128xbf16>
    %cst_112 = arith.constant dense<0.000000e+00> : vector<8x128xf32>
    %195 = tpu.matmul %192, %194, %cst_112 {dimension_numbers = #tpu.dot_dimension_numbers<[1], [0], [0], [1], [0, 0, 1, 1], [], []>} : vector<8x256xbf16>, vector<256x128xbf16>, vector<8x128xf32> -> vector<8x128xf32>
    %196 = arith.addf %189, %195 : vector<8x128xf32>
    %197 = vector.extract_strided_slice %7 {offsets = [54, 0], sizes = [8, 128], strides = [1, 1]} : vector<72x128xbf16> to vector<8x128xbf16>
    %198 = vector.extract_strided_slice %7 {offsets = [55, 0], sizes = [8, 128], strides = [1, 1]} : vector<72x128xbf16> to vector<8x128xbf16>
    %199 = tpu.concatenate %197, %198 in 1 : vector<8x128xbf16>, vector<8x128xbf16> -> vector<8x256xbf16>
    %c0_113 = arith.constant 0 : index
    %c27 = arith.constant 27 : index
    %c0_114 = arith.constant 0 : index
    %c0_115 = arith.constant 0 : index
    %200 = vector.load %arg3[%c0_113, %c27, %c0_114, %c0_115] : memref<2x31x256x128xbf16, #tpu.memory_space<vmem>>, vector<1x1x256x128xbf16>
    %201 = vector.shape_cast %200 : vector<1x1x256x128xbf16> to vector<256x128xbf16>
    %cst_116 = arith.constant dense<0.000000e+00> : vector<8x128xf32>
    %202 = tpu.matmul %199, %201, %cst_116 {dimension_numbers = #tpu.dot_dimension_numbers<[1], [0], [0], [1], [0, 0, 1, 1], [], []>} : vector<8x256xbf16>, vector<256x128xbf16>, vector<8x128xf32> -> vector<8x128xf32>
    %203 = arith.addf %196, %202 : vector<8x128xf32>
    %204 = vector.extract_strided_slice %7 {offsets = [56, 0], sizes = [8, 128], strides = [1, 1]} : vector<72x128xbf16> to vector<8x128xbf16>
    %205 = vector.extract_strided_slice %7 {offsets = [57, 0], sizes = [8, 128], strides = [1, 1]} : vector<72x128xbf16> to vector<8x128xbf16>
    %206 = tpu.concatenate %204, %205 in 1 : vector<8x128xbf16>, vector<8x128xbf16> -> vector<8x256xbf16>
    %c0_117 = arith.constant 0 : index
    %c28 = arith.constant 28 : index
    %c0_118 = arith.constant 0 : index
    %c0_119 = arith.constant 0 : index
    %207 = vector.load %arg3[%c0_117, %c28, %c0_118, %c0_119] : memref<2x31x256x128xbf16, #tpu.memory_space<vmem>>, vector<1x1x256x128xbf16>
    %208 = vector.shape_cast %207 : vector<1x1x256x128xbf16> to vector<256x128xbf16>
    %cst_120 = arith.constant dense<0.000000e+00> : vector<8x128xf32>
    %209 = tpu.matmul %206, %208, %cst_120 {dimension_numbers = #tpu.dot_dimension_numbers<[1], [0], [0], [1], [0, 0, 1, 1], [], []>} : vector<8x256xbf16>, vector<256x128xbf16>, vector<8x128xf32> -> vector<8x128xf32>
    %210 = arith.addf %203, %209 : vector<8x128xf32>
    %211 = vector.extract_strided_slice %7 {offsets = [58, 0], sizes = [8, 128], strides = [1, 1]} : vector<72x128xbf16> to vector<8x128xbf16>
    %212 = vector.extract_strided_slice %7 {offsets = [59, 0], sizes = [8, 128], strides = [1, 1]} : vector<72x128xbf16> to vector<8x128xbf16>
    %213 = tpu.concatenate %211, %212 in 1 : vector<8x128xbf16>, vector<8x128xbf16> -> vector<8x256xbf16>
    %c0_121 = arith.constant 0 : index
    %c29 = arith.constant 29 : index
    %c0_122 = arith.constant 0 : index
    %c0_123 = arith.constant 0 : index
    %214 = vector.load %arg3[%c0_121, %c29, %c0_122, %c0_123] : memref<2x31x256x128xbf16, #tpu.memory_space<vmem>>, vector<1x1x256x128xbf16>
    %215 = vector.shape_cast %214 : vector<1x1x256x128xbf16> to vector<256x128xbf16>
    %cst_124 = arith.constant dense<0.000000e+00> : vector<8x128xf32>
    %216 = tpu.matmul %213, %215, %cst_124 {dimension_numbers = #tpu.dot_dimension_numbers<[1], [0], [0], [1], [0, 0, 1, 1], [], []>} : vector<8x256xbf16>, vector<256x128xbf16>, vector<8x128xf32> -> vector<8x128xf32>
    %217 = arith.addf %210, %216 : vector<8x128xf32>
    %218 = vector.extract_strided_slice %7 {offsets = [60, 0], sizes = [8, 128], strides = [1, 1]} : vector<72x128xbf16> to vector<8x128xbf16>
    %219 = vector.extract_strided_slice %7 {offsets = [61, 0], sizes = [8, 128], strides = [1, 1]} : vector<72x128xbf16> to vector<8x128xbf16>
    %220 = tpu.concatenate %218, %219 in 1 : vector<8x128xbf16>, vector<8x128xbf16> -> vector<8x256xbf16>
    %c0_125 = arith.constant 0 : index
    %c30 = arith.constant 30 : index
    %c0_126 = arith.constant 0 : index
    %c0_127 = arith.constant 0 : index
    %221 = vector.load %arg3[%c0_125, %c30, %c0_126, %c0_127] : memref<2x31x256x128xbf16, #tpu.memory_space<vmem>>, vector<1x1x256x128xbf16>
    %222 = vector.shape_cast %221 : vector<1x1x256x128xbf16> to vector<256x128xbf16>
    %cst_128 = arith.constant dense<0.000000e+00> : vector<8x128xf32>
    %223 = tpu.matmul %220, %222, %cst_128 {dimension_numbers = #tpu.dot_dimension_numbers<[1], [0], [0], [1], [0, 0, 1, 1], [], []>} : vector<8x256xbf16>, vector<256x128xbf16>, vector<8x128xf32> -> vector<8x128xf32>
    %224 = arith.addf %217, %223 : vector<8x128xf32>
    %c0_129 = arith.constant 0 : index
    %c1_130 = arith.constant 1 : index
    %225 = arith.index_cast %3 : i32 to index
    %c0_131 = arith.constant 0 : index
    %226 = vector.load %arg2[%c0_129, %c1_130, %225, %c0_131] : memref<1x2x80x128xbf16, #tpu.memory_space<vmem>>, vector<1x1x72x128xbf16>
    %227 = vector.shape_cast %226 : vector<1x1x72x128xbf16> to vector<72x128xbf16>
    %228 = vector.extract_strided_slice %227 {offsets = [0, 0], sizes = [8, 128], strides = [1, 1]} : vector<72x128xbf16> to vector<8x128xbf16>
    %229 = vector.extract_strided_slice %227 {offsets = [1, 0], sizes = [8, 128], strides = [1, 1]} : vector<72x128xbf16> to vector<8x128xbf16>
    %230 = tpu.concatenate %228, %229 in 1 : vector<8x128xbf16>, vector<8x128xbf16> -> vector<8x256xbf16>
    %c1_132 = arith.constant 1 : index
    %c0_133 = arith.constant 0 : index
    %c0_134 = arith.constant 0 : index
    %c0_135 = arith.constant 0 : index
    %231 = vector.load %arg3[%c1_132, %c0_133, %c0_134, %c0_135] : memref<2x31x256x128xbf16, #tpu.memory_space<vmem>>, vector<1x1x256x128xbf16>
    %232 = vector.shape_cast %231 : vector<1x1x256x128xbf16> to vector<256x128xbf16>
    %cst_136 = arith.constant dense<0.000000e+00> : vector<8x128xf32>
    %233 = tpu.matmul %230, %232, %cst_136 {dimension_numbers = #tpu.dot_dimension_numbers<[1], [0], [0], [1], [0, 0, 1, 1], [], []>} : vector<8x256xbf16>, vector<256x128xbf16>, vector<8x128xf32> -> vector<8x128xf32>
    %234 = arith.addf %224, %233 : vector<8x128xf32>
    %235 = vector.extract_strided_slice %227 {offsets = [2, 0], sizes = [8, 128], strides = [1, 1]} : vector<72x128xbf16> to vector<8x128xbf16>
    %236 = vector.extract_strided_slice %227 {offsets = [3, 0], sizes = [8, 128], strides = [1, 1]} : vector<72x128xbf16> to vector<8x128xbf16>
    %237 = tpu.concatenate %235, %236 in 1 : vector<8x128xbf16>, vector<8x128xbf16> -> vector<8x256xbf16>
    %c1_137 = arith.constant 1 : index
    %c1_138 = arith.constant 1 : index
    %c0_139 = arith.constant 0 : index
    %c0_140 = arith.constant 0 : index
    %238 = vector.load %arg3[%c1_137, %c1_138, %c0_139, %c0_140] : memref<2x31x256x128xbf16, #tpu.memory_space<vmem>>, vector<1x1x256x128xbf16>
    %239 = vector.shape_cast %238 : vector<1x1x256x128xbf16> to vector<256x128xbf16>
    %cst_141 = arith.constant dense<0.000000e+00> : vector<8x128xf32>
    %240 = tpu.matmul %237, %239, %cst_141 {dimension_numbers = #tpu.dot_dimension_numbers<[1], [0], [0], [1], [0, 0, 1, 1], [], []>} : vector<8x256xbf16>, vector<256x128xbf16>, vector<8x128xf32> -> vector<8x128xf32>
    %241 = arith.addf %234, %240 : vector<8x128xf32>
    %242 = vector.extract_strided_slice %227 {offsets = [4, 0], sizes = [8, 128], strides = [1, 1]} : vector<72x128xbf16> to vector<8x128xbf16>
    %243 = vector.extract_strided_slice %227 {offsets = [5, 0], sizes = [8, 128], strides = [1, 1]} : vector<72x128xbf16> to vector<8x128xbf16>
    %244 = tpu.concatenate %242, %243 in 1 : vector<8x128xbf16>, vector<8x128xbf16> -> vector<8x256xbf16>
    %c1_142 = arith.constant 1 : index
    %c2_143 = arith.constant 2 : index
    %c0_144 = arith.constant 0 : index
    %c0_145 = arith.constant 0 : index
    %245 = vector.load %arg3[%c1_142, %c2_143, %c0_144, %c0_145] : memref<2x31x256x128xbf16, #tpu.memory_space<vmem>>, vector<1x1x256x128xbf16>
    %246 = vector.shape_cast %245 : vector<1x1x256x128xbf16> to vector<256x128xbf16>
    %cst_146 = arith.constant dense<0.000000e+00> : vector<8x128xf32>
    %247 = tpu.matmul %244, %246, %cst_146 {dimension_numbers = #tpu.dot_dimension_numbers<[1], [0], [0], [1], [0, 0, 1, 1], [], []>} : vector<8x256xbf16>, vector<256x128xbf16>, vector<8x128xf32> -> vector<8x128xf32>
    %248 = arith.addf %241, %247 : vector<8x128xf32>
    %249 = vector.extract_strided_slice %227 {offsets = [6, 0], sizes = [8, 128], strides = [1, 1]} : vector<72x128xbf16> to vector<8x128xbf16>
    %250 = vector.extract_strided_slice %227 {offsets = [7, 0], sizes = [8, 128], strides = [1, 1]} : vector<72x128xbf16> to vector<8x128xbf16>
    %251 = tpu.concatenate %249, %250 in 1 : vector<8x128xbf16>, vector<8x128xbf16> -> vector<8x256xbf16>
    %c1_147 = arith.constant 1 : index
    %c3_148 = arith.constant 3 : index
    %c0_149 = arith.constant 0 : index
    %c0_150 = arith.constant 0 : index
    %252 = vector.load %arg3[%c1_147, %c3_148, %c0_149, %c0_150] : memref<2x31x256x128xbf16, #tpu.memory_space<vmem>>, vector<1x1x256x128xbf16>
    %253 = vector.shape_cast %252 : vector<1x1x256x128xbf16> to vector<256x128xbf16>
    %cst_151 = arith.constant dense<0.000000e+00> : vector<8x128xf32>
    %254 = tpu.matmul %251, %253, %cst_151 {dimension_numbers = #tpu.dot_dimension_numbers<[1], [0], [0], [1], [0, 0, 1, 1], [], []>} : vector<8x256xbf16>, vector<256x128xbf16>, vector<8x128xf32> -> vector<8x128xf32>
    %255 = arith.addf %248, %254 : vector<8x128xf32>
    %256 = vector.extract_strided_slice %227 {offsets = [8, 0], sizes = [8, 128], strides = [1, 1]} : vector<72x128xbf16> to vector<8x128xbf16>
    %257 = vector.extract_strided_slice %227 {offsets = [9, 0], sizes = [8, 128], strides = [1, 1]} : vector<72x128xbf16> to vector<8x128xbf16>
    %258 = tpu.concatenate %256, %257 in 1 : vector<8x128xbf16>, vector<8x128xbf16> -> vector<8x256xbf16>
    %c1_152 = arith.constant 1 : index
    %c4_153 = arith.constant 4 : index
    %c0_154 = arith.constant 0 : index
    %c0_155 = arith.constant 0 : index
    %259 = vector.load %arg3[%c1_152, %c4_153, %c0_154, %c0_155] : memref<2x31x256x128xbf16, #tpu.memory_space<vmem>>, vector<1x1x256x128xbf16>
    %260 = vector.shape_cast %259 : vector<1x1x256x128xbf16> to vector<256x128xbf16>
    %cst_156 = arith.constant dense<0.000000e+00> : vector<8x128xf32>
    %261 = tpu.matmul %258, %260, %cst_156 {dimension_numbers = #tpu.dot_dimension_numbers<[1], [0], [0], [1], [0, 0, 1, 1], [], []>} : vector<8x256xbf16>, vector<256x128xbf16>, vector<8x128xf32> -> vector<8x128xf32>
    %262 = arith.addf %255, %261 : vector<8x128xf32>
    %263 = vector.extract_strided_slice %227 {offsets = [10, 0], sizes = [8, 128], strides = [1, 1]} : vector<72x128xbf16> to vector<8x128xbf16>
    %264 = vector.extract_strided_slice %227 {offsets = [11, 0], sizes = [8, 128], strides = [1, 1]} : vector<72x128xbf16> to vector<8x128xbf16>
    %265 = tpu.concatenate %263, %264 in 1 : vector<8x128xbf16>, vector<8x128xbf16> -> vector<8x256xbf16>
    %c1_157 = arith.constant 1 : index
    %c5_158 = arith.constant 5 : index
    %c0_159 = arith.constant 0 : index
    %c0_160 = arith.constant 0 : index
    %266 = vector.load %arg3[%c1_157, %c5_158, %c0_159, %c0_160] : memref<2x31x256x128xbf16, #tpu.memory_space<vmem>>, vector<1x1x256x128xbf16>
    %267 = vector.shape_cast %266 : vector<1x1x256x128xbf16> to vector<256x128xbf16>
    %cst_161 = arith.constant dense<0.000000e+00> : vector<8x128xf32>
    %268 = tpu.matmul %265, %267, %cst_161 {dimension_numbers = #tpu.dot_dimension_numbers<[1], [0], [0], [1], [0, 0, 1, 1], [], []>} : vector<8x256xbf16>, vector<256x128xbf16>, vector<8x128xf32> -> vector<8x128xf32>
    %269 = arith.addf %262, %268 : vector<8x128xf32>
    %270 = vector.extract_strided_slice %227 {offsets = [12, 0], sizes = [8, 128], strides = [1, 1]} : vector<72x128xbf16> to vector<8x128xbf16>
    %271 = vector.extract_strided_slice %227 {offsets = [13, 0], sizes = [8, 128], strides = [1, 1]} : vector<72x128xbf16> to vector<8x128xbf16>
    %272 = tpu.concatenate %270, %271 in 1 : vector<8x128xbf16>, vector<8x128xbf16> -> vector<8x256xbf16>
    %c1_162 = arith.constant 1 : index
    %c6_163 = arith.constant 6 : index
    %c0_164 = arith.constant 0 : index
    %c0_165 = arith.constant 0 : index
    %273 = vector.load %arg3[%c1_162, %c6_163, %c0_164, %c0_165] : memref<2x31x256x128xbf16, #tpu.memory_space<vmem>>, vector<1x1x256x128xbf16>
    %274 = vector.shape_cast %273 : vector<1x1x256x128xbf16> to vector<256x128xbf16>
    %cst_166 = arith.constant dense<0.000000e+00> : vector<8x128xf32>
    %275 = tpu.matmul %272, %274, %cst_166 {dimension_numbers = #tpu.dot_dimension_numbers<[1], [0], [0], [1], [0, 0, 1, 1], [], []>} : vector<8x256xbf16>, vector<256x128xbf16>, vector<8x128xf32> -> vector<8x128xf32>
    %276 = arith.addf %269, %275 : vector<8x128xf32>
    %277 = vector.extract_strided_slice %227 {offsets = [14, 0], sizes = [8, 128], strides = [1, 1]} : vector<72x128xbf16> to vector<8x128xbf16>
    %278 = vector.extract_strided_slice %227 {offsets = [15, 0], sizes = [8, 128], strides = [1, 1]} : vector<72x128xbf16> to vector<8x128xbf16>
    %279 = tpu.concatenate %277, %278 in 1 : vector<8x128xbf16>, vector<8x128xbf16> -> vector<8x256xbf16>
    %c1_167 = arith.constant 1 : index
    %c7_168 = arith.constant 7 : index
    %c0_169 = arith.constant 0 : index
    %c0_170 = arith.constant 0 : index
    %280 = vector.load %arg3[%c1_167, %c7_168, %c0_169, %c0_170] : memref<2x31x256x128xbf16, #tpu.memory_space<vmem>>, vector<1x1x256x128xbf16>
    %281 = vector.shape_cast %280 : vector<1x1x256x128xbf16> to vector<256x128xbf16>
    %cst_171 = arith.constant dense<0.000000e+00> : vector<8x128xf32>
    %282 = tpu.matmul %279, %281, %cst_171 {dimension_numbers = #tpu.dot_dimension_numbers<[1], [0], [0], [1], [0, 0, 1, 1], [], []>} : vector<8x256xbf16>, vector<256x128xbf16>, vector<8x128xf32> -> vector<8x128xf32>
    %283 = arith.addf %276, %282 : vector<8x128xf32>
    %284 = vector.extract_strided_slice %227 {offsets = [16, 0], sizes = [8, 128], strides = [1, 1]} : vector<72x128xbf16> to vector<8x128xbf16>
    %285 = vector.extract_strided_slice %227 {offsets = [17, 0], sizes = [8, 128], strides = [1, 1]} : vector<72x128xbf16> to vector<8x128xbf16>
    %286 = tpu.concatenate %284, %285 in 1 : vector<8x128xbf16>, vector<8x128xbf16> -> vector<8x256xbf16>
    %c1_172 = arith.constant 1 : index
    %c8_173 = arith.constant 8 : index
    %c0_174 = arith.constant 0 : index
    %c0_175 = arith.constant 0 : index
    %287 = vector.load %arg3[%c1_172, %c8_173, %c0_174, %c0_175] : memref<2x31x256x128xbf16, #tpu.memory_space<vmem>>, vector<1x1x256x128xbf16>
    %288 = vector.shape_cast %287 : vector<1x1x256x128xbf16> to vector<256x128xbf16>
    %cst_176 = arith.constant dense<0.000000e+00> : vector<8x128xf32>
    %289 = tpu.matmul %286, %288, %cst_176 {dimension_numbers = #tpu.dot_dimension_numbers<[1], [0], [0], [1], [0, 0, 1, 1], [], []>} : vector<8x256xbf16>, vector<256x128xbf16>, vector<8x128xf32> -> vector<8x128xf32>
    %290 = arith.addf %283, %289 : vector<8x128xf32>
    %291 = vector.extract_strided_slice %227 {offsets = [18, 0], sizes = [8, 128], strides = [1, 1]} : vector<72x128xbf16> to vector<8x128xbf16>
    %292 = vector.extract_strided_slice %227 {offsets = [19, 0], sizes = [8, 128], strides = [1, 1]} : vector<72x128xbf16> to vector<8x128xbf16>
    %293 = tpu.concatenate %291, %292 in 1 : vector<8x128xbf16>, vector<8x128xbf16> -> vector<8x256xbf16>
    %c1_177 = arith.constant 1 : index
    %c9_178 = arith.constant 9 : index
    %c0_179 = arith.constant 0 : index
    %c0_180 = arith.constant 0 : index
    %294 = vector.load %arg3[%c1_177, %c9_178, %c0_179, %c0_180] : memref<2x31x256x128xbf16, #tpu.memory_space<vmem>>, vector<1x1x256x128xbf16>
    %295 = vector.shape_cast %294 : vector<1x1x256x128xbf16> to vector<256x128xbf16>
    %cst_181 = arith.constant dense<0.000000e+00> : vector<8x128xf32>
    %296 = tpu.matmul %293, %295, %cst_181 {dimension_numbers = #tpu.dot_dimension_numbers<[1], [0], [0], [1], [0, 0, 1, 1], [], []>} : vector<8x256xbf16>, vector<256x128xbf16>, vector<8x128xf32> -> vector<8x128xf32>
    %297 = arith.addf %290, %296 : vector<8x128xf32>
    %298 = vector.extract_strided_slice %227 {offsets = [20, 0], sizes = [8, 128], strides = [1, 1]} : vector<72x128xbf16> to vector<8x128xbf16>
    %299 = vector.extract_strided_slice %227 {offsets = [21, 0], sizes = [8, 128], strides = [1, 1]} : vector<72x128xbf16> to vector<8x128xbf16>
    %300 = tpu.concatenate %298, %299 in 1 : vector<8x128xbf16>, vector<8x128xbf16> -> vector<8x256xbf16>
    %c1_182 = arith.constant 1 : index
    %c10_183 = arith.constant 10 : index
    %c0_184 = arith.constant 0 : index
    %c0_185 = arith.constant 0 : index
    %301 = vector.load %arg3[%c1_182, %c10_183, %c0_184, %c0_185] : memref<2x31x256x128xbf16, #tpu.memory_space<vmem>>, vector<1x1x256x128xbf16>
    %302 = vector.shape_cast %301 : vector<1x1x256x128xbf16> to vector<256x128xbf16>
    %cst_186 = arith.constant dense<0.000000e+00> : vector<8x128xf32>
    %303 = tpu.matmul %300, %302, %cst_186 {dimension_numbers = #tpu.dot_dimension_numbers<[1], [0], [0], [1], [0, 0, 1, 1], [], []>} : vector<8x256xbf16>, vector<256x128xbf16>, vector<8x128xf32> -> vector<8x128xf32>
    %304 = arith.addf %297, %303 : vector<8x128xf32>
    %305 = vector.extract_strided_slice %227 {offsets = [22, 0], sizes = [8, 128], strides = [1, 1]} : vector<72x128xbf16> to vector<8x128xbf16>
    %306 = vector.extract_strided_slice %227 {offsets = [23, 0], sizes = [8, 128], strides = [1, 1]} : vector<72x128xbf16> to vector<8x128xbf16>
    %307 = tpu.concatenate %305, %306 in 1 : vector<8x128xbf16>, vector<8x128xbf16> -> vector<8x256xbf16>
    %c1_187 = arith.constant 1 : index
    %c11_188 = arith.constant 11 : index
    %c0_189 = arith.constant 0 : index
    %c0_190 = arith.constant 0 : index
    %308 = vector.load %arg3[%c1_187, %c11_188, %c0_189, %c0_190] : memref<2x31x256x128xbf16, #tpu.memory_space<vmem>>, vector<1x1x256x128xbf16>
    %309 = vector.shape_cast %308 : vector<1x1x256x128xbf16> to vector<256x128xbf16>
    %cst_191 = arith.constant dense<0.000000e+00> : vector<8x128xf32>
    %310 = tpu.matmul %307, %309, %cst_191 {dimension_numbers = #tpu.dot_dimension_numbers<[1], [0], [0], [1], [0, 0, 1, 1], [], []>} : vector<8x256xbf16>, vector<256x128xbf16>, vector<8x128xf32> -> vector<8x128xf32>
    %311 = arith.addf %304, %310 : vector<8x128xf32>
    %312 = vector.extract_strided_slice %227 {offsets = [24, 0], sizes = [8, 128], strides = [1, 1]} : vector<72x128xbf16> to vector<8x128xbf16>
    %313 = vector.extract_strided_slice %227 {offsets = [25, 0], sizes = [8, 128], strides = [1, 1]} : vector<72x128xbf16> to vector<8x128xbf16>
    %314 = tpu.concatenate %312, %313 in 1 : vector<8x128xbf16>, vector<8x128xbf16> -> vector<8x256xbf16>
    %c1_192 = arith.constant 1 : index
    %c12_193 = arith.constant 12 : index
    %c0_194 = arith.constant 0 : index
    %c0_195 = arith.constant 0 : index
    %315 = vector.load %arg3[%c1_192, %c12_193, %c0_194, %c0_195] : memref<2x31x256x128xbf16, #tpu.memory_space<vmem>>, vector<1x1x256x128xbf16>
    %316 = vector.shape_cast %315 : vector<1x1x256x128xbf16> to vector<256x128xbf16>
    %cst_196 = arith.constant dense<0.000000e+00> : vector<8x128xf32>
    %317 = tpu.matmul %314, %316, %cst_196 {dimension_numbers = #tpu.dot_dimension_numbers<[1], [0], [0], [1], [0, 0, 1, 1], [], []>} : vector<8x256xbf16>, vector<256x128xbf16>, vector<8x128xf32> -> vector<8x128xf32>
    %318 = arith.addf %311, %317 : vector<8x128xf32>
    %319 = vector.extract_strided_slice %227 {offsets = [26, 0], sizes = [8, 128], strides = [1, 1]} : vector<72x128xbf16> to vector<8x128xbf16>
    %320 = vector.extract_strided_slice %227 {offsets = [27, 0], sizes = [8, 128], strides = [1, 1]} : vector<72x128xbf16> to vector<8x128xbf16>
    %321 = tpu.concatenate %319, %320 in 1 : vector<8x128xbf16>, vector<8x128xbf16> -> vector<8x256xbf16>
    %c1_197 = arith.constant 1 : index
    %c13_198 = arith.constant 13 : index
    %c0_199 = arith.constant 0 : index
    %c0_200 = arith.constant 0 : index
    %322 = vector.load %arg3[%c1_197, %c13_198, %c0_199, %c0_200] : memref<2x31x256x128xbf16, #tpu.memory_space<vmem>>, vector<1x1x256x128xbf16>
    %323 = vector.shape_cast %322 : vector<1x1x256x128xbf16> to vector<256x128xbf16>
    %cst_201 = arith.constant dense<0.000000e+00> : vector<8x128xf32>
    %324 = tpu.matmul %321, %323, %cst_201 {dimension_numbers = #tpu.dot_dimension_numbers<[1], [0], [0], [1], [0, 0, 1, 1], [], []>} : vector<8x256xbf16>, vector<256x128xbf16>, vector<8x128xf32> -> vector<8x128xf32>
    %325 = arith.addf %318, %324 : vector<8x128xf32>
    %326 = vector.extract_strided_slice %227 {offsets = [28, 0], sizes = [8, 128], strides = [1, 1]} : vector<72x128xbf16> to vector<8x128xbf16>
    %327 = vector.extract_strided_slice %227 {offsets = [29, 0], sizes = [8, 128], strides = [1, 1]} : vector<72x128xbf16> to vector<8x128xbf16>
    %328 = tpu.concatenate %326, %327 in 1 : vector<8x128xbf16>, vector<8x128xbf16> -> vector<8x256xbf16>
    %c1_202 = arith.constant 1 : index
    %c14_203 = arith.constant 14 : index
    %c0_204 = arith.constant 0 : index
    %c0_205 = arith.constant 0 : index
    %329 = vector.load %arg3[%c1_202, %c14_203, %c0_204, %c0_205] : memref<2x31x256x128xbf16, #tpu.memory_space<vmem>>, vector<1x1x256x128xbf16>
    %330 = vector.shape_cast %329 : vector<1x1x256x128xbf16> to vector<256x128xbf16>
    %cst_206 = arith.constant dense<0.000000e+00> : vector<8x128xf32>
    %331 = tpu.matmul %328, %330, %cst_206 {dimension_numbers = #tpu.dot_dimension_numbers<[1], [0], [0], [1], [0, 0, 1, 1], [], []>} : vector<8x256xbf16>, vector<256x128xbf16>, vector<8x128xf32> -> vector<8x128xf32>
    %332 = arith.addf %325, %331 : vector<8x128xf32>
    %333 = vector.extract_strided_slice %227 {offsets = [30, 0], sizes = [8, 128], strides = [1, 1]} : vector<72x128xbf16> to vector<8x128xbf16>
    %334 = vector.extract_strided_slice %227 {offsets = [31, 0], sizes = [8, 128], strides = [1, 1]} : vector<72x128xbf16> to vector<8x128xbf16>
    %335 = tpu.concatenate %333, %334 in 1 : vector<8x128xbf16>, vector<8x128xbf16> -> vector<8x256xbf16>
    %c1_207 = arith.constant 1 : index
    %c15_208 = arith.constant 15 : index
    %c0_209 = arith.constant 0 : index
    %c0_210 = arith.constant 0 : index
    %336 = vector.load %arg3[%c1_207, %c15_208, %c0_209, %c0_210] : memref<2x31x256x128xbf16, #tpu.memory_space<vmem>>, vector<1x1x256x128xbf16>
    %337 = vector.shape_cast %336 : vector<1x1x256x128xbf16> to vector<256x128xbf16>
    %cst_211 = arith.constant dense<0.000000e+00> : vector<8x128xf32>
    %338 = tpu.matmul %335, %337, %cst_211 {dimension_numbers = #tpu.dot_dimension_numbers<[1], [0], [0], [1], [0, 0, 1, 1], [], []>} : vector<8x256xbf16>, vector<256x128xbf16>, vector<8x128xf32> -> vector<8x128xf32>
    %339 = arith.addf %332, %338 : vector<8x128xf32>
    %340 = vector.extract_strided_slice %227 {offsets = [32, 0], sizes = [8, 128], strides = [1, 1]} : vector<72x128xbf16> to vector<8x128xbf16>
    %341 = vector.extract_strided_slice %227 {offsets = [33, 0], sizes = [8, 128], strides = [1, 1]} : vector<72x128xbf16> to vector<8x128xbf16>
    %342 = tpu.concatenate %340, %341 in 1 : vector<8x128xbf16>, vector<8x128xbf16> -> vector<8x256xbf16>
    %c1_212 = arith.constant 1 : index
    %c16_213 = arith.constant 16 : index
    %c0_214 = arith.constant 0 : index
    %c0_215 = arith.constant 0 : index
    %343 = vector.load %arg3[%c1_212, %c16_213, %c0_214, %c0_215] : memref<2x31x256x128xbf16, #tpu.memory_space<vmem>>, vector<1x1x256x128xbf16>
    %344 = vector.shape_cast %343 : vector<1x1x256x128xbf16> to vector<256x128xbf16>
    %cst_216 = arith.constant dense<0.000000e+00> : vector<8x128xf32>
    %345 = tpu.matmul %342, %344, %cst_216 {dimension_numbers = #tpu.dot_dimension_numbers<[1], [0], [0], [1], [0, 0, 1, 1], [], []>} : vector<8x256xbf16>, vector<256x128xbf16>, vector<8x128xf32> -> vector<8x128xf32>
    %346 = arith.addf %339, %345 : vector<8x128xf32>
    %347 = vector.extract_strided_slice %227 {offsets = [34, 0], sizes = [8, 128], strides = [1, 1]} : vector<72x128xbf16> to vector<8x128xbf16>
    %348 = vector.extract_strided_slice %227 {offsets = [35, 0], sizes = [8, 128], strides = [1, 1]} : vector<72x128xbf16> to vector<8x128xbf16>
    %349 = tpu.concatenate %347, %348 in 1 : vector<8x128xbf16>, vector<8x128xbf16> -> vector<8x256xbf16>
    %c1_217 = arith.constant 1 : index
    %c17_218 = arith.constant 17 : index
    %c0_219 = arith.constant 0 : index
    %c0_220 = arith.constant 0 : index
    %350 = vector.load %arg3[%c1_217, %c17_218, %c0_219, %c0_220] : memref<2x31x256x128xbf16, #tpu.memory_space<vmem>>, vector<1x1x256x128xbf16>
    %351 = vector.shape_cast %350 : vector<1x1x256x128xbf16> to vector<256x128xbf16>
    %cst_221 = arith.constant dense<0.000000e+00> : vector<8x128xf32>
    %352 = tpu.matmul %349, %351, %cst_221 {dimension_numbers = #tpu.dot_dimension_numbers<[1], [0], [0], [1], [0, 0, 1, 1], [], []>} : vector<8x256xbf16>, vector<256x128xbf16>, vector<8x128xf32> -> vector<8x128xf32>
    %353 = arith.addf %346, %352 : vector<8x128xf32>
    %354 = vector.extract_strided_slice %227 {offsets = [36, 0], sizes = [8, 128], strides = [1, 1]} : vector<72x128xbf16> to vector<8x128xbf16>
    %355 = vector.extract_strided_slice %227 {offsets = [37, 0], sizes = [8, 128], strides = [1, 1]} : vector<72x128xbf16> to vector<8x128xbf16>
    %356 = tpu.concatenate %354, %355 in 1 : vector<8x128xbf16>, vector<8x128xbf16> -> vector<8x256xbf16>
    %c1_222 = arith.constant 1 : index
    %c18_223 = arith.constant 18 : index
    %c0_224 = arith.constant 0 : index
    %c0_225 = arith.constant 0 : index
    %357 = vector.load %arg3[%c1_222, %c18_223, %c0_224, %c0_225] : memref<2x31x256x128xbf16, #tpu.memory_space<vmem>>, vector<1x1x256x128xbf16>
    %358 = vector.shape_cast %357 : vector<1x1x256x128xbf16> to vector<256x128xbf16>
    %cst_226 = arith.constant dense<0.000000e+00> : vector<8x128xf32>
    %359 = tpu.matmul %356, %358, %cst_226 {dimension_numbers = #tpu.dot_dimension_numbers<[1], [0], [0], [1], [0, 0, 1, 1], [], []>} : vector<8x256xbf16>, vector<256x128xbf16>, vector<8x128xf32> -> vector<8x128xf32>
    %360 = arith.addf %353, %359 : vector<8x128xf32>
    %361 = vector.extract_strided_slice %227 {offsets = [38, 0], sizes = [8, 128], strides = [1, 1]} : vector<72x128xbf16> to vector<8x128xbf16>
    %362 = vector.extract_strided_slice %227 {offsets = [39, 0], sizes = [8, 128], strides = [1, 1]} : vector<72x128xbf16> to vector<8x128xbf16>
    %363 = tpu.concatenate %361, %362 in 1 : vector<8x128xbf16>, vector<8x128xbf16> -> vector<8x256xbf16>
    %c1_227 = arith.constant 1 : index
    %c19_228 = arith.constant 19 : index
    %c0_229 = arith.constant 0 : index
    %c0_230 = arith.constant 0 : index
    %364 = vector.load %arg3[%c1_227, %c19_228, %c0_229, %c0_230] : memref<2x31x256x128xbf16, #tpu.memory_space<vmem>>, vector<1x1x256x128xbf16>
    %365 = vector.shape_cast %364 : vector<1x1x256x128xbf16> to vector<256x128xbf16>
    %cst_231 = arith.constant dense<0.000000e+00> : vector<8x128xf32>
    %366 = tpu.matmul %363, %365, %cst_231 {dimension_numbers = #tpu.dot_dimension_numbers<[1], [0], [0], [1], [0, 0, 1, 1], [], []>} : vector<8x256xbf16>, vector<256x128xbf16>, vector<8x128xf32> -> vector<8x128xf32>
    %367 = arith.addf %360, %366 : vector<8x128xf32>
    %368 = vector.extract_strided_slice %227 {offsets = [40, 0], sizes = [8, 128], strides = [1, 1]} : vector<72x128xbf16> to vector<8x128xbf16>
    %369 = vector.extract_strided_slice %227 {offsets = [41, 0], sizes = [8, 128], strides = [1, 1]} : vector<72x128xbf16> to vector<8x128xbf16>
    %370 = tpu.concatenate %368, %369 in 1 : vector<8x128xbf16>, vector<8x128xbf16> -> vector<8x256xbf16>
    %c1_232 = arith.constant 1 : index
    %c20_233 = arith.constant 20 : index
    %c0_234 = arith.constant 0 : index
    %c0_235 = arith.constant 0 : index
    %371 = vector.load %arg3[%c1_232, %c20_233, %c0_234, %c0_235] : memref<2x31x256x128xbf16, #tpu.memory_space<vmem>>, vector<1x1x256x128xbf16>
    %372 = vector.shape_cast %371 : vector<1x1x256x128xbf16> to vector<256x128xbf16>
    %cst_236 = arith.constant dense<0.000000e+00> : vector<8x128xf32>
    %373 = tpu.matmul %370, %372, %cst_236 {dimension_numbers = #tpu.dot_dimension_numbers<[1], [0], [0], [1], [0, 0, 1, 1], [], []>} : vector<8x256xbf16>, vector<256x128xbf16>, vector<8x128xf32> -> vector<8x128xf32>
    %374 = arith.addf %367, %373 : vector<8x128xf32>
    %375 = vector.extract_strided_slice %227 {offsets = [42, 0], sizes = [8, 128], strides = [1, 1]} : vector<72x128xbf16> to vector<8x128xbf16>
    %376 = vector.extract_strided_slice %227 {offsets = [43, 0], sizes = [8, 128], strides = [1, 1]} : vector<72x128xbf16> to vector<8x128xbf16>
    %377 = tpu.concatenate %375, %376 in 1 : vector<8x128xbf16>, vector<8x128xbf16> -> vector<8x256xbf16>
    %c1_237 = arith.constant 1 : index
    %c21_238 = arith.constant 21 : index
    %c0_239 = arith.constant 0 : index
    %c0_240 = arith.constant 0 : index
    %378 = vector.load %arg3[%c1_237, %c21_238, %c0_239, %c0_240] : memref<2x31x256x128xbf16, #tpu.memory_space<vmem>>, vector<1x1x256x128xbf16>
    %379 = vector.shape_cast %378 : vector<1x1x256x128xbf16> to vector<256x128xbf16>
    %cst_241 = arith.constant dense<0.000000e+00> : vector<8x128xf32>
    %380 = tpu.matmul %377, %379, %cst_241 {dimension_numbers = #tpu.dot_dimension_numbers<[1], [0], [0], [1], [0, 0, 1, 1], [], []>} : vector<8x256xbf16>, vector<256x128xbf16>, vector<8x128xf32> -> vector<8x128xf32>
    %381 = arith.addf %374, %380 : vector<8x128xf32>
    %382 = vector.extract_strided_slice %227 {offsets = [44, 0], sizes = [8, 128], strides = [1, 1]} : vector<72x128xbf16> to vector<8x128xbf16>
    %383 = vector.extract_strided_slice %227 {offsets = [45, 0], sizes = [8, 128], strides = [1, 1]} : vector<72x128xbf16> to vector<8x128xbf16>
    %384 = tpu.concatenate %382, %383 in 1 : vector<8x128xbf16>, vector<8x128xbf16> -> vector<8x256xbf16>
    %c1_242 = arith.constant 1 : index
    %c22_243 = arith.constant 22 : index
    %c0_244 = arith.constant 0 : index
    %c0_245 = arith.constant 0 : index
    %385 = vector.load %arg3[%c1_242, %c22_243, %c0_244, %c0_245] : memref<2x31x256x128xbf16, #tpu.memory_space<vmem>>, vector<1x1x256x128xbf16>
    %386 = vector.shape_cast %385 : vector<1x1x256x128xbf16> to vector<256x128xbf16>
    %cst_246 = arith.constant dense<0.000000e+00> : vector<8x128xf32>
    %387 = tpu.matmul %384, %386, %cst_246 {dimension_numbers = #tpu.dot_dimension_numbers<[1], [0], [0], [1], [0, 0, 1, 1], [], []>} : vector<8x256xbf16>, vector<256x128xbf16>, vector<8x128xf32> -> vector<8x128xf32>
    %388 = arith.addf %381, %387 : vector<8x128xf32>
    %389 = vector.extract_strided_slice %227 {offsets = [46, 0], sizes = [8, 128], strides = [1, 1]} : vector<72x128xbf16> to vector<8x128xbf16>
    %390 = vector.extract_strided_slice %227 {offsets = [47, 0], sizes = [8, 128], strides = [1, 1]} : vector<72x128xbf16> to vector<8x128xbf16>
    %391 = tpu.concatenate %389, %390 in 1 : vector<8x128xbf16>, vector<8x128xbf16> -> vector<8x256xbf16>
    %c1_247 = arith.constant 1 : index
    %c23_248 = arith.constant 23 : index
    %c0_249 = arith.constant 0 : index
    %c0_250 = arith.constant 0 : index
    %392 = vector.load %arg3[%c1_247, %c23_248, %c0_249, %c0_250] : memref<2x31x256x128xbf16, #tpu.memory_space<vmem>>, vector<1x1x256x128xbf16>
    %393 = vector.shape_cast %392 : vector<1x1x256x128xbf16> to vector<256x128xbf16>
    %cst_251 = arith.constant dense<0.000000e+00> : vector<8x128xf32>
    %394 = tpu.matmul %391, %393, %cst_251 {dimension_numbers = #tpu.dot_dimension_numbers<[1], [0], [0], [1], [0, 0, 1, 1], [], []>} : vector<8x256xbf16>, vector<256x128xbf16>, vector<8x128xf32> -> vector<8x128xf32>
    %395 = arith.addf %388, %394 : vector<8x128xf32>
    %396 = vector.extract_strided_slice %227 {offsets = [48, 0], sizes = [8, 128], strides = [1, 1]} : vector<72x128xbf16> to vector<8x128xbf16>
    %397 = vector.extract_strided_slice %227 {offsets = [49, 0], sizes = [8, 128], strides = [1, 1]} : vector<72x128xbf16> to vector<8x128xbf16>
    %398 = tpu.concatenate %396, %397 in 1 : vector<8x128xbf16>, vector<8x128xbf16> -> vector<8x256xbf16>
    %c1_252 = arith.constant 1 : index
    %c24_253 = arith.constant 24 : index
    %c0_254 = arith.constant 0 : index
    %c0_255 = arith.constant 0 : index
    %399 = vector.load %arg3[%c1_252, %c24_253, %c0_254, %c0_255] : memref<2x31x256x128xbf16, #tpu.memory_space<vmem>>, vector<1x1x256x128xbf16>
    %400 = vector.shape_cast %399 : vector<1x1x256x128xbf16> to vector<256x128xbf16>
    %cst_256 = arith.constant dense<0.000000e+00> : vector<8x128xf32>
    %401 = tpu.matmul %398, %400, %cst_256 {dimension_numbers = #tpu.dot_dimension_numbers<[1], [0], [0], [1], [0, 0, 1, 1], [], []>} : vector<8x256xbf16>, vector<256x128xbf16>, vector<8x128xf32> -> vector<8x128xf32>
    %402 = arith.addf %395, %401 : vector<8x128xf32>
    %403 = vector.extract_strided_slice %227 {offsets = [50, 0], sizes = [8, 128], strides = [1, 1]} : vector<72x128xbf16> to vector<8x128xbf16>
    %404 = vector.extract_strided_slice %227 {offsets = [51, 0], sizes = [8, 128], strides = [1, 1]} : vector<72x128xbf16> to vector<8x128xbf16>
    %405 = tpu.concatenate %403, %404 in 1 : vector<8x128xbf16>, vector<8x128xbf16> -> vector<8x256xbf16>
    %c1_257 = arith.constant 1 : index
    %c25_258 = arith.constant 25 : index
    %c0_259 = arith.constant 0 : index
    %c0_260 = arith.constant 0 : index
    %406 = vector.load %arg3[%c1_257, %c25_258, %c0_259, %c0_260] : memref<2x31x256x128xbf16, #tpu.memory_space<vmem>>, vector<1x1x256x128xbf16>
    %407 = vector.shape_cast %406 : vector<1x1x256x128xbf16> to vector<256x128xbf16>
    %cst_261 = arith.constant dense<0.000000e+00> : vector<8x128xf32>
    %408 = tpu.matmul %405, %407, %cst_261 {dimension_numbers = #tpu.dot_dimension_numbers<[1], [0], [0], [1], [0, 0, 1, 1], [], []>} : vector<8x256xbf16>, vector<256x128xbf16>, vector<8x128xf32> -> vector<8x128xf32>
    %409 = arith.addf %402, %408 : vector<8x128xf32>
    %410 = vector.extract_strided_slice %227 {offsets = [52, 0], sizes = [8, 128], strides = [1, 1]} : vector<72x128xbf16> to vector<8x128xbf16>
    %411 = vector.extract_strided_slice %227 {offsets = [53, 0], sizes = [8, 128], strides = [1, 1]} : vector<72x128xbf16> to vector<8x128xbf16>
    %412 = tpu.concatenate %410, %411 in 1 : vector<8x128xbf16>, vector<8x128xbf16> -> vector<8x256xbf16>
    %c1_262 = arith.constant 1 : index
    %c26_263 = arith.constant 26 : index
    %c0_264 = arith.constant 0 : index
    %c0_265 = arith.constant 0 : index
    %413 = vector.load %arg3[%c1_262, %c26_263, %c0_264, %c0_265] : memref<2x31x256x128xbf16, #tpu.memory_space<vmem>>, vector<1x1x256x128xbf16>
    %414 = vector.shape_cast %413 : vector<1x1x256x128xbf16> to vector<256x128xbf16>
    %cst_266 = arith.constant dense<0.000000e+00> : vector<8x128xf32>
    %415 = tpu.matmul %412, %414, %cst_266 {dimension_numbers = #tpu.dot_dimension_numbers<[1], [0], [0], [1], [0, 0, 1, 1], [], []>} : vector<8x256xbf16>, vector<256x128xbf16>, vector<8x128xf32> -> vector<8x128xf32>
    %416 = arith.addf %409, %415 : vector<8x128xf32>
    %417 = vector.extract_strided_slice %227 {offsets = [54, 0], sizes = [8, 128], strides = [1, 1]} : vector<72x128xbf16> to vector<8x128xbf16>
    %418 = vector.extract_strided_slice %227 {offsets = [55, 0], sizes = [8, 128], strides = [1, 1]} : vector<72x128xbf16> to vector<8x128xbf16>
    %419 = tpu.concatenate %417, %418 in 1 : vector<8x128xbf16>, vector<8x128xbf16> -> vector<8x256xbf16>
    %c1_267 = arith.constant 1 : index
    %c27_268 = arith.constant 27 : index
    %c0_269 = arith.constant 0 : index
    %c0_270 = arith.constant 0 : index
    %420 = vector.load %arg3[%c1_267, %c27_268, %c0_269, %c0_270] : memref<2x31x256x128xbf16, #tpu.memory_space<vmem>>, vector<1x1x256x128xbf16>
    %421 = vector.shape_cast %420 : vector<1x1x256x128xbf16> to vector<256x128xbf16>
    %cst_271 = arith.constant dense<0.000000e+00> : vector<8x128xf32>
    %422 = tpu.matmul %419, %421, %cst_271 {dimension_numbers = #tpu.dot_dimension_numbers<[1], [0], [0], [1], [0, 0, 1, 1], [], []>} : vector<8x256xbf16>, vector<256x128xbf16>, vector<8x128xf32> -> vector<8x128xf32>
    %423 = arith.addf %416, %422 : vector<8x128xf32>
    %424 = vector.extract_strided_slice %227 {offsets = [56, 0], sizes = [8, 128], strides = [1, 1]} : vector<72x128xbf16> to vector<8x128xbf16>
    %425 = vector.extract_strided_slice %227 {offsets = [57, 0], sizes = [8, 128], strides = [1, 1]} : vector<72x128xbf16> to vector<8x128xbf16>
    %426 = tpu.concatenate %424, %425 in 1 : vector<8x128xbf16>, vector<8x128xbf16> -> vector<8x256xbf16>
    %c1_272 = arith.constant 1 : index
    %c28_273 = arith.constant 28 : index
    %c0_274 = arith.constant 0 : index
    %c0_275 = arith.constant 0 : index
    %427 = vector.load %arg3[%c1_272, %c28_273, %c0_274, %c0_275] : memref<2x31x256x128xbf16, #tpu.memory_space<vmem>>, vector<1x1x256x128xbf16>
    %428 = vector.shape_cast %427 : vector<1x1x256x128xbf16> to vector<256x128xbf16>
    %cst_276 = arith.constant dense<0.000000e+00> : vector<8x128xf32>
    %429 = tpu.matmul %426, %428, %cst_276 {dimension_numbers = #tpu.dot_dimension_numbers<[1], [0], [0], [1], [0, 0, 1, 1], [], []>} : vector<8x256xbf16>, vector<256x128xbf16>, vector<8x128xf32> -> vector<8x128xf32>
    %430 = arith.addf %423, %429 : vector<8x128xf32>
    %431 = vector.extract_strided_slice %227 {offsets = [58, 0], sizes = [8, 128], strides = [1, 1]} : vector<72x128xbf16> to vector<8x128xbf16>
    %432 = vector.extract_strided_slice %227 {offsets = [59, 0], sizes = [8, 128], strides = [1, 1]} : vector<72x128xbf16> to vector<8x128xbf16>
    %433 = tpu.concatenate %431, %432 in 1 : vector<8x128xbf16>, vector<8x128xbf16> -> vector<8x256xbf16>
    %c1_277 = arith.constant 1 : index
    %c29_278 = arith.constant 29 : index
    %c0_279 = arith.constant 0 : index
    %c0_280 = arith.constant 0 : index
    %434 = vector.load %arg3[%c1_277, %c29_278, %c0_279, %c0_280] : memref<2x31x256x128xbf16, #tpu.memory_space<vmem>>, vector<1x1x256x128xbf16>
    %435 = vector.shape_cast %434 : vector<1x1x256x128xbf16> to vector<256x128xbf16>
    %cst_281 = arith.constant dense<0.000000e+00> : vector<8x128xf32>
    %436 = tpu.matmul %433, %435, %cst_281 {dimension_numbers = #tpu.dot_dimension_numbers<[1], [0], [0], [1], [0, 0, 1, 1], [], []>} : vector<8x256xbf16>, vector<256x128xbf16>, vector<8x128xf32> -> vector<8x128xf32>
    %437 = arith.addf %430, %436 : vector<8x128xf32>
    %438 = vector.extract_strided_slice %227 {offsets = [60, 0], sizes = [8, 128], strides = [1, 1]} : vector<72x128xbf16> to vector<8x128xbf16>
    %439 = vector.extract_strided_slice %227 {offsets = [61, 0], sizes = [8, 128], strides = [1, 1]} : vector<72x128xbf16> to vector<8x128xbf16>
    %440 = tpu.concatenate %438, %439 in 1 : vector<8x128xbf16>, vector<8x128xbf16> -> vector<8x256xbf16>
    %c1_282 = arith.constant 1 : index
    %c30_283 = arith.constant 30 : index
    %c0_284 = arith.constant 0 : index
    %c0_285 = arith.constant 0 : index
    %441 = vector.load %arg3[%c1_282, %c30_283, %c0_284, %c0_285] : memref<2x31x256x128xbf16, #tpu.memory_space<vmem>>, vector<1x1x256x128xbf16>
    %442 = vector.shape_cast %441 : vector<1x1x256x128xbf16> to vector<256x128xbf16>
    %cst_286 = arith.constant dense<0.000000e+00> : vector<8x128xf32>
    %443 = tpu.matmul %440, %442, %cst_286 {dimension_numbers = #tpu.dot_dimension_numbers<[1], [0], [0], [1], [0, 0, 1, 1], [], []>} : vector<8x256xbf16>, vector<256x128xbf16>, vector<8x128xf32> -> vector<8x128xf32>
    %444 = arith.addf %437, %443 : vector<8x128xf32>
    %c24_i32 = arith.constant 24 : i32
    %445 = arith.addi %2, %c24_i32 : i32
    %446 = tpu.assume_multiple %445, 8 : i32
    %c0_287 = arith.constant 0 : index
    %c0_288 = arith.constant 0 : index
    %447 = arith.index_cast %446 : i32 to index
    %c0_289 = arith.constant 0 : index
    %448 = vector.load %arg2[%c0_287, %c0_288, %447, %c0_289] : memref<1x2x80x128xbf16, #tpu.memory_space<vmem>>, vector<1x1x16x128xbf16>
    %449 = vector.shape_cast %448 : vector<1x1x16x128xbf16> to vector<16x128xbf16>
    %450 = vector.extract_strided_slice %449 {offsets = [6, 0], sizes = [8, 128], strides = [1, 1]} : vector<16x128xbf16> to vector<8x128xbf16>
    %c0_290 = arith.constant 0 : index
    %c0_291 = arith.constant 0 : index
    %451 = vector.load %arg5[%c0_290, %c0_291] : memref<128x128xbf16, #tpu.memory_space<vmem>>, vector<128x128xbf16>
    %cst_292 = arith.constant dense<0.000000e+00> : vector<8x128xf32>
    %452 = tpu.matmul %450, %451, %cst_292 {dimension_numbers = #tpu.dot_dimension_numbers<[1], [0], [0], [1], [0, 0, 1, 1], [], []>} : vector<8x128xbf16>, vector<128x128xbf16>, vector<8x128xf32> -> vector<8x128xf32>
    %453 = vector.broadcast %0 : vector<1x128xf32> to vector<8x128xf32>
    %454 = arith.addf %444, %453 : vector<8x128xf32>
    %455 = arith.addf %454, %452 : vector<8x128xf32>
    %cst_293 = arith.constant 0.000000e+00 : f32
    %456 = vector.broadcast %cst_293 : f32 to vector<8x128xf32>
    %457 = arith.maximumf %455, %456 : vector<8x128xf32>
    %458 = arith.truncf %457 : vector<8x128xf32> to vector<8x128xbf16>
    %c0_294 = arith.constant 0 : index
    %c0_295 = arith.constant 0 : index
    %c0_296 = arith.constant 0 : index
    %459 = vector.load %arg6[%c0_294, %c0_295, %c0_296] : memref<1x8x128xbf16, #tpu.memory_space<vmem>>, vector<1x8x128xbf16>
    %460 = vector.shape_cast %459 : vector<1x8x128xbf16> to vector<8x128xbf16>
    %461 = vector.shape_cast %458 : vector<8x128xbf16> to vector<1x8x128xbf16>
    tpu.vector_store %arg6[%c0_294, %c0_295, %c0_296], %461 {strides = array<i32>} : memref<1x8x128xbf16, #tpu.memory_space<vmem>>, vector<1x8x128xbf16>,
    return
  }
  func.func @transform_0(%arg0: i32, %arg1: i32) -> (i32, i32, i32, i32) {
    %c0_i32 = arith.constant 0 : i32
    %c0_i32_0 = arith.constant 0 : i32
    %c0_i32_1 = arith.constant 0 : i32
    %c0_i32_2 = arith.constant 0 : i32
    return %arg0, %c0_i32, %c0_i32_0, %c0_i32_1 : i32, i32, i32, i32
  }
  func.func @transform_1(%arg0: i32, %arg1: i32) -> (i32, i32, i32, i32) {
    %c0_i32 = arith.constant 0 : i32
    %c0_i32_0 = arith.constant 0 : i32
    %c0_i32_1 = arith.constant 0 : i32
    %c0_i32_2 = arith.constant 0 : i32
    %c0_i32_3 = arith.constant 0 : i32
    return %c0_i32, %c0_i32_0, %c0_i32_1, %c0_i32_2 : i32, i32, i32, i32
  }
  func.func @transform_2(%arg0: i32, %arg1: i32) -> (i32, i32) {
    %c0_i32 = arith.constant 0 : i32
    %c0_i32_0 = arith.constant 0 : i32
    %c0_i32_1 = arith.constant 0 : i32
    return %c0_i32, %c0_i32_0 : i32, i32
  }
  func.func @transform_3(%arg0: i32, %arg1: i32) -> (i32, i32) {
    %c0_i32 = arith.constant 0 : i32
    %c0_i32_0 = arith.constant 0 : i32
    %c0_i32_1 = arith.constant 0 : i32
    return %c0_i32, %c0_i32_0 : i32, i32
  }
  func.func @transform_4(%arg0: i32, %arg1: i32) -> (i32, i32, i32) {
    %c0_i32 = arith.constant 0 : i32
    %c0_i32_0 = arith.constant 0 : i32
    return %arg0, %arg1, %c0_i32 : i32, i32, i32
  }
}

</mosaic_0001>

<bundles_post_ra>
// kernel: tpu_custom_call.1
= control target key start
LH: loop header
LB: loop body
LE: loop exit
PB: predicated region body
PF: predicated region fallthrough
CT: control target
= control target key end

     0   :  { %s15758_s0 = inlined_call_operand.hbm [shape: bf16[2,2,80,128], index: 0, kind: input, shape index: {}]   ;;  %s15759_s1 = inlined_call_operand.hbm [shape: bf16[2,31,256,128], index: 1, kind: input, shape index: {}]   ;;  %s15760_s2 = inlined_call_operand.hbm [shape: f32[1,128], index: 2, kind: input, shape index: {}]   ;;  %s15761_s3 = inlined_call_operand.hbm [shape: bf16[128,128], index: 3, kind: input, shape index: {}]   ;;  %s15762_s4 = inlined_call_operand.hbm [shape: bf16[2,8,128], index: 4, kind: output, shape index: {}]  }
   0x1   :  { %15769 = sst [smem:[#allocation15_spill]] %s15759_s1 }
   0x2   :  { %15770 = sst [smem:[#allocation16_spill]] %s15760_s2 }
   0x3   :  { %9 = vsyncpa [#allocation3], 0 }
   0x4   :  { %11 = vsyncpa [#allocation3 + $0x1], 0 }
   0x5   :  { %12 = vsyncpa [#allocation6], 0 }
   0x6   :  { %13 = vsyncpa [#allocation9], 0 }
   0x7   :  { %14 = vsyncpa [#allocation4], 0 }
   0x8   :  { %16 = vsyncpa [#allocation4 + $0x1], 0  ;;  %s15246_s15 = smov 0   ;;  %s15248_s16 = smov 0  }
   0x9   :  { %s15250_s17 = smov 0   ;;  %s15252_s18 = smov 0  }
   0xa   :  { %s15254_s19 = smov 0   ;;  %s15256_s20 = smov 0  }
   0xb LB: > { %s11460_s21 = sadd.s32 4294967295, %s15210_s20   ;;  %s11461_s22 = sadd.s32 4294967294, %s15210_s20   ;;  %s15210_s20 = sphi %s15256_s20, %s22_s20   ;;  %s15206_s19 = sphi %s15254_s19, %s15792_s19   ;;  %s15202_s18 = sphi %s15252_s18, %s15791_s18   ;;  %s15198_s17 = sphi %s15250_s17, %s15790_s17   ;;  %s15194_s16 = sphi %s15248_s16, %s15789_s16   ;;  %s15190_s15 = sphi %s15246_s15, %s15788_s15  }
   0xc   : > { %p54_p0 = scmp.ne.s32.totalorder %s15194_s16, %s15190_s15  ;;  %p15280_p1 = scmp.eq.s32.totalorder %s11460_s21, 0 }
   0xd   : > { %p15284_p2 = scmp.eq.s32.totalorder %s11460_s21, 1  ;;  %p149_p3 = scmp.eq.s32.totalorder %s11461_s22, 1 }
   0xe   : > { %s15771_s23 = scalar_select %p15280_p1, 1, 0 }
   0xf   : > { %p15290_p4 = por %p15280_p1, %p54_p0  ;;  %p11462_p5 = scmp.ge.s32.totalorder %s15210_s20, 1 }
  0x10   : > { %p15295_p6 = por %p149_p3, %p54_p0  ;;  %p156_p7 = scmp.lt.s32.totalorder %s15210_s20, 3 }
  0x11   : > { %s15773_s25 = scalar_select %p15290_p4, 1, 0 }
  0x12   : > { %s15774_s26 = scalar_select %p15295_p6, 1, 0 }
  0x13   : > { %p15300_p8 = pnand %p11462_p5, %p156_p7  ;;  %s15212_s28 = smov [#allocation5]  }
  0x14   : > { %s168_s29 = sshll.u32 %s15212_s28, 4  ;;  %s15213_s5 = smov [#allocation7]   ;;  %s169_s29 = int_to_ptr.vmem [resolvable:$true] %s168_s29 }
  0x15   : > { %s15775_s27 = scalar_select %p15300_p8, 1, 0 }
  0x16   : > { %p13918_p9 = pneg %p15300_p8  ;;  %s182_s6 = sshll.u32 %s15213_s5, 4  ;;  %s183_s6 = int_to_ptr.vmem [resolvable:$true] %s182_s6 }
  0x17   : > { %s15214_s7 = smov [#allocation8]   ;;  %s15027_s9 = scalar_lea.vmem %s169_s29, 126976 }
  0x18   : > { %p15309_p11 = pnand %p13918_p9, %p15280_p1  ;;  %s192_s8 = sshll.u32 %s15214_s7, 4  ;;  %s193_s8 = int_to_ptr.vmem [resolvable:$true] %s192_s8 }
  0x19   : > { %p15028_p13 = scmp.ne.s32.totalorder %s169_s29, %s15027_s9  ;;  %p15035_p5 = scmp.lt.s32.totalorder %s169_s29, %s169_s29 }
  0x1a   : > { %p15018_p12 = pneg %p15309_p11  ;;  %p15036_p7 = scmp.lt.s32.totalorder %s15027_s9, %s15027_s9 }
  0x1c   : > { %p15030_p0 = pnand %p15028_p13, %p15018_p12  ;;  %p15037_p9 = por %p15036_p7, %p15035_p5 }
  0x1e   : > { %p15031_p3 = pneg %p15030_p0 }
  0x20   : > { %p15038_p10 = pnand %p15037_p9, %p15031_p3 }
  0x22   : > { %15041 = shalt.err (!%p15038_p10)
}
  0x23   : > { %s15767_s10 = smov 64   ;;  %s15768_s11 = smov 4  }
  0x24   : > { %s15777_s1 = sld [smem:[#allocation15_spill]]  ;;  %s15053_s14 = scalar_lea.vmem %s183_s6, 16 }
  0x25   : > { %p15054_p13 = scmp.ne.s32.totalorder %s183_s6, %s15053_s14  ;;  %s15060_s21 = scalar_lea.vmem %s183_s6, 32 }
  0x26   : > { %p15061_p10 = scmp.lt.s32.totalorder %s183_s6, %s183_s6  ;;  %p15062_p3 = scmp.lt.s32.totalorder %s15060_s21, %s15053_s14 }
  0x27   : > { %p15056_p0 = pnand %p15054_p13, %p15018_p12 }
  0x28   : > { %p15063_p7 = por %p15062_p3, %p15061_p10 }
  0x29   : > { %p15057_p5 = pneg %p15056_p0 }
  0x2a   : > { %13921 = dma.hbm_to_vmem [thread:$0]  (!%p15309_p11), %s15777_s1, 126976, %s169_s29, [#allocation6], %s15767_s10, %s15767_s10, %s15768_s11  }
  0x2b   : > { %p15064_p9 = pnand %p15063_p7, %p15057_p5 }
  0x2d   : > { %15067 = shalt.err (!%p15064_p9)
}
  0x2e   : > { %s15778_s2 = sld [smem:[#allocation16_spill]]  ;;  %s15079_s29 = scalar_lea.vmem %s193_s8, 1024 }
  0x2f   : > { %p15080_p6 = scmp.ne.s32.totalorder %s193_s8, %s15079_s29  ;;  %p15087_p1 = scmp.lt.s32.totalorder %s193_s8, %s193_s8 }
  0x30   : > { %p15088_p4 = scmp.lt.s32.totalorder %s15079_s29, %s15079_s29 }
  0x31   : > { %p15082_p13 = pnand %p15080_p6, %p15018_p12 }
  0x32   : > { %p15089_p8 = por %p15088_p4, %p15087_p1 }
  0x33   : > { %p15083_p0 = pneg %p15082_p13 }
  0x34   : > { %13924 = dma.hbm_to_vmem [thread:$0]  (!%p15309_p11), %s15778_s2, 16, %s183_s6, [#allocation6]  }
  0x35   : > { %p15090_p10 = pnand %p15089_p8, %p15083_p0 }
  0x37   : > { %15093 = shalt.err (!%p15090_p10)
}
  0x38   : > { %13927 = dma.hbm_to_vmem [thread:$0]  (!%p15309_p11), %s15761_s3, 1024, %s193_s8, [#allocation9], %s15767_s10, %s15767_s10, %s15768_s11  }
  0x39   : > { %s41_s6 = sadd.s32 1, %s15198_s17  ;;  %s34_s30 = sadd.s32 1, %s15206_s19 }
  0x3a   : > { %p48_p1 = scmp.ne.s32.totalorder %s15198_s17, %s15194_s16  ;;  %p36_p4 = scmp.ge.s32.totalorder %s34_s30, 2 }
  0x3b   : > { %p49_p6 = scmp.eq.s32.totalorder %s15210_s20, 0  ;;  %p13939_p12 = scmp.lt.s32.totalorder %s15210_s20, 2 }
  0x3c   : > { %p15352_p8 = por %p15284_p2, %p48_p1  ;;  %s15794_s30 = smov (%p36_p4, %s34_s30), 0 }
  0x3d   : > { %p50_p5 = por %p49_p6, %p48_p1  ;;  %s206_s12 = sand.u32 1, %s15198_s17  }
  0x3e   : > { %s38_s13 = ssub.s32 %s15206_s19, %s15794_s30  ;;  %s13899_s8 = smul.u32 80, %s206_s12 }
  0x3f   : > { %p39_p3 = scmp.eq.s32.totalorder %s38_s13, 0  ;;  %s13900_s14 = smul.u32 1280, %s15206_s19 }
  0x40   : > { %p15363_p11 = pnand %p13939_p12, %p50_p5  ;;  %s210_s5 = scalar_lea.vmem [#allocation2], %s13899_s8 }
  0x41   : > { %s15368_s24 = scalar_select %p39_p3, %s15198_s17, %s41_s6  }
  0x42   : > { %s216_s29 = scalar_lea.hbm %s15758_s0, %s13900_s14  ;;  %s217_s7 = sshll.u32 %s210_s5, 4  ;;  %s218_s7 = int_to_ptr.vmem [resolvable:$true] %s217_s7 }
  0x43   : > { %s207_s10 = scalar_lea.sflag [#allocation3], %s206_s12  ;;  %p15096_p2 = pneg %p15363_p11 }
  0x44   : > { %s15107_s13 = scalar_lea.vmem %s218_s7, 1280  ;;  %s15217_s11 = smov [#allocation2]  }
  0x45   : > { %p15108_p7 = scmp.ne.s32.totalorder %s218_s7, %s15107_s13  ;;  %s15112_s1 = sshll.u32 %s15217_s11, 4  ;;  %s15113_s1 = int_to_ptr.vmem [resolvable:$false] %s15112_s1 }
  0x46   : > { %s15114_s2 = scalar_lea.vmem %s15113_s1, 2560  ;;  %p15115_p0 = scmp.lt.s32.totalorder %s218_s7, %s15113_s1 }
  0x47   : > { %p15110_p9 = pnand %p15108_p7, %p15096_p2  ;;  %p15116_p10 = scmp.lt.s32.totalorder %s15114_s2, %s15107_s13 }
  0x49   : > { %p15111_p13 = pneg %p15110_p9  ;;  %p15117_p1 = por %p15116_p10, %p15115_p0 }
  0x4b   : > { %p15118_p4 = pnand %p15117_p1, %p15111_p13 }
  0x4d   : > { %15121 = shalt.err (!%p15118_p4)
}
  0x4e   : > { %s15781_s6 = smov 4   ;;  %s15782_s8 = smov 64  }
  0x4f   : > { %13931 = dma.hbm_to_vmem [thread:$0]  (!%p15363_p11), %s216_s29, 1280, %s218_s7, %s207_s10, %s15782_s8, %s15782_s8, %s15781_s6  }
  0x50   : > { %p15783_p6 = scmp.ne.s32.totalorder %s15775_s27, 0 }
  0x51   : > { %s15383_s12 = sand.u32 (!%p15783_p6), 1, %s15194_s16   ;;  %p15784_p12 = scmp.ne.s32.totalorder (!%p15783_p6), %s15773_s25, 0 }
  0x52   : > { %229 = sbr.rel (%p15783_p6) target bundleno = 1331 (0x533), region = 36  ;;  %s232_s2 = scalar_lea.sflag (!%p15783_p6), [#allocation3], %s15383_s12 }
  0x53   : > { %s13901_s1 = smul.u32 (!%p15783_p6), 80, %s15383_s12 }
  0x55   : > { %s15387_s11 = scalar_lea.vmem (!%p15783_p6), [#allocation2], %s13901_s1 }
  0x57   : > { %15173 = dma.done.wait (%p15784_p12), %s232_s2, 1280  }
  0x58   : > { %15175 = vsyncadd (%p15784_p12), %s232_s2, 4294966016  ;;  %p15785_p5 = scmp.ne.s32.totalorder %s15771_s23, 0 }
  0x5a   : > { %15177 = dma.done.wait (%p15785_p5), [#allocation6], 126992  }
  0x5b   : > { %15179 = vsyncadd (%p15785_p5), [#allocation6], 4294840304 }
  0x5c   : > { %15181 = dma.done.wait (%p15785_p5), [#allocation9], 1024  }
  0x5d   : > { %15183 = vsyncadd (%p15785_p5), [#allocation9], 4294966272  ;;  %v13999_v0 = vld [vmem:[#allocation5 + $0xf8] sm:$0xff]   ;;  %v14003_v4 = vld [vmem:[#allocation5 + $0xf0] sm:$0xff]   ;;  %vm15219_vm0 = vmmov 0   ;;  %s11472_s23 = sshll.u32 %s15383_s12, 2 }
  0x5e   : > { %v14000_v1 = vld [vmem:[#allocation5 + $0x78] sm:$0xff]   ;;  %12506 = vmatprep.subr.bf16.mxu0 %v13999_v0  ;;  %v14004_v5 = vld [vmem:[#allocation5 + $0x70] sm:$0xff]   ;;  %v14007_v8 = vld [vmem:[#allocation5 + $0xe8] sm:$0xff]   ;;  %s12503_s25 = sshll.u32 %s15202_s18, 6  ;;  %s271_s27 = scalar_lea.vmem [#allocation10], %s11472_s23 }
  0x5f   : > { %v14001_v2 = vld [vmem:[#allocation5 + $0xb8] sm:$0xff]   ;;  %12528 = vmatprep.subr.bf16.mxu1 %v14000_v1  ;;  %v14005_v6 = vld [vmem:[#allocation5 + $0xb0] sm:$0xff]   ;;  %v14008_v9 = vld [vmem:[#allocation5 + $0x68] sm:$0xff]   ;;  %s11345_s10 = sshll.u32 %s271_s27, 4  ;;  %s15716_s22 = scalar_lea.hbm %s15762_s4, %s12503_s25  ;;  %s11346_s10 = int_to_ptr.vmem [resolvable:$true] %s11345_s10 }
  0x60   : > { %v14002_v3 = vld [vmem:[#allocation5 + $0x38] sm:$0xff]   ;;  %12507 = vmatpush3.bf16.msra.mxu0 %v14001_v2  ;;  %v14006_v7 = vld [vmem:[#allocation5 + $0x30] sm:$0xff]   ;;  %v14009_v10 = vld [vmem:[#allocation5 + $0xa8] sm:$0xff]   ;;  %s11331_s28 = scalar_lea.sflag [#allocation4], %s15383_s12  ;;  %s15122_s29 = scalar_lea.vmem %s11346_s10, 64 }
  0x61   : > { %12529 = vmatpush3.bf16.msra.mxu1 %v14002_v3  ;;  %12508 = vmatprep.subr.bf16.mxu0 %v14003_v4  ;;  %v14010_v11 = vld [vmem:[#allocation5 + $0x28] sm:$0xff]   ;;  %v14011_v12 = vld [vmem:[#allocation5 + $0xe0] sm:$0xff]   ;;  %v14015_v16 = vld [vmem:[#allocation5 + $0xd8] sm:$0xff]   ;;  %p15123_p3 = scmp.ne.s32.totalorder %s11346_s10, %s15122_s29  ;;  %s15220_s18 = smov [#allocation10]  }
  0x62   : > { %12530 = vmatprep.subr.bf16.mxu1 %v14004_v5  ;;  %v14012_v13 = vld [vmem:[#allocation5 + $0x60] sm:$0xff]   ;;  %v14016_v17 = vld [vmem:[#allocation5 + $0x58] sm:$0xff]   ;;  %v14019_v20 = vld [vmem:[#allocation5 + $0xd0] sm:$0xff]   ;;  %s15126_s5 = sshll.u32 %s15220_s18, 4  ;;  %s15127_s5 = int_to_ptr.vmem [resolvable:$false] %s15126_s5 }
  0x63   : > { %v14013_v14 = vld [vmem:[#allocation5 + $0xa0] sm:$0xff]   ;;  %v14017_v18 = vld [vmem:[#allocation5 + $0x98] sm:$0xff]   ;;  %v14020_v21 = vld [vmem:[#allocation5 + $0x50] sm:$0xff]   ;;  %p15124_p11 = pnand %p15123_p3, %p15352_p8  ;;  %s15128_s7 = scalar_lea.vmem %s15127_s5, 128 }
  0x64   : > { %12509 = vmatpush3.bf16.msra.mxu0 %v14005_v6  ;;  %v14014_v15 = vld [vmem:[#allocation5 + $0x20] sm:$0xff]   ;;  %v14018_v19 = vld [vmem:[#allocation5 + $0x18] sm:$0xff]   ;;  %v14021_v22 = vld [vmem:[#allocation5 + $0x90] sm:$0xff]   ;;  %p15129_p7 = scmp.lt.s32.totalorder %s11346_s10, %s15127_s5  ;;  %p15130_p9 = scmp.lt.s32.totalorder %s15128_s7, %s15122_s29 }
  0x65   : > { %12531 = vmatpush3.bf16.msra.mxu1 %v14006_v7  ;;  %12510 = vmatprep.subr.bf16.mxu0 %v14007_v8  ;;  %v14022_v23 = vld [vmem:[#allocation5 + $0x10] sm:$0xff]   ;;  %v14023_v24 = vld [vmem:[#allocation5 + $0xc8] sm:$0xff]   ;;  %v14027_v28 = vld [vmem:[#allocation5 + $0xc0] sm:$0xff]   ;;  %p15125_p2 = pneg %p15124_p11 }
  0x66   : > { %12532 = vmatprep.subr.bf16.mxu1 %v14008_v9  ;;  %v14024_v25 = vld [vmem:[#allocation5 + $0x48] sm:$0xff]   ;;  %v14028_v29 = vld [vmem:[#allocation5 + $0x40] sm:$0xff]   ;;  %v14032_v35 = vld [vmem:[#allocation5 + $0x178] sm:$0xff]   ;;  %p15131_p13 = por %p15130_p9, %p15129_p7 }
  0x67   : > { %v14025_v26 = vld [vmem:[#allocation5 + $0x88] sm:$0xff]   ;;  %v14029_v30 = vld [vmem:[#allocation5 + $0x80] sm:$0xff]   ;;  %v14034_v38 = vld [vmem:[#allocation5 + $0x1f8] sm:$0xff]  }
  0x68   : > { %12511 = vmatpush3.bf16.msra.mxu0 %v14009_v10  ;;  %v14026_v27 = vld [vmem:[#allocation5 + $0x8] sm:$0xff]   ;;  %v14030_v31 = vld [vmem:[#allocation5] sm:$0xff]   ;;  %v14035_v41 = vld [vmem:[#allocation5 + $0x1b8] sm:$0xff]   ;;  %p15132_p0 = pnand %p15131_p13, %p15125_p2 }
  0x69   : > { %12533 = vmatpush3.bf16.msra.mxu1 %v14010_v11  ;;  %12512 = vmatprep.subr.bf16.mxu0 %v14011_v12  ;;  %v279_v32 = vld [vmem:[%s15387_s11] sm:$0xf]  ;;  %v15403_v33 = vld [vmem:[%s15387_s11 + $0x4] sm:$0xf]  ;;  %v14033_v45 = vld [vmem:[#allocation5 + $0x138] sm:$0xff]  }
  0x6a   : > { %12534 = vmatprep.subr.bf16.mxu1 %v14012_v13  ;;  %v15406_v34 = vcombine.low %v279_v32, %v15403_v33  ;;  %v14038_v43 = vld [vmem:[#allocation5 + $0x1f0] sm:$0xff]   ;;  %v14042_v50 = vld [vmem:[#allocation5 + $0x1e8] sm:$0xff]   ;;  %v14046_v54 = vld [vmem:[#allocation5 + $0x1e0] sm:$0xff]  }
  0x6b   : > { %v14036_v46 = vld [vmem:[#allocation5 + $0x170] sm:$0xff]   ;;  %v14040_v52 = vld [vmem:[#allocation5 + $0x168] sm:$0xff]   ;;  %v14044_v56 = vld [vmem:[#allocation5 + $0x160] sm:$0xff]  }
  0x6c   : > { %12513 = vmatpush3.bf16.msra.mxu0 %v14013_v14  ;;  %v294_v36 = vshrl.u32 %v15406_v34, 16  ;;  %v296_v37 = vshll.u32 %v15406_v34, 16  ;;  %v366_v42 = vrot.slane %v15406_v34, 1  ;;  %v14039_v48 = vld [vmem:[#allocation5 + $0x1b0] sm:$0xff]   ;;  %v14043_v53 = vld [vmem:[#allocation5 + $0x1a8] sm:$0xff]   ;;  %v14047_v57 = vld [vmem:[#allocation5 + $0x1a0] sm:$0xff]  }
  0x6d   : > { %12535 = vmatpush3.bf16.msra.mxu1 %v14014_v15  ;;  %12514 = vmatprep.subr.bf16.mxu0 %v14015_v16  ;;  %v14037_v51 = vld [vmem:[#allocation5 + $0x130] sm:$0xff]   ;;  %v14041_v55 = vld [vmem:[#allocation5 + $0x128] sm:$0xff]   ;;  %v14050_v58 = vld [vmem:[#allocation5 + $0x1d8] sm:$0xff]   ;;  %v849_v13 = vrot.slane %v15406_v34, 3  ;;  %v675_v15 = vrot.slane %v15406_v34, 2 }
  0x6e   : > { %12536 = vmatprep.subr.bf16.mxu1 %v14016_v17  ;;  %v298_v39 = vrot.slane %v296_v37, 1  ;;  %v14045_v59 = vld [vmem:[#allocation5 + $0x120] sm:$0xff]   ;;  %v14048_v60 = vld [vmem:[#allocation5 + $0x158] sm:$0xff]   ;;  %v14054_v62 = vld [vmem:[#allocation5 + $0x1d0] sm:$0xff]  }
  0x6f   : > { %v14051_v61 = vld [vmem:[#allocation5 + $0x198] sm:$0xff]   ;;  %v14052_v0 = vld [vmem:[#allocation5 + $0x150] sm:$0xff]   ;;  %v14058_v2 = vld [vmem:[#allocation5 + $0x1c8] sm:$0xff]  }
  0x70   : > { %12515 = vmatpush3.bf16.msra.mxu0 %v14017_v18  ;;  %v299_v40 = vor.u32 %v298_v39, %v294_v36  ;;  %v14049_v63 = vld [vmem:[#allocation5 + $0x118] sm:$0xff]   ;;  %v14055_v1 = vld [vmem:[#allocation5 + $0x190] sm:$0xff]   ;;  %v14056_v4 = vld [vmem:[#allocation5 + $0x148] sm:$0xff]  }
  0x71   : > { %12537 = vmatpush3.bf16.msra.mxu1 %v14018_v19  ;;  %12516 = vmatprep.subr.bf16.mxu0 %v14019_v20  ;;  %v14053_v3 = vld [vmem:[#allocation5 + $0x110] sm:$0xff]   ;;  %v14059_v5 = vld [vmem:[#allocation5 + $0x188] sm:$0xff]   ;;  %v14062_v6 = vld [vmem:[#allocation5 + $0x1c0] sm:$0xff]  }
  0x72   : > { %12538 = vmatprep.subr.bf16.mxu1 %v14020_v21  ;;  %v367_v44 = vrot.slane %v299_v40, 1  ;;  %634 = vmatprep.mubr.bf16.mxu1 %v299_v40  ;;  %v676_v47 = vrot.slane %v299_v40, 2  ;;  %v850_v49 = vrot.slane %v299_v40, 3  ;;  %v14057_v7 = vld [vmem:[#allocation5 + $0x108] sm:$0xff]   ;;  %v14060_v8 = vld [vmem:[#allocation5 + $0x140] sm:$0xff]   ;;  %v14066_v10 = vld [vmem:[#allocation5 + $0x2f8] sm:$0xff]  }
  0x73   : > { %v14063_v9 = vld [vmem:[#allocation5 + $0x180] sm:$0xff]   ;;  %v14064_v12 = vld [vmem:[#allocation5 + $0x278] sm:$0xff]   ;;  %v14070_v16 = vld [vmem:[#allocation5 + $0x2f0] sm:$0xff]  }
  0x74   : > { %12517 = vmatpush3.bf16.msra.mxu0 %v14021_v22  ;;  %498 = vmatprep.mubr.bf16.mxu0 %v367_v44  ;;  %v14061_v11 = vld [vmem:[#allocation5 + $0x100] sm:$0xff]   ;;  %v14067_v14 = vld [vmem:[#allocation5 + $0x2b8] sm:$0xff]   ;;  %v14068_v18 = vld [vmem:[#allocation5 + $0x270] sm:$0xff]  }
  0x75   : > { %12539 = vmatpush3.bf16.msra.mxu1 %v14022_v23  ;;  %12518 = vmatprep.subr.bf16.mxu0 %v14023_v24  ;;  %v14065_v17 = vld [vmem:[#allocation5 + $0x238] sm:$0xff]   ;;  %v14071_v19 = vld [vmem:[#allocation5 + $0x2b0] sm:$0xff]   ;;  %v14074_v20 = vld [vmem:[#allocation5 + $0x2e8] sm:$0xff]  }
  0x76   : > { %12540 = vmatprep.subr.bf16.mxu1 %v14024_v25  ;;  %v14069_v21 = vld [vmem:[#allocation5 + $0x230] sm:$0xff]   ;;  %v14072_v22 = vld [vmem:[#allocation5 + $0x268] sm:$0xff]   ;;  %v14078_v24 = vld [vmem:[#allocation5 + $0x2e0] sm:$0xff]  }
  0x77   : > { %v14075_v23 = vld [vmem:[#allocation5 + $0x2a8] sm:$0xff]   ;;  %v14081_v34 = vld [vmem:[#allocation5 + $0x218] sm:$0xff]   ;;  %v14085_v36 = vld [vmem:[#allocation5 + $0x210] sm:$0xff]  }
  0x78   : > { %12519 = vmatpush3.bf16.msra.mxu0 %v14025_v26  ;;  %v14073_v25 = vld [vmem:[#allocation5 + $0x228] sm:$0xff]   ;;  %v14076_v26 = vld [vmem:[#allocation5 + $0x260] sm:$0xff]   ;;  %v14087_v37 = vld [vmem:[#allocation5 + $0x290] sm:$0xff]  }
  0x79   : > { %12541 = vmatpush3.bf16.msra.mxu1 %v14026_v27  ;;  %12520 = vmatprep.subr.bf16.mxu0 %v14027_v28  ;;  %v14079_v27 = vld [vmem:[#allocation5 + $0x2a0] sm:$0xff]   ;;  %v14082_v28 = vld [vmem:[#allocation5 + $0x2d8] sm:$0xff]   ;;  %v14088_v39 = vld [vmem:[#allocation5 + $0x248] sm:$0xff]  }
  0x7a   : > { %12542 = vmatprep.subr.bf16.mxu1 %v14028_v29  ;;  %v14077_v29 = vld [vmem:[#allocation5 + $0x220] sm:$0xff]   ;;  %v14091_v40 = vld [vmem:[#allocation5 + $0x288] sm:$0xff]  }
  0x7c   : > { %12521 = vmatpush3.bf16.msra.mxu0 %v14029_v30  ;;  %v14080_v30 = vld [vmem:[#allocation5 + $0x258] sm:$0xff]  }
  0x7d   : > { %12543 = vmatpush3.bf16.msra.mxu1 %v14030_v31  ;;  %12550 = vmatprep.subr.bf16.mxu0 %v14032_v35  ;;  %v14083_v31 = vld [vmem:[#allocation5 + $0x298] sm:$0xff]   ;;  %v14084_v35 = vld [vmem:[#allocation5 + $0x250] sm:$0xff]  }
  0x7e   : > { %12572 = vmatprep.subr.bf16.mxu1 %v14034_v38  ;;  %v14090_v38 = vld [vmem:[#allocation5 + $0x2c8] sm:$0xff]  }
  0x7f   : > { %499 = vmatmul.mubr.bf16.vlgmr.msra.gmra.mxu0 %v366_v42  ;;  %v15414_v42 = vld [vmem:[%s15387_s11 + $0x8] sm:$0xf] }
  0x80   : > { %635 = vmatmul.mubr.bf16.vlgmr.msra.gmra.mxu1 %v279_v32  ;;  %12551 = vmatpush3.bf16.msra.mxu0 %v14033_v45  ;;  %v14086_v32 = vld [vmem:[#allocation5 + $0x2d0] sm:$0xff]   ;;  %v15418_v44 = vcombine.low %v15403_v33, %v15414_v42  ;;  %v14092_v45 = vld [vmem:[#allocation5 + $0x240] sm:$0xff]  }
  0x81   : > { %12573 = vmatpush3.bf16.msra.mxu1 %v14035_v41  ;;  %807 = vmatprep.mubr.bf16.mxu0 %v676_v47  ;;  %v14094_v41 = vld [vmem:[#allocation5 + $0x2c0] sm:$0xff]  }
  0x82   : > { %12574 = vmatprep.subr.bf16.mxu1 %v14038_v43  ;;  %12552 = vmatprep.subr.bf16.mxu0 %v14036_v46  ;;  %v14089_v43 = vld [vmem:[#allocation5 + $0x208] sm:$0xff]   ;;  %v994_v46 = vshrl.u32 %v15418_v44, 16  ;;  %v996_v47 = vshll.u32 %v15418_v44, 16 }
  0x83   : > { %981 = vmatprep.mubr.bf16.mxu1 %v850_v49  ;;  %v14099_v49 = vld [vmem:[#allocation5 + $0x3f8] sm:$0xff]  }
  0x84   : > { %12553 = vmatpush3.bf16.msra.mxu0 %v14037_v51  ;;  %v998_v51 = vrot.slane %v996_v47, 1  ;;  %v14149_v47 = vld [vmem:[#allocation5 + $0x450] sm:$0xff]  }
  0x85   : > { %12575 = vmatpush3.bf16.msra.mxu1 %v14039_v48  ;;  %12554 = vmatprep.subr.bf16.mxu0 %v14040_v52  ;;  %v14096_v48 = vld [vmem:[#allocation5 + $0x280] sm:$0xff]   ;;  %v14097_v52 = vld [vmem:[#allocation5 + $0x378] sm:$0xff]  }
  0x86   : > { %12576 = vmatprep.subr.bf16.mxu1 %v14042_v50  ;;  %v14093_v50 = vld [vmem:[#allocation5 + $0x200] sm:$0xff]  }
  0x88   : > { %12555 = vmatpush3.bf16.msra.mxu0 %v14041_v55  ;;  %v1204_v55 = vrot.slane %v15418_v44, 1 }
  0x89   : > { %12577 = vmatpush3.bf16.msra.mxu1 %v14043_v53  ;;  %12556 = vmatprep.subr.bf16.mxu0 %v14044_v56  ;;  %v999_v53 = vor.u32 %v998_v51, %v994_v46  ;;  %v14100_v56 = vld [vmem:[#allocation5 + $0x3b8] sm:$0xff]   ;;  %v14153_v51 = vld [vmem:[#allocation5 + $0x448] sm:$0xff]  }
  0x8a   : > { %12578 = vmatprep.subr.bf16.mxu1 %v14046_v54  ;;  %v14098_v54 = vld [vmem:[#allocation5 + $0x338] sm:$0xff]  }
  0x8b   : > { %v14148_v46 = vld [vmem:[#allocation5 + $0x498] sm:$0xff]  }
  0x8c   : > { %12557 = vmatpush3.bf16.msra.mxu0 %v14045_v59  ;;  %v14103_v59 = vld [vmem:[#allocation5 + $0x3f0] sm:$0xff]  }
  0x8d   : > { %12579 = vmatpush3.bf16.msra.mxu1 %v14047_v57  ;;  %12558 = vmatprep.subr.bf16.mxu0 %v14048_v60  ;;  %v1205_v57 = vrot.slane %v999_v53, 1  ;;  %v14102_v60 = vld [vmem:[#allocation5 + $0x330] sm:$0xff]  }
  0x8e   : > { %12580 = vmatprep.subr.bf16.mxu1 %v14050_v58  ;;  %v14101_v58 = vld [vmem:[#allocation5 + $0x370] sm:$0xff]  }
  0x90   : > { %12559 = vmatpush3.bf16.msra.mxu0 %v14049_v63  ;;  %v14104_v63 = vld [vmem:[#allocation5 + $0x3b0] sm:$0xff]  }
  0x91   : > { %12581 = vmatpush3.bf16.msra.mxu1 %v14051_v61  ;;  %12560 = vmatprep.subr.bf16.mxu0 %v14052_v0  ;;  %v1379_v61 = vrot.slane %v999_v53, 2  ;;  %v14105_v0 = vld [vmem:[#allocation5 + $0x368] sm:$0xff]  }
  0x92   : > { %12582 = vmatprep.subr.bf16.mxu1 %v14054_v62  ;;  %v1553_v62 = vrot.slane %v999_v53, 3 }
  0x94   : > { %12561 = vmatpush3.bf16.msra.mxu0 %v14053_v3  ;;  %v14108_v3 = vld [vmem:[#allocation5 + $0x3a8] sm:$0xff]  }
  0x95   : > { %12583 = vmatpush3.bf16.msra.mxu1 %v14055_v1  ;;  %12562 = vmatprep.subr.bf16.mxu0 %v14056_v4  ;;  %v14107_v1 = vld [vmem:[#allocation5 + $0x3e8] sm:$0xff]   ;;  %v14109_v4 = vld [vmem:[#allocation5 + $0x360] sm:$0xff]  }
  0x96   : > { %12584 = vmatprep.subr.bf16.mxu1 %v14058_v2  ;;  %v14106_v2 = vld [vmem:[#allocation5 + $0x328] sm:$0xff]  }
  0x98   : > { %12563 = vmatpush3.bf16.msra.mxu0 %v14057_v7  ;;  %v14113_v7 = vld [vmem:[#allocation5 + $0x358] sm:$0xff]  }
  0x99   : > { %12585 = vmatpush3.bf16.msra.mxu1 %v14059_v5  ;;  %12564 = vmatprep.subr.bf16.mxu0 %v14060_v8  ;;  %v14111_v5 = vld [vmem:[#allocation5 + $0x3e0] sm:$0xff]   ;;  %v14115_v8 = vld [vmem:[#allocation5 + $0x3d8] sm:$0xff]  }
  0x9a   : > { %12586 = vmatprep.subr.bf16.mxu1 %v14062_v6  ;;  %v14110_v6 = vld [vmem:[#allocation5 + $0x320] sm:$0xff]  }
  0x9c   : > { %12565 = vmatpush3.bf16.msra.mxu0 %v14061_v11  ;;  %v14117_v11 = vld [vmem:[#allocation5 + $0x350] sm:$0xff]  }
  0x9d   : > { %12587 = vmatpush3.bf16.msra.mxu1 %v14063_v9  ;;  %12594 = vmatprep.subr.bf16.mxu0 %v14064_v12  ;;  %v14114_v9 = vld [vmem:[#allocation5 + $0x318] sm:$0xff]   ;;  %v14119_v12 = vld [vmem:[#allocation5 + $0x3d0] sm:$0xff]  }
  0x9e   : > { %12616 = vmatprep.subr.bf16.mxu1 %v14066_v10  ;;  %v14116_v10 = vld [vmem:[#allocation5 + $0x398] sm:$0xff]  }
  0x9f   : > { %808 = vmatmul.mubr.bf16.vlgmr.msra.gmra.mxu0 %v675_v15  ;;  %v14121_v15 = vld [vmem:[#allocation5 + $0x348] sm:$0xff]  }
  0xa0   : > { %982 = vmatmul.mubr.bf16.vlgmr.msra.gmra.mxu1 %v849_v13  ;;  %12595 = vmatpush3.bf16.msra.mxu0 %v14065_v17  ;;  %v14118_v13 = vld [vmem:[#allocation5 + $0x310] sm:$0xff]   ;;  %v14122_v17 = vld [vmem:[#allocation5 + $0x308] sm:$0xff]  }
  0xa1   : > { %12617 = vmatpush3.bf16.msra.mxu1 %v14067_v14  ;;  %12596 = vmatprep.subr.bf16.mxu0 %v14068_v18  ;;  %v14120_v14 = vld [vmem:[#allocation5 + $0x390] sm:$0xff]   ;;  %v14124_v18 = vld [vmem:[#allocation5 + $0x388] sm:$0xff]  }
  0xa2   : > { %12618 = vmatprep.subr.bf16.mxu1 %v14070_v16  ;;  %1162 = vmatprep.mubr.bf16.mxu0 %v999_v53  ;;  %v14123_v16 = vld [vmem:[#allocation5 + $0x3c8] sm:$0xff]  }
  0xa3   : > { %1336 = vmatprep.mubr.bf16.mxu1 %v1205_v57  ;;  %v14154_v53 = vld [vmem:[#allocation5 + $0x408] sm:$0xff]  }
  0xa4   : > { %12597 = vmatpush3.bf16.msra.mxu0 %v14069_v21  ;;  %v14126_v21 = vld [vmem:[#allocation5 + $0x300] sm:$0xff]  }
  0xa5   : > { %12619 = vmatpush3.bf16.msra.mxu1 %v14071_v19  ;;  %12598 = vmatprep.subr.bf16.mxu0 %v14072_v22  ;;  %v14125_v19 = vld [vmem:[#allocation5 + $0x340] sm:$0xff]  }
  0xa6   : > { %12620 = vmatprep.subr.bf16.mxu1 %v14074_v20  ;;  %v14127_v20 = vld [vmem:[#allocation5 + $0x3c0] sm:$0xff]  }
  0xa7   : > { %v14128_v22 = vld [vmem:[#allocation5 + $0x380] sm:$0xff]  }
  0xa8   : > { %12599 = vmatpush3.bf16.msra.mxu0 %v14073_v25  ;;  %v1378_v25 = vrot.slane %v15418_v44, 2 }
  0xa9   : > { %12621 = vmatpush3.bf16.msra.mxu1 %v14075_v23  ;;  %12600 = vmatprep.subr.bf16.mxu0 %v14076_v26  ;;  %v14129_v23 = vld [vmem:[#allocation5 + $0x478] sm:$0xff]  }
  0xaa   : > { %12622 = vmatprep.subr.bf16.mxu1 %v14078_v24  ;;  %v14131_v24 = vld [vmem:[#allocation5 + $0x4f8] sm:$0xff]  }
  0xab   : > { %v14130_v26 = vld [vmem:[#allocation5 + $0x438] sm:$0xff]  }
  0xac   : > { %12601 = vmatpush3.bf16.msra.mxu0 %v14077_v29  ;;  %v14133_v29 = vld [vmem:[#allocation5 + $0x470] sm:$0xff]  }
  0xad   : > { %12623 = vmatpush3.bf16.msra.mxu1 %v14079_v27  ;;  %12602 = vmatprep.subr.bf16.mxu0 %v14080_v30  ;;  %v1552_v27 = vrot.slane %v15418_v44, 3  ;;  %v14135_v30 = vld [vmem:[#allocation5 + $0x4f0] sm:$0xff]   ;;  %v14147_v44 = vld [vmem:[#allocation5 + $0x4d8] sm:$0xff]  }
  0xae   : > { %12624 = vmatprep.subr.bf16.mxu1 %v14082_v28  ;;  %v14132_v28 = vld [vmem:[#allocation5 + $0x4b8] sm:$0xff]  }
  0xb0   : > { %12603 = vmatpush3.bf16.msra.mxu0 %v14081_v34  ;;  %v14137_v34 = vld [vmem:[#allocation5 + $0x468] sm:$0xff]  }
  0xb1   : > { %12625 = vmatpush3.bf16.msra.mxu1 %v14083_v31  ;;  %12604 = vmatprep.subr.bf16.mxu0 %v14084_v35  ;;  %v14134_v31 = vld [vmem:[#allocation5 + $0x430] sm:$0xff]   ;;  %v14139_v35 = vld [vmem:[#allocation5 + $0x4e8] sm:$0xff]  }
  0xb2   : > { %12626 = vmatprep.subr.bf16.mxu1 %v14086_v32  ;;  %v14136_v32 = vld [vmem:[#allocation5 + $0x4b0] sm:$0xff]  }
  0xb4   : > { %12605 = vmatpush3.bf16.msra.mxu0 %v14085_v36  ;;  %v14138_v36 = vld [vmem:[#allocation5 + $0x428] sm:$0xff]  }
  0xb5   : > { %12627 = vmatpush3.bf16.msra.mxu1 %v14087_v37  ;;  %12606 = vmatprep.subr.bf16.mxu0 %v14088_v39  ;;  %v14140_v37 = vld [vmem:[#allocation5 + $0x4a8] sm:$0xff]   ;;  %v14143_v39 = vld [vmem:[#allocation5 + $0x4e0] sm:$0xff]  }
  0xb6   : > { %12628 = vmatprep.subr.bf16.mxu1 %v14090_v38  ;;  %v14141_v38 = vld [vmem:[#allocation5 + $0x460] sm:$0xff]  }
  0xb8   : > { %12607 = vmatpush3.bf16.msra.mxu0 %v14089_v43  ;;  %v14145_v43 = vld [vmem:[#allocation5 + $0x458] sm:$0xff]  }
  0xb9   : > { %12629 = vmatpush3.bf16.msra.mxu1 %v14091_v40  ;;  %12608 = vmatprep.subr.bf16.mxu0 %v14092_v45  ;;  %v14142_v40 = vld [vmem:[#allocation5 + $0x420] sm:$0xff]   ;;  %v14146_v45 = vld [vmem:[#allocation5 + $0x418] sm:$0xff]  }
  0xba   : > { %12630 = vmatprep.subr.bf16.mxu1 %v14094_v41  ;;  %v14144_v41 = vld [vmem:[#allocation5 + $0x4a0] sm:$0xff]  }
  0xbc   : > { %12609 = vmatpush3.bf16.msra.mxu0 %v14093_v50  ;;  %v14152_v50 = vld [vmem:[#allocation5 + $0x490] sm:$0xff]  }
  0xbd   : > { %12631 = vmatpush3.bf16.msra.mxu1 %v14096_v48  ;;  %12638 = vmatprep.subr.bf16.mxu0 %v14097_v52  ;;  %v14151_v48 = vld [vmem:[#allocation5 + $0x4d0] sm:$0xff]   ;;  %v14155_v52 = vld [vmem:[#allocation5 + $0x4c8] sm:$0xff]  }
  0xbe   : > { %12660 = vmatprep.subr.bf16.mxu1 %v14099_v49  ;;  %v14150_v49 = vld [vmem:[#allocation5 + $0x410] sm:$0xff]  }
  0xbf   : > { %1163 = vmatmul.mubr.bf16.vlgmr.msra.gmra.mxu0 %v15403_v33  ;;  %v14112_v33 = vld [vmem:[#allocation5 + $0x3a0] sm:$0xff]  }
  0xc0   : > { %1337 = vmatmul.mubr.bf16.vlgmr.msra.gmra.mxu1 %v1204_v55  ;;  %12639 = vmatpush3.bf16.msra.mxu0 %v14098_v54  ;;  %v14156_v54 = vld [vmem:[#allocation5 + $0x488] sm:$0xff]  }
  0xc1   : > { %12661 = vmatpush3.bf16.msra.mxu1 %v14100_v56  ;;  %12640 = vmatprep.subr.bf16.mxu0 %v14101_v58  ;;  %v15427_v55 = vld [vmem:[%s15387_s11 + $0xc] sm:$0xf]  ;;  %v14157_v56 = vld [vmem:[#allocation5 + $0x440] sm:$0xff]  }
  0xc2   : > { %12662 = vmatprep.subr.bf16.mxu1 %v14103_v59  ;;  %1510 = vmatprep.mubr.bf16.mxu0 %v1379_v61  ;;  %v15431_v57 = vcombine.low %v15414_v42, %v15427_v55  ;;  %v14159_v58 = vld [vmem:[#allocation5 + $0x4c0] sm:$0xff]  }
  0xc3   : > { %1684 = vmatprep.mubr.bf16.mxu1 %v1553_v62  ;;  %v14158_v61 = vld [vmem:[#allocation5 + $0x400] sm:$0xff]  }
  0xc4   : > { %12641 = vmatpush3.bf16.msra.mxu0 %v14102_v60  ;;  %v1697_v59 = vshrl.u32 %v15431_v57, 16  ;;  %v1699_v60 = vshll.u32 %v15431_v57, 16 }
  0xc5   : > { %12663 = vmatpush3.bf16.msra.mxu1 %v14104_v63  ;;  %12642 = vmatprep.subr.bf16.mxu0 %v14105_v0  ;;  %v14161_v63 = vld [vmem:[#allocation5 + $0x480] sm:$0xff]   ;;  %v14162_v0 = vld [vmem:[#allocation5 + $0x578] sm:$0xff]  }
  0xc6   : > { %12664 = vmatprep.subr.bf16.mxu1 %v14107_v1  ;;  %v1701_v62 = vrot.slane %v1699_v60, 1  ;;  %v14214_v60 = vld [vmem:[#allocation5 + $0x650] sm:$0xff]  }
  0xc8   : > { %12643 = vmatpush3.bf16.msra.mxu0 %v14106_v2  ;;  %v1702_v1 = vor.u32 %v1701_v62, %v1697_v59  ;;  %v14164_v2 = vld [vmem:[#allocation5 + $0x5f8] sm:$0xff]   ;;  %v14215_v62 = vld [vmem:[#allocation5 + $0x610] sm:$0xff]  }
  0xc9   : > { %12665 = vmatpush3.bf16.msra.mxu1 %v14108_v3  ;;  %12644 = vmatprep.subr.bf16.mxu0 %v14109_v4  ;;  %v14163_v3 = vld [vmem:[#allocation5 + $0x538] sm:$0xff]   ;;  %v1907_v4 = vrot.slane %v15431_v57, 1 }
  0xca   : > { %12666 = vmatprep.subr.bf16.mxu1 %v14111_v5  ;;  %v1908_v5 = vrot.slane %v1702_v1, 1  ;;  %v14213_v59 = vld [vmem:[#allocation5 + $0x698] sm:$0xff]  }
  0xcc   : > { %12645 = vmatpush3.bf16.msra.mxu0 %v14110_v6  ;;  %v14165_v6 = vld [vmem:[#allocation5 + $0x5b8] sm:$0xff]  }
  0xcd   : > { %12667 = vmatpush3.bf16.msra.mxu1 %v14112_v33  ;;  %12646 = vmatprep.subr.bf16.mxu0 %v14113_v7  ;;  %v14166_v33 = vld [vmem:[#allocation5 + $0x570] sm:$0xff]  }
  0xce   : > { %12668 = vmatprep.subr.bf16.mxu1 %v14115_v8  ;;  %v14168_v7 = vld [vmem:[#allocation5 + $0x5f0] sm:$0xff]   ;;  %v2082_v8 = vrot.slane %v1702_v1, 2 }
  0xd0   : > { %12647 = vmatpush3.bf16.msra.mxu0 %v14114_v9  ;;  %v14167_v9 = vld [vmem:[#allocation5 + $0x530] sm:$0xff]  }
  0xd1   : > { %12669 = vmatpush3.bf16.msra.mxu1 %v14116_v10  ;;  %12648 = vmatprep.subr.bf16.mxu0 %v14117_v11  ;;  %v2256_v10 = vrot.slane %v1702_v1, 3  ;;  %v14169_v11 = vld [vmem:[#allocation5 + $0x5b0] sm:$0xff]  }
  0xd2   : > { %12670 = vmatprep.subr.bf16.mxu1 %v14119_v12  ;;  %v14170_v12 = vld [vmem:[#allocation5 + $0x568] sm:$0xff]  }
  0xd4   : > { %12649 = vmatpush3.bf16.msra.mxu0 %v14118_v13  ;;  %v14172_v13 = vld [vmem:[#allocation5 + $0x5e8] sm:$0xff]  }
  0xd5   : > { %12671 = vmatpush3.bf16.msra.mxu1 %v14120_v14  ;;  %12650 = vmatprep.subr.bf16.mxu0 %v14121_v15  ;;  %v14171_v14 = vld [vmem:[#allocation5 + $0x528] sm:$0xff]  }
  0xd6   : > { %12672 = vmatprep.subr.bf16.mxu1 %v14123_v16  ;;  %v14173_v15 = vld [vmem:[#allocation5 + $0x5a8] sm:$0xff]   ;;  %v14174_v16 = vld [vmem:[#allocation5 + $0x560] sm:$0xff]  }
  0xd8   : > { %12651 = vmatpush3.bf16.msra.mxu0 %v14122_v17  ;;  %v14175_v17 = vld [vmem:[#allocation5 + $0x520] sm:$0xff]  }
  0xd9   : > { %12673 = vmatpush3.bf16.msra.mxu1 %v14124_v18  ;;  %12652 = vmatprep.subr.bf16.mxu0 %v14125_v19  ;;  %v14177_v18 = vld [vmem:[#allocation5 + $0x5a0] sm:$0xff]   ;;  %v14178_v19 = vld [vmem:[#allocation5 + $0x558] sm:$0xff]  }
  0xda   : > { %12674 = vmatprep.subr.bf16.mxu1 %v14127_v20  ;;  %v14180_v20 = vld [vmem:[#allocation5 + $0x5d8] sm:$0xff]  }
  0xdc   : > { %12653 = vmatpush3.bf16.msra.mxu0 %v14126_v21  ;;  %v14179_v21 = vld [vmem:[#allocation5 + $0x518] sm:$0xff]  }
  0xdd   : > { %12675 = vmatpush3.bf16.msra.mxu1 %v14128_v22  ;;  %12682 = vmatprep.subr.bf16.mxu0 %v14129_v23  ;;  %v14181_v22 = vld [vmem:[#allocation5 + $0x598] sm:$0xff]   ;;  %v14182_v23 = vld [vmem:[#allocation5 + $0x550] sm:$0xff]  }
  0xde   : > { %12704 = vmatprep.subr.bf16.mxu1 %v14131_v24  ;;  %v14184_v24 = vld [vmem:[#allocation5 + $0x5d0] sm:$0xff]  }
  0xdf   : > { %1511 = vmatmul.mubr.bf16.vlgmr.msra.gmra.mxu0 %v1378_v25  ;;  %v14183_v25 = vld [vmem:[#allocation5 + $0x510] sm:$0xff]  }
  0xe0   : > { %1685 = vmatmul.mubr.bf16.vlgmr.msra.gmra.mxu1 %v1552_v27  ;;  %12683 = vmatpush3.bf16.msra.mxu0 %v14130_v26  ;;  %v14185_v26 = vld [vmem:[#allocation5 + $0x590] sm:$0xff]   ;;  %v14186_v27 = vld [vmem:[#allocation5 + $0x548] sm:$0xff]  }
  0xe1   : > { %12705 = vmatpush3.bf16.msra.mxu1 %v14132_v28  ;;  %12684 = vmatprep.subr.bf16.mxu0 %v14133_v29  ;;  %v14188_v28 = vld [vmem:[#allocation5 + $0x5c8] sm:$0xff]  }
  0xe2   : > { %12706 = vmatprep.subr.bf16.mxu1 %v14135_v30  ;;  %1865 = vmatprep.mubr.bf16.mxu0 %v1702_v1  ;;  %v14187_v29 = vld [vmem:[#allocation5 + $0x508] sm:$0xff]  }
  0xe3   : > { %2039 = vmatprep.mubr.bf16.mxu1 %v1908_v5  ;;  %v14189_v30 = vld [vmem:[#allocation5 + $0x588] sm:$0xff]   ;;  %v14222_v5 = vld [vmem:[#allocation5 + $0x640] sm:$0xff]  }
  0xe4   : > { %12685 = vmatpush3.bf16.msra.mxu0 %v14134_v31  ;;  %v14190_v31 = vld [vmem:[#allocation5 + $0x540] sm:$0xff]   ;;  %v14220_v1 = vld [vmem:[#allocation5 + $0x6c8] sm:$0xff]  }
  0xe5   : > { %12707 = vmatpush3.bf16.msra.mxu1 %v14136_v32  ;;  %12686 = vmatprep.subr.bf16.mxu0 %v14137_v34  ;;  %v14192_v32 = vld [vmem:[#allocation5 + $0x5c0] sm:$0xff]  }
  0xe6   : > { %12708 = vmatprep.subr.bf16.mxu1 %v14139_v35  ;;  %v14191_v34 = vld [vmem:[#allocation5 + $0x500] sm:$0xff]  }
  0xe7   : > { %v14193_v35 = vld [vmem:[#allocation5 + $0x580] sm:$0xff]  }
  0xe8   : > { %12687 = vmatpush3.bf16.msra.mxu0 %v14138_v36  ;;  %v14194_v36 = vld [vmem:[#allocation5 + $0x678] sm:$0xff]  }
  0xe9   : > { %12709 = vmatpush3.bf16.msra.mxu1 %v14140_v37  ;;  %12688 = vmatprep.subr.bf16.mxu0 %v14141_v38  ;;  %v14196_v37 = vld [vmem:[#allocation5 + $0x6f8] sm:$0xff]   ;;  %v2081_v38 = vrot.slane %v15431_v57, 2 }
  0xea   : > { %12710 = vmatprep.subr.bf16.mxu1 %v14143_v39  ;;  %v14195_v39 = vld [vmem:[#allocation5 + $0x638] sm:$0xff]  }
  0xec   : > { %12689 = vmatpush3.bf16.msra.mxu0 %v14142_v40  ;;  %v2255_v40 = vrot.slane %v15431_v57, 3  ;;  %v14212_v57 = vld [vmem:[#allocation5 + $0x6d8] sm:$0xff]  }
  0xed   : > { %12711 = vmatpush3.bf16.msra.mxu1 %v14144_v41  ;;  %12690 = vmatprep.subr.bf16.mxu0 %v14145_v43  ;;  %v14197_v41 = vld [vmem:[#allocation5 + $0x6b8] sm:$0xff]   ;;  %v14198_v43 = vld [vmem:[#allocation5 + $0x670] sm:$0xff]  }
  0xee   : > { %12712 = vmatprep.subr.bf16.mxu1 %v14147_v44  ;;  %v14200_v44 = vld [vmem:[#allocation5 + $0x6f0] sm:$0xff]  }
  0xf0   : > { %12691 = vmatpush3.bf16.msra.mxu0 %v14146_v45  ;;  %v14199_v45 = vld [vmem:[#allocation5 + $0x630] sm:$0xff]  }
  0xf1   : > { %12713 = vmatpush3.bf16.msra.mxu1 %v14148_v46  ;;  %12692 = vmatprep.subr.bf16.mxu0 %v14149_v47  ;;  %v14201_v46 = vld [vmem:[#allocation5 + $0x6b0] sm:$0xff]   ;;  %v14202_v47 = vld [vmem:[#allocation5 + $0x668] sm:$0xff]  }
  0xf2   : > { %12714 = vmatprep.subr.bf16.mxu1 %v14151_v48  ;;  %v14204_v48 = vld [vmem:[#allocation5 + $0x6e8] sm:$0xff]  }
  0xf4   : > { %12693 = vmatpush3.bf16.msra.mxu0 %v14150_v49  ;;  %v14203_v49 = vld [vmem:[#allocation5 + $0x628] sm:$0xff]  }
  0xf5   : > { %12715 = vmatpush3.bf16.msra.mxu1 %v14152_v50  ;;  %12694 = vmatprep.subr.bf16.mxu0 %v14153_v51  ;;  %v14205_v50 = vld [vmem:[#allocation5 + $0x6a8] sm:$0xff]   ;;  %v14206_v51 = vld [vmem:[#allocation5 + $0x660] sm:$0xff]  }
  0xf6   : > { %12716 = vmatprep.subr.bf16.mxu1 %v14155_v52  ;;  %v14208_v52 = vld [vmem:[#allocation5 + $0x6e0] sm:$0xff]  }
  0xf8   : > { %12695 = vmatpush3.bf16.msra.mxu0 %v14154_v53  ;;  %v14207_v53 = vld [vmem:[#allocation5 + $0x620] sm:$0xff]  }
  0xf9   : > { %12717 = vmatpush3.bf16.msra.mxu1 %v14156_v54  ;;  %12696 = vmatprep.subr.bf16.mxu0 %v14157_v56  ;;  %v14209_v54 = vld [vmem:[#allocation5 + $0x6a0] sm:$0xff]   ;;  %v14210_v56 = vld [vmem:[#allocation5 + $0x658] sm:$0xff]  }
  0xfa   : > { %12718 = vmatprep.subr.bf16.mxu1 %v14159_v58  ;;  %v14211_v58 = vld [vmem:[#allocation5 + $0x618] sm:$0xff]  }
  0xfc   : > { %12697 = vmatpush3.bf16.msra.mxu0 %v14158_v61  ;;  %v14216_v61 = vld [vmem:[#allocation5 + $0x6d0] sm:$0xff]  }
  0xfd   : > { %12719 = vmatpush3.bf16.msra.mxu1 %v14161_v63  ;;  %12726 = vmatprep.subr.bf16.mxu0 %v14162_v0  ;;  %v14217_v63 = vld [vmem:[#allocation5 + $0x690] sm:$0xff]   ;;  %v14218_v0 = vld [vmem:[#allocation5 + $0x648] sm:$0xff]  }
  0xfe   : > { %12748 = vmatprep.subr.bf16.mxu1 %v14164_v2  ;;  %v14219_v2 = vld [vmem:[#allocation5 + $0x608] sm:$0xff]  }
  0xff   : > { %1866 = vmatmul.mubr.bf16.vlgmr.msra.gmra.mxu0 %v15414_v42  ;;  %v14176_v42 = vld [vmem:[#allocation5 + $0x5e0] sm:$0xff]  }
 0x100   : > { %12727 = vmatpush3.bf16.msra.mxu0 %v14163_v3  ;;  %2040 = vmatmul.mubr.bf16.vlgmr.msra.gmra.mxu1 %v1907_v4  ;;  %v14221_v3 = vld [vmem:[#allocation5 + $0x688] sm:$0xff]   ;;  %v15440_v4 = vld [vmem:[%s15387_s11 + $0x10] sm:$0xf] }
 0x101   : > { %12749 = vmatpush3.bf16.msra.mxu1 %v14165_v6  ;;  %12728 = vmatprep.subr.bf16.mxu0 %v14166_v33  ;;  %v15444_v6 = vcombine.low %v15427_v55, %v15440_v4  ;;  %v14224_v33 = vld [vmem:[#allocation5 + $0x6c0] sm:$0xff]  }
 0x102   : > { %12750 = vmatprep.subr.bf16.mxu1 %v14168_v7  ;;  %2213 = vmatprep.mubr.bf16.mxu0 %v2082_v8  ;;  %v14223_v7 = vld [vmem:[#allocation5 + $0x600] sm:$0xff]  }
 0x103   : > { %2387 = vmatprep.mubr.bf16.mxu1 %v2256_v10  ;;  %v2400_v8 = vshrl.u32 %v15444_v6, 16  ;;  %v14226_v10 = vld [vmem:[#allocation5 + $0x680] sm:$0xff]  }
 0x104   : > { %12729 = vmatpush3.bf16.msra.mxu0 %v14167_v9  ;;  %v2402_v9 = vshll.u32 %v15444_v6, 16 }
 0x105   : > { %12751 = vmatpush3.bf16.msra.mxu1 %v14169_v11  ;;  %12730 = vmatprep.subr.bf16.mxu0 %v14170_v12  ;;  %v14227_v12 = vld [vmem:[#allocation5 + $0x778] sm:$0xff]  }
 0x106   : > { %12752 = vmatprep.subr.bf16.mxu1 %v14172_v13  ;;  %v2404_v11 = vrot.slane %v2402_v9, 1  ;;  %v14229_v13 = vld [vmem:[#allocation5 + $0x7f8] sm:$0xff]   ;;  %v14264_v9 = vld [vmem:[#allocation5 + $0x830] sm:$0xff]  }
 0x108   : > { %12731 = vmatpush3.bf16.msra.mxu0 %v14171_v14  ;;  %v2405_v14 = vor.u32 %v2404_v11, %v2400_v8  ;;  %v14266_v11 = vld [vmem:[#allocation5 + $0x8b0] sm:$0xff]  }
 0x109   : > { %12753 = vmatpush3.bf16.msra.mxu1 %v14173_v15  ;;  %12732 = vmatprep.subr.bf16.mxu0 %v14174_v16  ;;  %v14228_v15 = vld [vmem:[#allocation5 + $0x738] sm:$0xff]   ;;  %v2610_v16 = vrot.slane %v15444_v6, 1 }
 0x10a   : > { %12754 = vmatprep.subr.bf16.mxu1 %v14176_v42  ;;  %v14230_v42 = vld [vmem:[#allocation5 + $0x7b8] sm:$0xff]  }
 0x10c   : > { %12733 = vmatpush3.bf16.msra.mxu0 %v14175_v17 }
 0x10d   : > { %12755 = vmatpush3.bf16.msra.mxu1 %v14177_v18  ;;  %12734 = vmatprep.subr.bf16.mxu0 %v14178_v19  ;;  %v2611_v18 = vrot.slane %v2405_v14, 1  ;;  %v14231_v19 = vld [vmem:[#allocation5 + $0x770] sm:$0xff]  }
 0x10e   : > { %12756 = vmatprep.subr.bf16.mxu1 %v14180_v20  ;;  %v14233_v20 = vld [vmem:[#allocation5 + $0x7f0] sm:$0xff]  }
 0x110   : > { %12735 = vmatpush3.bf16.msra.mxu0 %v14179_v21  ;;  %v2785_v21 = vrot.slane %v2405_v14, 2 }
 0x111   : > { %12757 = vmatpush3.bf16.msra.mxu1 %v14181_v22  ;;  %12736 = vmatprep.subr.bf16.mxu0 %v14182_v23 }
 0x112   : > { %12758 = vmatprep.subr.bf16.mxu1 %v14184_v24  ;;  %v14232_v24 = vld [vmem:[#allocation5 + $0x730] sm:$0xff]  }
 0x114   : > { %12737 = vmatpush3.bf16.msra.mxu0 %v14183_v25  ;;  %v2959_v25 = vrot.slane %v2405_v14, 3 }
 0x115   : > { %12759 = vmatpush3.bf16.msra.mxu1 %v14185_v26  ;;  %12738 = vmatprep.subr.bf16.mxu0 %v14186_v27  ;;  %v14234_v27 = vld [vmem:[#allocation5 + $0x7b0] sm:$0xff]  }
 0x116   : > { %12760 = vmatprep.subr.bf16.mxu1 %v14188_v28 }
 0x118   : > { %12739 = vmatpush3.bf16.msra.mxu0 %v14187_v29  ;;  %v14235_v29 = vld [vmem:[#allocation5 + $0x768] sm:$0xff]  }
 0x119   : > { %12761 = vmatpush3.bf16.msra.mxu1 %v14189_v30  ;;  %12740 = vmatprep.subr.bf16.mxu0 %v14190_v31 }
 0x11a   : > { %12762 = vmatprep.subr.bf16.mxu1 %v14192_v32  ;;  %v14237_v32 = vld [vmem:[#allocation5 + $0x7e8] sm:$0xff]  }
 0x11c   : > { %12741 = vmatpush3.bf16.msra.mxu0 %v14191_v34 }
 0x11d   : > { %12763 = vmatpush3.bf16.msra.mxu1 %v14193_v35  ;;  %12770 = vmatprep.subr.bf16.mxu0 %v14194_v36  ;;  %v14236_v35 = vld [vmem:[#allocation5 + $0x728] sm:$0xff]  }
 0x11e   : > { %12792 = vmatprep.subr.bf16.mxu1 %v14196_v37  ;;  %v14238_v37 = vld [vmem:[#allocation5 + $0x7a8] sm:$0xff]  }
 0x11f   : > { %2214 = vmatmul.mubr.bf16.vlgmr.msra.gmra.mxu0 %v2081_v38 }
 0x120   : > { %12771 = vmatpush3.bf16.msra.mxu0 %v14195_v39  ;;  %2388 = vmatmul.mubr.bf16.vlgmr.msra.gmra.mxu1 %v2255_v40  ;;  %v14239_v39 = vld [vmem:[#allocation5 + $0x760] sm:$0xff]  }
 0x121   : > { %12793 = vmatpush3.bf16.msra.mxu1 %v14197_v41  ;;  %12772 = vmatprep.subr.bf16.mxu0 %v14198_v43  ;;  %v14241_v40 = vld [vmem:[#allocation5 + $0x7e0] sm:$0xff]  }
 0x122   : > { %12794 = vmatprep.subr.bf16.mxu1 %v14200_v44  ;;  %2568 = vmatprep.mubr.bf16.mxu0 %v2405_v14  ;;  %v14240_v41 = vld [vmem:[#allocation5 + $0x720] sm:$0xff]   ;;  %v14243_v44 = vld [vmem:[#allocation5 + $0x758] sm:$0xff]  }
 0x123   : > { %2742 = vmatprep.mubr.bf16.mxu1 %v2611_v18  ;;  %v14242_v43 = vld [vmem:[#allocation5 + $0x7a0] sm:$0xff]  }
 0x124   : > { %12773 = vmatpush3.bf16.msra.mxu0 %v14199_v45  ;;  %v14245_v45 = vld [vmem:[#allocation5 + $0x7d8] sm:$0xff]  }
 0x125   : > { %12795 = vmatpush3.bf16.msra.mxu1 %v14201_v46  ;;  %12774 = vmatprep.subr.bf16.mxu0 %v14202_v47  ;;  %v14244_v46 = vld [vmem:[#allocation5 + $0x718] sm:$0xff]  }
 0x126   : > { %12796 = vmatprep.subr.bf16.mxu1 %v14204_v48  ;;  %v14246_v47 = vld [vmem:[#allocation5 + $0x798] sm:$0xff]   ;;  %v14247_v48 = vld [vmem:[#allocation5 + $0x750] sm:$0xff]  }
 0x128   : > { %12775 = vmatpush3.bf16.msra.mxu0 %v14203_v49  ;;  %v14249_v49 = vld [vmem:[#allocation5 + $0x7d0] sm:$0xff]  }
 0x129   : > { %12797 = vmatpush3.bf16.msra.mxu1 %v14205_v50  ;;  %12776 = vmatprep.subr.bf16.mxu0 %v14206_v51  ;;  %v14248_v50 = vld [vmem:[#allocation5 + $0x710] sm:$0xff]  }
 0x12a   : > { %12798 = vmatprep.subr.bf16.mxu1 %v14208_v52  ;;  %v14250_v51 = vld [vmem:[#allocation5 + $0x790] sm:$0xff]   ;;  %v14251_v52 = vld [vmem:[#allocation5 + $0x748] sm:$0xff]  }
 0x12c   : > { %12777 = vmatpush3.bf16.msra.mxu0 %v14207_v53  ;;  %v14253_v53 = vld [vmem:[#allocation5 + $0x7c8] sm:$0xff]  }
 0x12d   : > { %12799 = vmatpush3.bf16.msra.mxu1 %v14209_v54  ;;  %12778 = vmatprep.subr.bf16.mxu0 %v14210_v56  ;;  %v14252_v54 = vld [vmem:[#allocation5 + $0x708] sm:$0xff]  }
 0x12e   : > { %12800 = vmatprep.subr.bf16.mxu1 %v14212_v57  ;;  %v14254_v56 = vld [vmem:[#allocation5 + $0x788] sm:$0xff]   ;;  %v14255_v57 = vld [vmem:[#allocation5 + $0x740] sm:$0xff]  }
 0x130   : > { %12779 = vmatpush3.bf16.msra.mxu0 %v14211_v58  ;;  %v14257_v58 = vld [vmem:[#allocation5 + $0x7c0] sm:$0xff]  }
 0x131   : > { %12801 = vmatpush3.bf16.msra.mxu1 %v14213_v59  ;;  %12780 = vmatprep.subr.bf16.mxu0 %v14214_v60  ;;  %v14256_v59 = vld [vmem:[#allocation5 + $0x700] sm:$0xff]  }
 0x132   : > { %12802 = vmatprep.subr.bf16.mxu1 %v14216_v61  ;;  %v14258_v60 = vld [vmem:[#allocation5 + $0x780] sm:$0xff]   ;;  %v14259_v61 = vld [vmem:[#allocation5 + $0x878] sm:$0xff]  }
 0x134   : > { %12781 = vmatpush3.bf16.msra.mxu0 %v14215_v62  ;;  %v14261_v62 = vld [vmem:[#allocation5 + $0x8f8] sm:$0xff]  }
 0x135   : > { %12803 = vmatpush3.bf16.msra.mxu1 %v14217_v63  ;;  %12782 = vmatprep.subr.bf16.mxu0 %v14218_v0  ;;  %v2784_v63 = vrot.slane %v15444_v6, 2  ;;  %v14260_v0 = vld [vmem:[#allocation5 + $0x838] sm:$0xff]  }
 0x136   : > { %12804 = vmatprep.subr.bf16.mxu1 %v14220_v1  ;;  %v2958_v1 = vrot.slane %v15444_v6, 3 }
 0x138   : > { %12783 = vmatpush3.bf16.msra.mxu0 %v14219_v2  ;;  %v14262_v2 = vld [vmem:[#allocation5 + $0x8b8] sm:$0xff]  }
 0x139   : > { %12805 = vmatpush3.bf16.msra.mxu1 %v14221_v3  ;;  %12784 = vmatprep.subr.bf16.mxu0 %v14222_v5  ;;  %v14263_v5 = vld [vmem:[#allocation5 + $0x870] sm:$0xff]  }
 0x13a   : > { %12806 = vmatprep.subr.bf16.mxu1 %v14224_v33  ;;  %v14265_v33 = vld [vmem:[#allocation5 + $0x8f0] sm:$0xff]  }
 0x13c   : > { %12785 = vmatpush3.bf16.msra.mxu0 %v14223_v7 }
 0x13d   : > { %12807 = vmatpush3.bf16.msra.mxu1 %v14226_v10  ;;  %12814 = vmatprep.subr.bf16.mxu0 %v14227_v12 }
 0x13e   : > { %12836 = vmatprep.subr.bf16.mxu1 %v14229_v13  ;;  %v14267_v13 = vld [vmem:[#allocation5 + $0x868] sm:$0xff]  }
 0x13f   : > { %v12522_v22 = vpop.f32.mrf.mxu0  ;;  %2569 = vmatmul.mubr.bf16.vlgmr.msra.gmra.mxu0 %v15427_v55 }
 0x140   : > { %v12544_v17 = vpop.f32.mrf.mxu1  ;;  %12815 = vmatpush3.bf16.msra.mxu0 %v14228_v15  ;;  %2743 = vmatmul.mubr.bf16.vlgmr.msra.gmra.mxu1 %v2610_v16  ;;  %v14269_v15 = vld [vmem:[#allocation5 + $0x8e8] sm:$0xff]  }
 0x141   : > { %v12523_v28 = vpop.f32.mrf.mxu0  ;;  %12837 = vmatpush3.bf16.msra.mxu1 %v14230_v42  ;;  %12816 = vmatprep.subr.bf16.mxu0 %v14231_v19  ;;  %v14268_v42 = vld [vmem:[#allocation5 + $0x828] sm:$0xff]  }
 0x142   : > { %v12545_v23 = vpop.f32.mrf.mxu1  ;;  %v12524_v31 = vadd.f32 %v12523_v28, %v12522_v22  ;;  %12838 = vmatprep.subr.bf16.mxu1 %v14233_v20  ;;  %2916 = vmatprep.mubr.bf16.mxu0 %v2785_v21  ;;  %v14270_v19 = vld [vmem:[#allocation5 + $0x8a8] sm:$0xff]   ;;  %v14271_v21 = vld [vmem:[#allocation5 + $0x860] sm:$0xff]   ;;  %v14276_v28 = vld [vmem:[#allocation5 + $0x818] sm:$0xff]  }
 0x143   : > { %v12546_v26 = vadd.f32 %v12545_v23, %v12544_v17  ;;  %v12525_v34 = vpop.f32.mrf.mxu0  ;;  %3090 = vmatprep.mubr.bf16.mxu1 %v2959_v25  ;;  %v14273_v23 = vld [vmem:[#allocation5 + $0x8e0] sm:$0xff]  }
 0x144   : > { %v12547_v30 = vpop.f32.mrf.mxu1  ;;  %12817 = vmatpush3.bf16.msra.mxu0 %v14232_v24  ;;  %v14272_v24 = vld [vmem:[#allocation5 + $0x820] sm:$0xff]   ;;  %v14282_v34 = vld [vmem:[#allocation5 + $0x890] sm:$0xff]  }
 0x145   : > { %v15450_v36 = vadd.f32 %v12546_v26, %v12524_v31  ;;  %v12526_v38 = vpop.f32.mrf.mxu0  ;;  %12839 = vmatpush3.bf16.msra.mxu1 %v14234_v27  ;;  %12818 = vmatprep.subr.bf16.mxu0 %v14235_v29  ;;  %v14274_v25 = vld [vmem:[#allocation5 + $0x8a0] sm:$0xff]   ;;  %v14275_v26 = vld [vmem:[#allocation5 + $0x858] sm:$0xff]   ;;  %v14279_v30 = vld [vmem:[#allocation5 + $0x850] sm:$0xff]  }
 0x146   : > { %v12548_v55 = vpop.f32.mrf.mxu1  ;;  %12840 = vmatprep.subr.bf16.mxu1 %v14237_v32  ;;  %v14277_v27 = vld [vmem:[#allocation5 + $0x8d8] sm:$0xff]   ;;  %v14281_v31 = vld [vmem:[#allocation5 + $0x8d0] sm:$0xff]   ;;  %v14287_v38 = vld [vmem:[#allocation5 + $0x840] sm:$0xff]  }
 0x147   : > { %v14278_v29 = vld [vmem:[#allocation5 + $0x898] sm:$0xff]   ;;  %v14280_v32 = vld [vmem:[#allocation5 + $0x810] sm:$0xff]   ;;  %v14284_v55 = vld [vmem:[#allocation5 + $0x808] sm:$0xff]  }
 0x148   : > { %12819 = vmatpush3.bf16.msra.mxu0 %v14236_v35  ;;  %v14283_v35 = vld [vmem:[#allocation5 + $0x848] sm:$0xff]  }
 0x149   : > { %12841 = vmatpush3.bf16.msra.mxu1 %v14238_v37  ;;  %12820 = vmatprep.subr.bf16.mxu0 %v14239_v39  ;;  %v14286_v37 = vld [vmem:[#allocation5 + $0x888] sm:$0xff]   ;;  %v15458_v39 = vld [vmem:[%s15387_s11 + $0x14] sm:$0xf] }
 0x14a   : > { %12842 = vmatprep.subr.bf16.mxu1 %v14241_v40  ;;  %v14289_v40 = vld [vmem:[#allocation5 + $0x8c0] sm:$0xff]  }
 0x14c   : > { %12821 = vmatpush3.bf16.msra.mxu0 %v14240_v41  ;;  %v15462_v41 = vcombine.low %v15440_v4, %v15458_v39 }
 0x14d   : > { %12843 = vmatpush3.bf16.msra.mxu1 %v14242_v43  ;;  %12822 = vmatprep.subr.bf16.mxu0 %v14243_v44  ;;  %v14288_v43 = vld [vmem:[#allocation5 + $0x800] sm:$0xff]  }
 0x14e   : > { %12844 = vmatprep.subr.bf16.mxu1 %v14245_v45  ;;  %v3103_v44 = vshrl.u32 %v15462_v41, 16  ;;  %v3105_v45 = vshll.u32 %v15462_v41, 16 }
 0x150   : > { %12823 = vmatpush3.bf16.msra.mxu0 %v14244_v46  ;;  %v14291_v46 = vld [vmem:[#allocation5 + $0x880] sm:$0xff]  }
 0x151   : > { %12845 = vmatpush3.bf16.msra.mxu1 %v14246_v47  ;;  %12824 = vmatprep.subr.bf16.mxu0 %v14247_v48  ;;  %v14292_v47 = vld [vmem:[#allocation5 + $0x978] sm:$0xff]   ;;  %v3107_v48 = vrot.slane %v3105_v45, 1  ;;  %v14330_v45 = vld [vmem:[#allocation5 + $0xaf0] sm:$0xff]  }
 0x152   : > { %12846 = vmatprep.subr.bf16.mxu1 %v14249_v49  ;;  %v14294_v49 = vld [vmem:[#allocation5 + $0x9f8] sm:$0xff]  }
 0x154   : > { %12825 = vmatpush3.bf16.msra.mxu0 %v14248_v50  ;;  %v14293_v50 = vld [vmem:[#allocation5 + $0x938] sm:$0xff]  }
 0x155   : > { %12847 = vmatpush3.bf16.msra.mxu1 %v14250_v51  ;;  %12826 = vmatprep.subr.bf16.mxu0 %v14251_v52  ;;  %v3108_v51 = vor.u32 %v3107_v48, %v3103_v44  ;;  %v14295_v52 = vld [vmem:[#allocation5 + $0x9b8] sm:$0xff]  }
 0x156   : > { %12848 = vmatprep.subr.bf16.mxu1 %v14253_v53  ;;  %v3313_v53 = vrot.slane %v15462_v41, 1 }
 0x158   : > { %12827 = vmatpush3.bf16.msra.mxu0 %v14252_v54  ;;  %v14296_v54 = vld [vmem:[#allocation5 + $0x970] sm:$0xff]  }
 0x159   : > { %12849 = vmatpush3.bf16.msra.mxu1 %v14254_v56  ;;  %12828 = vmatprep.subr.bf16.mxu0 %v14255_v57  ;;  %v3314_v56 = vrot.slane %v3108_v51, 1  ;;  %v14297_v57 = vld [vmem:[#allocation5 + $0x930] sm:$0xff]  }
 0x15a   : > { %12850 = vmatprep.subr.bf16.mxu1 %v14257_v58 }
 0x15c   : > { %12829 = vmatpush3.bf16.msra.mxu0 %v14256_v59 }
 0x15d   : > { %12851 = vmatpush3.bf16.msra.mxu1 %v14258_v60  ;;  %12858 = vmatprep.subr.bf16.mxu0 %v14259_v61  ;;  %v14298_v60 = vld [vmem:[#allocation5 + $0x9f0] sm:$0xff]   ;;  %v3488_v61 = vrot.slane %v3108_v51, 2 }
 0x15e   : > { %12880 = vmatprep.subr.bf16.mxu1 %v14261_v62  ;;  %v14299_v62 = vld [vmem:[#allocation5 + $0x9b0] sm:$0xff]  }
 0x15f   : > { %v12566_v7 = vpop.f32.mrf.mxu0  ;;  %2917 = vmatmul.mubr.bf16.vlgmr.msra.gmra.mxu0 %v2784_v63  ;;  %v3662_v63 = vrot.slane %v3108_v51, 3 }
 0x160   : > { %v12588_v3 = vpop.f32.mrf.mxu1  ;;  %12859 = vmatpush3.bf16.msra.mxu0 %v14260_v0  ;;  %3091 = vmatmul.mubr.bf16.vlgmr.msra.gmra.mxu1 %v2958_v1 }
 0x161   : > { %v12567_v12 = vpop.f32.mrf.mxu0  ;;  %12881 = vmatpush3.bf16.msra.mxu1 %v14262_v2  ;;  %12860 = vmatprep.subr.bf16.mxu0 %v14263_v5  ;;  %v14300_v2 = vld [vmem:[#allocation5 + $0x968] sm:$0xff]  }
 0x162   : > { %v12589_v8 = vpop.f32.mrf.mxu1  ;;  %v12568_v14 = vadd.f32 %v12567_v12, %v12566_v7  ;;  %12882 = vmatprep.subr.bf16.mxu1 %v14265_v33  ;;  %3271 = vmatprep.mubr.bf16.mxu0 %v3108_v51  ;;  %v14301_v33 = vld [vmem:[#allocation5 + $0x928] sm:$0xff]   ;;  %v14304_v12 = vld [vmem:[#allocation5 + $0x960] sm:$0xff]  }
 0x163   : > { %v12590_v10 = vadd.f32 %v12589_v8, %v12588_v3  ;;  %v12569_v16 = vpop.f32.mrf.mxu0  ;;  %3445 = vmatprep.mubr.bf16.mxu1 %v3314_v56 }
 0x164   : > { %v12591_v6 = vpop.f32.mrf.mxu1  ;;  %v815_v18 = vadd.f32 %v12568_v14, %v15450_v36  ;;  %12861 = vmatpush3.bf16.msra.mxu0 %v14264_v9  ;;  %v14285_v36 = vld [vmem:[#allocation5 + $0x8c8] sm:$0xff]   ;;  %v14305_v14 = vld [vmem:[#allocation5 + $0x920] sm:$0xff]  }
 0x165   : > { %v12570_v20 = vpop.f32.mrf.mxu0  ;;  %12883 = vmatpush3.bf16.msra.mxu1 %v14266_v11  ;;  %12862 = vmatprep.subr.bf16.mxu0 %v14267_v13  ;;  %v14307_v16 = vld [vmem:[#allocation5 + $0x9a0] sm:$0xff]  }
 0x166   : > { %v12592_v17 = vpop.f32.mrf.mxu1  ;;  %v15455_v22 = vadd.f32 %v12590_v10, %v815_v18  ;;  %12884 = vmatprep.subr.bf16.mxu1 %v14269_v15  ;;  %v14303_v10 = vld [vmem:[#allocation5 + $0x9a8] sm:$0xff]   ;;  %v14306_v15 = vld [vmem:[#allocation5 + $0x9e0] sm:$0xff]   ;;  %v14310_v18 = vld [vmem:[#allocation5 + $0x9d8] sm:$0xff]  }
 0x167   : > { %v14309_v17 = vld [vmem:[#allocation5 + $0x918] sm:$0xff]   ;;  %v14312_v20 = vld [vmem:[#allocation5 + $0x950] sm:$0xff]  }
 0x168   : > { %12863 = vmatpush3.bf16.msra.mxu0 %v14268_v42  ;;  %v14308_v42 = vld [vmem:[#allocation5 + $0x958] sm:$0xff]  }
 0x169   : > { %12885 = vmatpush3.bf16.msra.mxu1 %v14270_v19  ;;  %12864 = vmatprep.subr.bf16.mxu0 %v14271_v21  ;;  %v14311_v19 = vld [vmem:[#allocation5 + $0x998] sm:$0xff]   ;;  %v14313_v21 = vld [vmem:[#allocation5 + $0x910] sm:$0xff]  }
 0x16a   : > { %12886 = vmatprep.subr.bf16.mxu1 %v14273_v23  ;;  %v14315_v23 = vld [vmem:[#allocation5 + $0x990] sm:$0xff]  }
 0x16c   : > { %12865 = vmatpush3.bf16.msra.mxu0 %v14272_v24  ;;  %v14316_v24 = vld [vmem:[#allocation5 + $0x948] sm:$0xff]  }
 0x16d   : > { %12887 = vmatpush3.bf16.msra.mxu1 %v14274_v25  ;;  %12866 = vmatprep.subr.bf16.mxu0 %v14275_v26  ;;  %v14317_v25 = vld [vmem:[#allocation5 + $0x908] sm:$0xff]  }
 0x16e   : > { %12888 = vmatprep.subr.bf16.mxu1 %v14277_v27  ;;  %v14318_v26 = vld [vmem:[#allocation5 + $0x9c8] sm:$0xff]  }
 0x16f   : > { %v14319_v27 = vld [vmem:[#allocation5 + $0x988] sm:$0xff]  }
 0x170   : > { %12867 = vmatpush3.bf16.msra.mxu0 %v14276_v28  ;;  %v14320_v28 = vld [vmem:[#allocation5 + $0x940] sm:$0xff]  }
 0x171   : > { %12889 = vmatpush3.bf16.msra.mxu1 %v14278_v29  ;;  %12868 = vmatprep.subr.bf16.mxu0 %v14279_v30  ;;  %v14321_v29 = vld [vmem:[#allocation5 + $0x900] sm:$0xff]  }
 0x172   : > { %12890 = vmatprep.subr.bf16.mxu1 %v14281_v31  ;;  %v14322_v30 = vld [vmem:[#allocation5 + $0x9c0] sm:$0xff]  }
 0x173   : > { %v14323_v31 = vld [vmem:[#allocation5 + $0x980] sm:$0xff]  }
 0x174   : > { %12869 = vmatpush3.bf16.msra.mxu0 %v14280_v32  ;;  %v14324_v32 = vld [vmem:[#allocation5 + $0xa78] sm:$0xff]  }
 0x175   : > { %12891 = vmatpush3.bf16.msra.mxu1 %v14282_v34  ;;  %12870 = vmatprep.subr.bf16.mxu0 %v14283_v35  ;;  %v14325_v34 = vld [vmem:[#allocation5 + $0xa38] sm:$0xff]   ;;  %v3487_v35 = vrot.slane %v15462_v41, 2 }
 0x176   : > { %12892 = vmatprep.subr.bf16.mxu1 %v14285_v36  ;;  %v14327_v36 = vld [vmem:[#allocation5 + $0xab8] sm:$0xff]  }
 0x178   : > { %12871 = vmatpush3.bf16.msra.mxu0 %v14284_v55  ;;  %v14326_v55 = vld [vmem:[#allocation5 + $0xaf8] sm:$0xff]  }
 0x179   : > { %12893 = vmatpush3.bf16.msra.mxu1 %v14286_v37  ;;  %12872 = vmatprep.subr.bf16.mxu0 %v14287_v38  ;;  %v3661_v37 = vrot.slane %v15462_v41, 3  ;;  %v14328_v38 = vld [vmem:[#allocation5 + $0xa70] sm:$0xff]  }
 0x17a   : > { %12894 = vmatprep.subr.bf16.mxu1 %v14289_v40  ;;  %v14329_v40 = vld [vmem:[#allocation5 + $0xa30] sm:$0xff]  }
 0x17c   : > { %12873 = vmatpush3.bf16.msra.mxu0 %v14288_v43 }
 0x17d   : > { %12895 = vmatpush3.bf16.msra.mxu1 %v14291_v46  ;;  %12902 = vmatprep.subr.bf16.mxu0 %v14292_v47  ;;  %v14331_v46 = vld [vmem:[#allocation5 + $0xab0] sm:$0xff]  }
 0x17e   : > { %12924 = vmatprep.subr.bf16.mxu1 %v14294_v49  ;;  %v14332_v49 = vld [vmem:[#allocation5 + $0xa68] sm:$0xff]  }
 0x17f   : > { %v12610_v58 = vpop.f32.mrf.mxu0  ;;  %3272 = vmatmul.mubr.bf16.vlgmr.msra.gmra.mxu0 %v15440_v4  ;;  %v14302_v4 = vld [vmem:[#allocation5 + $0x9e8] sm:$0xff]  }
 0x180   : > { %v12632_v59 = vpop.f32.mrf.mxu1  ;;  %12903 = vmatpush3.bf16.msra.mxu0 %v14293_v50  ;;  %3446 = vmatmul.mubr.bf16.vlgmr.msra.gmra.mxu1 %v3313_v53  ;;  %v14334_v53 = vld [vmem:[#allocation5 + $0xae8] sm:$0xff]  }
 0x181   : > { %v12611_v0 = vpop.f32.mrf.mxu0  ;;  %12904 = vmatprep.subr.bf16.mxu0 %v14296_v54  ;;  %12925 = vmatpush3.bf16.msra.mxu1 %v14295_v52  ;;  %v14333_v52 = vld [vmem:[#allocation5 + $0xa28] sm:$0xff]  }
 0x182   : > { %v12633_v1 = vpop.f32.mrf.mxu1  ;;  %v12612_v3 = vadd.f32 %v12611_v0, %v12610_v58  ;;  %3619 = vmatprep.mubr.bf16.mxu0 %v3488_v61  ;;  %12926 = vmatprep.subr.bf16.mxu1 %v14298_v60  ;;  %v14339_v0 = vld [vmem:[#allocation5 + $0xaa0] sm:$0xff]  }
 0x183   : > { %v12634_v5 = vadd.f32 %v12633_v1, %v12632_v59  ;;  %v12613_v7 = vpop.f32.mrf.mxu0  ;;  %3793 = vmatprep.mubr.bf16.mxu1 %v3662_v63  ;;  %v14336_v59 = vld [vmem:[#allocation5 + $0xa60] sm:$0xff]   ;;  %v14340_v1 = vld [vmem:[#allocation5 + $0xa58] sm:$0xff]  }
 0x184   : > { %v12635_v8 = vpop.f32.mrf.mxu1  ;;  %v1170_v9 = vadd.f32 %v12612_v3, %v15455_v22  ;;  %12905 = vmatpush3.bf16.msra.mxu0 %v14297_v57  ;;  %v14314_v22 = vld [vmem:[#allocation5 + $0x9d0] sm:$0xff]   ;;  %v14335_v57 = vld [vmem:[#allocation5 + $0xaa8] sm:$0xff]   ;;  %v14338_v63 = vld [vmem:[#allocation5 + $0xae0] sm:$0xff]  }
 0x185   : > { %v12614_v11 = vpop.f32.mrf.mxu0  ;;  %12906 = vmatprep.subr.bf16.mxu0 %v14300_v2  ;;  %12927 = vmatpush3.bf16.msra.mxu1 %v14299_v62  ;;  %v14337_v62 = vld [vmem:[#allocation5 + $0xa20] sm:$0xff]   ;;  %v14341_v2 = vld [vmem:[#allocation5 + $0xa18] sm:$0xff]   ;;  %v14345_v7 = vld [vmem:[#allocation5 + $0xa10] sm:$0xff]  }
 0x186   : > { %v12636_v13 = vpop.f32.mrf.mxu1  ;;  %v15469_v6 = vadd.f32 %v12634_v5, %v1170_v9  ;;  %12928 = vmatprep.subr.bf16.mxu1 %v14302_v4  ;;  %v14342_v3 = vld [vmem:[#allocation5 + $0xad8] sm:$0xff]   ;;  %v14346_v4 = vld [vmem:[#allocation5 + $0xad0] sm:$0xff]   ;;  %v14348_v9 = vld [vmem:[#allocation5 + $0xa48] sm:$0xff]  }
 0x187   : > { %v14343_v5 = vld [vmem:[#allocation5 + $0xa98] sm:$0xff]   ;;  %v14347_v8 = vld [vmem:[#allocation5 + $0xa90] sm:$0xff]   ;;  %v14350_v11 = vld [vmem:[#allocation5 + $0xac8] sm:$0xff]  }
 0x188   : > { %12907 = vmatpush3.bf16.msra.mxu0 %v14301_v33  ;;  %v14344_v33 = vld [vmem:[#allocation5 + $0xa50] sm:$0xff]   ;;  %v14352_v13 = vld [vmem:[#allocation5 + $0xa40] sm:$0xff]  }
 0x189   : > { %12908 = vmatprep.subr.bf16.mxu0 %v14304_v12  ;;  %12929 = vmatpush3.bf16.msra.mxu1 %v14303_v10  ;;  %v14349_v10 = vld [vmem:[#allocation5 + $0xa08] sm:$0xff]  }
 0x18a   : > { %12930 = vmatprep.subr.bf16.mxu1 %v14306_v15  ;;  %v14351_v12 = vld [vmem:[#allocation5 + $0xa88] sm:$0xff]  }
 0x18c   : > { %12909 = vmatpush3.bf16.msra.mxu0 %v14305_v14  ;;  %v14353_v14 = vld [vmem:[#allocation5 + $0xa00] sm:$0xff]  }
 0x18d   : > { %12910 = vmatprep.subr.bf16.mxu0 %v14308_v42  ;;  %12931 = vmatpush3.bf16.msra.mxu1 %v14307_v16  ;;  %v14354_v16 = vld [vmem:[#allocation5 + $0xac0] sm:$0xff]  }
 0x18e   : > { %12932 = vmatprep.subr.bf16.mxu1 %v14310_v18  ;;  %v14357_v18 = vld [vmem:[#allocation5 + $0xb78] sm:$0xff]  }
 0x190   : > { %12911 = vmatpush3.bf16.msra.mxu0 %v14309_v17 }
 0x191   : > { %12912 = vmatprep.subr.bf16.mxu0 %v14312_v20  ;;  %12933 = vmatpush3.bf16.msra.mxu1 %v14311_v19  ;;  %v14356_v20 = vld [vmem:[#allocation5 + $0xa80] sm:$0xff]  }
 0x192   : > { %12934 = vmatprep.subr.bf16.mxu1 %v14314_v22 }
 0x194   : > { %12913 = vmatpush3.bf16.msra.mxu0 %v14313_v21  ;;  %v14359_v21 = vld [vmem:[#allocation5 + $0xbf8] sm:$0xff]  }
 0x195   : > { %12914 = vmatprep.subr.bf16.mxu0 %v14316_v24  ;;  %12935 = vmatpush3.bf16.msra.mxu1 %v14315_v23  ;;  %v14358_v23 = vld [vmem:[#allocation5 + $0xb38] sm:$0xff]  }
 0x196   : > { %12936 = vmatprep.subr.bf16.mxu1 %v14318_v26 }
 0x198   : > { %12915 = vmatpush3.bf16.msra.mxu0 %v14317_v25  ;;  %v14361_v25 = vld [vmem:[#allocation5 + $0xb70] sm:$0xff]  }
 0x199   : > { %12916 = vmatprep.subr.bf16.mxu0 %v14320_v28  ;;  %12937 = vmatpush3.bf16.msra.mxu1 %v14319_v27  ;;  %v14360_v27 = vld [vmem:[#allocation5 + $0xbb8] sm:$0xff]  }
 0x19a   : > { %12938 = vmatprep.subr.bf16.mxu1 %v14322_v30 }
 0x19c   : > { %12917 = vmatpush3.bf16.msra.mxu0 %v14321_v29  ;;  %v14363_v29 = vld [vmem:[#allocation5 + $0xbf0] sm:$0xff]  }
 0x19d   : > { %12946 = vmatprep.subr.bf16.mxu0 %v14324_v32  ;;  %12939 = vmatpush3.bf16.msra.mxu1 %v14323_v31  ;;  %v14362_v32 = vld [vmem:[#allocation5 + $0xb30] sm:$0xff]  }
 0x19e   : > { %12968 = vmatprep.subr.bf16.mxu1 %v14326_v55  ;;  %v14365_v55 = vld [vmem:[#allocation5 + $0xb68] sm:$0xff]  }
 0x19f   : > { %v12654_v43 = vpop.f32.mrf.mxu0  ;;  %3620 = vmatmul.mubr.bf16.vlgmr.msra.gmra.mxu0 %v3487_v35 }
 0x1a0   : > { %v12676_v44 = vpop.f32.mrf.mxu1  ;;  %12947 = vmatpush3.bf16.msra.mxu0 %v14325_v34  ;;  %3794 = vmatmul.mubr.bf16.vlgmr.msra.gmra.mxu1 %v3661_v37 }
 0x1a1   : > { %v12655_v47 = vpop.f32.mrf.mxu0  ;;  %12948 = vmatprep.subr.bf16.mxu0 %v14328_v38  ;;  %12969 = vmatpush3.bf16.msra.mxu1 %v14327_v36  ;;  %v14364_v38 = vld [vmem:[#allocation5 + $0xbb0] sm:$0xff]  }
 0x1a2   : > { %v12677_v48 = vpop.f32.mrf.mxu1  ;;  %v12656_v50 = vadd.f32 %v12655_v47, %v12654_v43  ;;  %12970 = vmatprep.subr.bf16.mxu1 %v14330_v45  ;;  %v14366_v45 = vld [vmem:[#allocation5 + $0xb28] sm:$0xff]  }
 0x1a3   : > { %v12678_v51 = vadd.f32 %v12677_v48, %v12676_v44  ;;  %v12657_v41 = vpop.f32.mrf.mxu0  ;;  %v14369_v48 = vld [vmem:[#allocation5 + $0xb60] sm:$0xff]  }
 0x1a4   : > { %v12679_v54 = vpop.f32.mrf.mxu1  ;;  %v1518_v56 = vadd.f32 %v12656_v50, %v15469_v6  ;;  %12949 = vmatpush3.bf16.msra.mxu0 %v14329_v40  ;;  %v15477_v6 = vld [vmem:[%s15387_s11 + $0x18] sm:$0xf]  ;;  %v14370_v41 = vld [vmem:[#allocation5 + $0xb20] sm:$0xff]  }
 0x1a5   : > { %v12658_v58 = vpop.f32.mrf.mxu0  ;;  %12950 = vmatprep.subr.bf16.mxu0 %v14332_v49  ;;  %12971 = vmatpush3.bf16.msra.mxu1 %v14331_v46  ;;  %v15481_v15 = vcombine.low %v15458_v39, %v15477_v6  ;;  %v14368_v50 = vld [vmem:[#allocation5 + $0xba8] sm:$0xff]   ;;  %v14372_v54 = vld [vmem:[#allocation5 + $0xba0] sm:$0xff]  }
 0x1a6   : > { %v12680_v60 = vpop.f32.mrf.mxu1  ;;  %v15474_v61 = vadd.f32 %v12678_v51, %v1518_v56  ;;  %12972 = vmatprep.subr.bf16.mxu1 %v14334_v53  ;;  %v14373_v53 = vld [vmem:[#allocation5 + $0xb58] sm:$0xff]   ;;  %v14377_v58 = vld [vmem:[#allocation5 + $0xb50] sm:$0xff]  }
 0x1a7   : > { %v3806_v42 = vshrl.u32 %v15481_v15, 16  ;;  %v3808_v17 = vshll.u32 %v15481_v15, 16  ;;  %v4016_v24 = vrot.slane %v15481_v15, 1  ;;  %v14375_v56 = vld [vmem:[#allocation5 + $0xbd8] sm:$0xff]   ;;  %v14379_v60 = vld [vmem:[#allocation5 + $0xbd0] sm:$0xff]  }
 0x1a8   : > { %12951 = vmatpush3.bf16.msra.mxu0 %v14333_v52  ;;  %v14371_v52 = vld [vmem:[#allocation5 + $0xbe0] sm:$0xff]  }
 0x1a9   : > { %12952 = vmatprep.subr.bf16.mxu0 %v14336_v59  ;;  %12973 = vmatpush3.bf16.msra.mxu1 %v14335_v57  ;;  %v3810_v19 = vrot.slane %v3808_v17, 1  ;;  %v14374_v57 = vld [vmem:[#allocation5 + $0xb18] sm:$0xff]   ;;  %v14394_v17 = vld [vmem:[#allocation5 + $0xc30] sm:$0xff]  }
 0x1aa   : > { %12974 = vmatprep.subr.bf16.mxu1 %v14338_v63  ;;  %v14376_v59 = vld [vmem:[#allocation5 + $0xb98] sm:$0xff]   ;;  %v14380_v63 = vld [vmem:[#allocation5 + $0xb90] sm:$0xff]  }
 0x1ab   : > { %v3811_v22 = vor.u32 %v3810_v19, %v3806_v42  ;;  %v14397_v19 = vld [vmem:[#allocation5 + $0xc68] sm:$0xff]  }
 0x1ac   : > { %12953 = vmatpush3.bf16.msra.mxu0 %v14337_v62  ;;  %v14381_v62 = vld [vmem:[#allocation5 + $0xb48] sm:$0xff]  }
 0x1ad   : > { %12954 = vmatprep.subr.bf16.mxu0 %v14340_v1  ;;  %12975 = vmatpush3.bf16.msra.mxu1 %v14339_v0  ;;  %v4017_v26 = vrot.slane %v3811_v22, 1  ;;  %v4191_v30 = vrot.slane %v3811_v22, 2  ;;  %v4365_v34 = vrot.slane %v3811_v22, 3  ;;  %v14383_v0 = vld [vmem:[#allocation5 + $0xbc8] sm:$0xff]  }
 0x1ae   : > { %12976 = vmatprep.subr.bf16.mxu1 %v14342_v3  ;;  %3974 = vmatprep.mubr.bf16.mxu0 %v3811_v22  ;;  %v14382_v1 = vld [vmem:[#allocation5 + $0xb08] sm:$0xff]   ;;  %v14396_v22 = vld [vmem:[#allocation5 + $0xcb0] sm:$0xff]  }
 0x1af   : > { %4148 = vmatprep.mubr.bf16.mxu1 %v4017_v26  ;;  %v14384_v3 = vld [vmem:[#allocation5 + $0xb88] sm:$0xff]  }
 0x1b0   : > { %12955 = vmatpush3.bf16.msra.mxu0 %v14341_v2  ;;  %v14385_v2 = vld [vmem:[#allocation5 + $0xb40] sm:$0xff]   ;;  %v14398_v26 = vld [vmem:[#allocation5 + $0xc28] sm:$0xff]  }
 0x1b1   : > { %12956 = vmatprep.subr.bf16.mxu0 %v14344_v33  ;;  %12977 = vmatpush3.bf16.msra.mxu1 %v14343_v5  ;;  %v14387_v5 = vld [vmem:[#allocation5 + $0xbc0] sm:$0xff]  }
 0x1b2   : > { %12978 = vmatprep.subr.bf16.mxu1 %v14346_v4  ;;  %v14386_v33 = vld [vmem:[#allocation5 + $0xb00] sm:$0xff]  }
 0x1b3   : > { %v14388_v4 = vld [vmem:[#allocation5 + $0xb80] sm:$0xff]  }
 0x1b4   : > { %12957 = vmatpush3.bf16.msra.mxu0 %v14345_v7  ;;  %v14389_v7 = vld [vmem:[#allocation5 + $0xc78] sm:$0xff]  }
 0x1b5   : > { %12958 = vmatprep.subr.bf16.mxu0 %v14348_v9  ;;  %12979 = vmatpush3.bf16.msra.mxu1 %v14347_v8  ;;  %v4190_v8 = vrot.slane %v15481_v15, 2  ;;  %v14391_v9 = vld [vmem:[#allocation5 + $0xcf8] sm:$0xff]  }
 0x1b6   : > { %12980 = vmatprep.subr.bf16.mxu1 %v14350_v11  ;;  %v4364_v11 = vrot.slane %v15481_v15, 3 }
 0x1b8   : > { %12959 = vmatpush3.bf16.msra.mxu0 %v14349_v10  ;;  %v14390_v10 = vld [vmem:[#allocation5 + $0xc38] sm:$0xff]  }
 0x1b9   : > { %12960 = vmatprep.subr.bf16.mxu0 %v14352_v13  ;;  %12981 = vmatpush3.bf16.msra.mxu1 %v14351_v12  ;;  %v14393_v12 = vld [vmem:[#allocation5 + $0xc70] sm:$0xff]   ;;  %v14392_v13 = vld [vmem:[#allocation5 + $0xcb8] sm:$0xff]  }
 0x1ba   : > { %12982 = vmatprep.subr.bf16.mxu1 %v14354_v16  ;;  %v14395_v16 = vld [vmem:[#allocation5 + $0xcf0] sm:$0xff]  }
 0x1bc   : > { %12961 = vmatpush3.bf16.msra.mxu0 %v14353_v14 }
 0x1bd   : > { %12990 = vmatprep.subr.bf16.mxu0 %v14357_v18  ;;  %12983 = vmatpush3.bf16.msra.mxu1 %v14356_v20 }
 0x1be   : > { %13012 = vmatprep.subr.bf16.mxu1 %v14359_v21 }
 0x1bf   : > { %v12698_v28 = vpop.f32.mrf.mxu0  ;;  %3975 = vmatmul.mubr.bf16.vlgmr.msra.gmra.mxu0 %v15458_v39  ;;  %v14367_v39 = vld [vmem:[#allocation5 + $0xbe8] sm:$0xff]  }
 0x1c0   : > { %12991 = vmatpush3.bf16.msra.mxu0 %v14358_v23  ;;  %v12720_v31 = vpop.f32.mrf.mxu1  ;;  %4149 = vmatmul.mubr.bf16.vlgmr.msra.gmra.mxu1 %v4016_v24  ;;  %v14399_v24 = vld [vmem:[#allocation5 + $0xce8] sm:$0xff]  }
 0x1c1   : > { %v12699_v35 = vpop.f32.mrf.mxu0  ;;  %12992 = vmatprep.subr.bf16.mxu0 %v14361_v25  ;;  %13013 = vmatpush3.bf16.msra.mxu1 %v14360_v27 }
 0x1c2   : > { %v12700_v36 = vadd.f32 %v12699_v35, %v12698_v28  ;;  %v12721_v37 = vpop.f32.mrf.mxu1  ;;  %4322 = vmatprep.mubr.bf16.mxu0 %v4191_v30  ;;  %13014 = vmatprep.subr.bf16.mxu1 %v14363_v29  ;;  %v14401_v29 = vld [vmem:[#allocation5 + $0xc60] sm:$0xff]  }
 0x1c3   : > { %v12701_v40 = vpop.f32.mrf.mxu0  ;;  %v12722_v43 = vadd.f32 %v12721_v37, %v12720_v31  ;;  %4496 = vmatprep.mubr.bf16.mxu1 %v4365_v34  ;;  %v14400_v31 = vld [vmem:[#allocation5 + $0xca8] sm:$0xff]   ;;  %v14403_v34 = vld [vmem:[#allocation5 + $0xce0] sm:$0xff]   ;;  %v14407_v37 = vld [vmem:[#allocation5 + $0xcd8] sm:$0xff]  }
 0x1c4   : > { %v1873_v44 = vadd.f32 %v12700_v36, %v15474_v61  ;;  %12993 = vmatpush3.bf16.msra.mxu0 %v14362_v32  ;;  %v12723_v46 = vpop.f32.mrf.mxu1  ;;  %v14378_v61 = vld [vmem:[#allocation5 + $0xb10] sm:$0xff]   ;;  %v14402_v35 = vld [vmem:[#allocation5 + $0xc20] sm:$0xff]  }
 0x1c5   : > { %v12702_v47 = vpop.f32.mrf.mxu0  ;;  %12994 = vmatprep.subr.bf16.mxu0 %v14365_v55  ;;  %13015 = vmatpush3.bf16.msra.mxu1 %v14364_v38  ;;  %v14405_v55 = vld [vmem:[#allocation5 + $0xc58] sm:$0xff]   ;;  %v14404_v36 = vld [vmem:[#allocation5 + $0xca0] sm:$0xff]   ;;  %v14409_v40 = vld [vmem:[#allocation5 + $0xc50] sm:$0xff]  }
 0x1c6   : > { %v15488_v49 = vadd.f32 %v12722_v43, %v1873_v44  ;;  %v12724_v51 = vpop.f32.mrf.mxu1  ;;  %13016 = vmatprep.subr.bf16.mxu1 %v14367_v39  ;;  %v14406_v38 = vld [vmem:[#allocation5 + $0xc18] sm:$0xff]   ;;  %v14411_v39 = vld [vmem:[#allocation5 + $0xcd0] sm:$0xff]   ;;  %v14415_v47 = vld [vmem:[#allocation5 + $0xcc8] sm:$0xff]  }
 0x1c7   : > { %v14408_v43 = vld [vmem:[#allocation5 + $0xc98] sm:$0xff]   ;;  %v14410_v44 = vld [vmem:[#allocation5 + $0xc10] sm:$0xff]  }
 0x1c8   : > { %12995 = vmatpush3.bf16.msra.mxu0 %v14366_v45  ;;  %v14413_v45 = vld [vmem:[#allocation5 + $0xc48] sm:$0xff]   ;;  %v14412_v46 = vld [vmem:[#allocation5 + $0xc90] sm:$0xff]  }
 0x1c9   : > { %12996 = vmatprep.subr.bf16.mxu0 %v14369_v48  ;;  %13017 = vmatpush3.bf16.msra.mxu1 %v14368_v50  ;;  %v14414_v48 = vld [vmem:[#allocation5 + $0xc08] sm:$0xff]  }
 0x1ca   : > { %13018 = vmatprep.subr.bf16.mxu1 %v14371_v52  ;;  %v14416_v50 = vld [vmem:[#allocation5 + $0xc88] sm:$0xff]   ;;  %v14419_v52 = vld [vmem:[#allocation5 + $0xcc0] sm:$0xff]  }
 0x1cb   : > { %v15496_v51 = vld [vmem:[%s15387_s11 + $0x1c] sm:$0xf] }
 0x1cc   : > { %12997 = vmatpush3.bf16.msra.mxu0 %v14370_v41  ;;  %v15500_v41 = vcombine.low %v15477_v6, %v15496_v51 }
 0x1cd   : > { %12998 = vmatprep.subr.bf16.mxu0 %v14373_v53  ;;  %13019 = vmatpush3.bf16.msra.mxu1 %v14372_v54  ;;  %v14418_v53 = vld [vmem:[#allocation5 + $0xc00] sm:$0xff]  }
 0x1ce   : > { %13020 = vmatprep.subr.bf16.mxu1 %v14375_v56  ;;  %v4509_v54 = vshrl.u32 %v15500_v41, 16  ;;  %v4511_v56 = vshll.u32 %v15500_v41, 16 }
 0x1d0   : > { %12999 = vmatpush3.bf16.msra.mxu0 %v14374_v57  ;;  %v14422_v57 = vld [vmem:[#allocation5 + $0xd78] sm:$0xff]  }
 0x1d1   : > { %13000 = vmatprep.subr.bf16.mxu0 %v14377_v58  ;;  %13021 = vmatpush3.bf16.msra.mxu1 %v14376_v59  ;;  %v14421_v58 = vld [vmem:[#allocation5 + $0xc80] sm:$0xff]   ;;  %v4513_v59 = vrot.slane %v4511_v56, 1  ;;  %v14460_v56 = vld [vmem:[#allocation5 + $0xef0] sm:$0xff]  }
 0x1d2   : > { %13022 = vmatprep.subr.bf16.mxu1 %v14379_v60  ;;  %v14424_v60 = vld [vmem:[#allocation5 + $0xdf8] sm:$0xff]  }
 0x1d4   : > { %13001 = vmatpush3.bf16.msra.mxu0 %v14378_v61  ;;  %v14423_v61 = vld [vmem:[#allocation5 + $0xd38] sm:$0xff]  }
 0x1d5   : > { %13002 = vmatprep.subr.bf16.mxu0 %v14381_v62  ;;  %13023 = vmatpush3.bf16.msra.mxu1 %v14380_v63  ;;  %v4514_v62 = vor.u32 %v4513_v59, %v4509_v54  ;;  %v14425_v63 = vld [vmem:[#allocation5 + $0xdb8] sm:$0xff]  }
 0x1d6   : > { %13024 = vmatprep.subr.bf16.mxu1 %v14383_v0  ;;  %v4719_v0 = vrot.slane %v15500_v41, 1 }
 0x1d8   : > { %13003 = vmatpush3.bf16.msra.mxu0 %v14382_v1  ;;  %v14426_v1 = vld [vmem:[#allocation5 + $0xd70] sm:$0xff]  }
 0x1d9   : > { %13004 = vmatprep.subr.bf16.mxu0 %v14385_v2  ;;  %13025 = vmatpush3.bf16.msra.mxu1 %v14384_v3  ;;  %v4720_v3 = vrot.slane %v4514_v62, 1 }
 0x1da   : > { %13026 = vmatprep.subr.bf16.mxu1 %v14387_v5  ;;  %v14427_v5 = vld [vmem:[#allocation5 + $0xd30] sm:$0xff]  }
 0x1dc   : > { %13005 = vmatpush3.bf16.msra.mxu0 %v14386_v33 }
 0x1dd   : > { %13034 = vmatprep.subr.bf16.mxu0 %v14389_v7  ;;  %13027 = vmatpush3.bf16.msra.mxu1 %v14388_v4  ;;  %v14428_v7 = vld [vmem:[#allocation5 + $0xdf0] sm:$0xff]   ;;  %v4894_v4 = vrot.slane %v4514_v62, 2 }
 0x1de   : > { %13056 = vmatprep.subr.bf16.mxu1 %v14391_v9  ;;  %v14429_v9 = vld [vmem:[#allocation5 + $0xdb0] sm:$0xff]  }
 0x1df   : > { %v12742_v14 = vpop.f32.mrf.mxu0  ;;  %4323 = vmatmul.mubr.bf16.vlgmr.msra.gmra.mxu0 %v4190_v8 }
 0x1e0   : > { %13035 = vmatpush3.bf16.msra.mxu0 %v14390_v10  ;;  %v12764_v42 = vpop.f32.mrf.mxu1  ;;  %4497 = vmatmul.mubr.bf16.vlgmr.msra.gmra.mxu1 %v4364_v11  ;;  %v5068_v10 = vrot.slane %v4514_v62, 3 }
 0x1e1   : > { %v12743_v18 = vpop.f32.mrf.mxu0  ;;  %13036 = vmatprep.subr.bf16.mxu0 %v14393_v12  ;;  %13057 = vmatpush3.bf16.msra.mxu1 %v14392_v13  ;;  %v14430_v13 = vld [vmem:[#allocation5 + $0xd68] sm:$0xff]  }
 0x1e2   : > { %v12744_v20 = vadd.f32 %v12743_v18, %v12742_v14  ;;  %v12765_v21 = vpop.f32.mrf.mxu1  ;;  %13058 = vmatprep.subr.bf16.mxu1 %v14395_v16  ;;  %4677 = vmatprep.mubr.bf16.mxu0 %v4514_v62 }
 0x1e3   : > { %v12745_v23 = vpop.f32.mrf.mxu0  ;;  %v12766_v15 = vadd.f32 %v12765_v21, %v12764_v42  ;;  %4851 = vmatprep.mubr.bf16.mxu1 %v4720_v3  ;;  %v14431_v42 = vld [vmem:[#allocation5 + $0xd28] sm:$0xff]  }
 0x1e4   : > { %v2221_v25 = vadd.f32 %v12744_v20, %v15488_v49  ;;  %13037 = vmatpush3.bf16.msra.mxu0 %v14394_v17  ;;  %v12767_v27 = vpop.f32.mrf.mxu1  ;;  %v14417_v49 = vld [vmem:[#allocation5 + $0xc40] sm:$0xff]   ;;  %v14432_v17 = vld [vmem:[#allocation5 + $0xde8] sm:$0xff]  }
 0x1e5   : > { %v12746_v28 = vpop.f32.mrf.mxu0  ;;  %13038 = vmatprep.subr.bf16.mxu0 %v14397_v19  ;;  %13059 = vmatpush3.bf16.msra.mxu1 %v14396_v22  ;;  %v14433_v20 = vld [vmem:[#allocation5 + $0xda8] sm:$0xff]   ;;  %v14434_v22 = vld [vmem:[#allocation5 + $0xd60] sm:$0xff]   ;;  %v14439_v27 = vld [vmem:[#allocation5 + $0xd18] sm:$0xff]  }
 0x1e6   : > { %v15493_v30 = vadd.f32 %v12766_v15, %v2221_v25  ;;  %v12768_v32 = vpop.f32.mrf.mxu1  ;;  %13060 = vmatprep.subr.bf16.mxu1 %v14399_v24  ;;  %v14435_v15 = vld [vmem:[#allocation5 + $0xd20] sm:$0xff]   ;;  %v14440_v28 = vld [vmem:[#allocation5 + $0xdd8] sm:$0xff]  }
 0x1e7   : > { %v14436_v24 = vld [vmem:[#allocation5 + $0xde0] sm:$0xff]   ;;  %v14444_v32 = vld [vmem:[#allocation5 + $0xdd0] sm:$0xff]  }
 0x1e8   : > { %13039 = vmatpush3.bf16.msra.mxu0 %v14398_v26  ;;  %v14437_v25 = vld [vmem:[#allocation5 + $0xda0] sm:$0xff]   ;;  %v14438_v26 = vld [vmem:[#allocation5 + $0xd58] sm:$0xff]  }
 0x1e9   : > { %13040 = vmatprep.subr.bf16.mxu0 %v14401_v29  ;;  %13061 = vmatpush3.bf16.msra.mxu1 %v14400_v31  ;;  %v14441_v29 = vld [vmem:[#allocation5 + $0xd98] sm:$0xff]   ;;  %v14443_v31 = vld [vmem:[#allocation5 + $0xd10] sm:$0xff]  }
 0x1ea   : > { %13062 = vmatprep.subr.bf16.mxu1 %v14403_v34  ;;  %v14445_v34 = vld [vmem:[#allocation5 + $0xd90] sm:$0xff]  }
 0x1ec   : > { %13041 = vmatpush3.bf16.msra.mxu0 %v14402_v35  ;;  %v14446_v35 = vld [vmem:[#allocation5 + $0xd48] sm:$0xff]  }
 0x1ed   : > { %13042 = vmatprep.subr.bf16.mxu0 %v14405_v55  ;;  %13063 = vmatpush3.bf16.msra.mxu1 %v14404_v36  ;;  %v14447_v55 = vld [vmem:[#allocation5 + $0xd08] sm:$0xff]  }
 0x1ee   : > { %13064 = vmatprep.subr.bf16.mxu1 %v14407_v37  ;;  %v14448_v36 = vld [vmem:[#allocation5 + $0xdc8] sm:$0xff]  }
 0x1ef   : > { %v14449_v37 = vld [vmem:[#allocation5 + $0xd88] sm:$0xff]  }
 0x1f0   : > { %13043 = vmatpush3.bf16.msra.mxu0 %v14406_v38  ;;  %v14450_v38 = vld [vmem:[#allocation5 + $0xd40] sm:$0xff]  }
 0x1f1   : > { %13044 = vmatprep.subr.bf16.mxu0 %v14409_v40  ;;  %13065 = vmatpush3.bf16.msra.mxu1 %v14408_v43  ;;  %v14451_v40 = vld [vmem:[#allocation5 + $0xd00] sm:$0xff]  }
 0x1f2   : > { %13066 = vmatprep.subr.bf16.mxu1 %v14411_v39  ;;  %v14452_v43 = vld [vmem:[#allocation5 + $0xdc0] sm:$0xff]  }
 0x1f3   : > { %v14453_v39 = vld [vmem:[#allocation5 + $0xd80] sm:$0xff]  }
 0x1f4   : > { %13045 = vmatpush3.bf16.msra.mxu0 %v14410_v44  ;;  %v14454_v44 = vld [vmem:[#allocation5 + $0xe78] sm:$0xff]  }
 0x1f5   : > { %13046 = vmatprep.subr.bf16.mxu0 %v14413_v45  ;;  %13067 = vmatpush3.bf16.msra.mxu1 %v14412_v46  ;;  %v14455_v45 = vld [vmem:[#allocation5 + $0xe38] sm:$0xff]   ;;  %v4893_v46 = vrot.slane %v15500_v41, 2 }
 0x1f6   : > { %13068 = vmatprep.subr.bf16.mxu1 %v14415_v47  ;;  %v14456_v47 = vld [vmem:[#allocation5 + $0xef8] sm:$0xff]  }
 0x1f8   : > { %13047 = vmatpush3.bf16.msra.mxu0 %v14414_v48  ;;  %v14457_v48 = vld [vmem:[#allocation5 + $0xeb8] sm:$0xff]  }
 0x1f9   : > { %13048 = vmatprep.subr.bf16.mxu0 %v14417_v49  ;;  %13069 = vmatpush3.bf16.msra.mxu1 %v14416_v50  ;;  %v5067_v49 = vrot.slane %v15500_v41, 3  ;;  %v14458_v50 = vld [vmem:[#allocation5 + $0xe70] sm:$0xff]   ;;  %v14463_v41 = vld [vmem:[#allocation5 + $0xe28] sm:$0xff]  }
 0x1fa   : > { %13070 = vmatprep.subr.bf16.mxu1 %v14419_v52 }
 0x1fc   : > { %13049 = vmatpush3.bf16.msra.mxu0 %v14418_v53  ;;  %v14459_v53 = vld [vmem:[#allocation5 + $0xe30] sm:$0xff]  }
 0x1fd   : > { %13078 = vmatprep.subr.bf16.mxu0 %v14422_v57  ;;  %13071 = vmatpush3.bf16.msra.mxu1 %v14421_v58  ;;  %v14461_v58 = vld [vmem:[#allocation5 + $0xeb0] sm:$0xff]  }
 0x1fe   : > { %13100 = vmatprep.subr.bf16.mxu1 %v14424_v60 }
 0x1ff   : > { %v12786_v2 = vpop.f32.mrf.mxu0  ;;  %4678 = vmatmul.mubr.bf16.vlgmr.msra.gmra.mxu0 %v15477_v6 }
 0x200   : > { %v12808_v33 = vpop.f32.mrf.mxu1  ;;  %13079 = vmatpush3.bf16.msra.mxu0 %v14423_v61  ;;  %4852 = vmatmul.mubr.bf16.vlgmr.msra.gmra.mxu1 %v4719_v0  ;;  %v14462_v61 = vld [vmem:[#allocation5 + $0xe68] sm:$0xff]  }
 0x201   : > { %v12787_v8 = vpop.f32.mrf.mxu0  ;;  %13080 = vmatprep.subr.bf16.mxu0 %v14426_v1  ;;  %13101 = vmatpush3.bf16.msra.mxu1 %v14425_v63  ;;  %v14464_v1 = vld [vmem:[#allocation5 + $0xee8] sm:$0xff]  }
 0x202   : > { %v12788_v11 = vadd.f32 %v12787_v8, %v12786_v2  ;;  %v12809_v12 = vpop.f32.mrf.mxu1  ;;  %5025 = vmatprep.mubr.bf16.mxu0 %v4894_v4  ;;  %13102 = vmatprep.subr.bf16.mxu1 %v14428_v7  ;;  %v14466_v7 = vld [vmem:[#allocation5 + $0xe60] sm:$0xff]  }
 0x203   : > { %v12789_v14 = vpop.f32.mrf.mxu0  ;;  %v12810_v16 = vadd.f32 %v12809_v12, %v12808_v33  ;;  %5199 = vmatprep.mubr.bf16.mxu1 %v5068_v10  ;;  %v14467_v8 = vld [vmem:[#allocation5 + $0xe20] sm:$0xff]   ;;  %v14471_v12 = vld [vmem:[#allocation5 + $0xe18] sm:$0xff]  }
 0x204   : > { %v2576_v6 = vadd.f32 %v12788_v11, %v15493_v30  ;;  %v12811_v18 = vpop.f32.mrf.mxu1  ;;  %13081 = vmatpush3.bf16.msra.mxu0 %v14427_v5  ;;  %v14442_v30 = vld [vmem:[#allocation5 + $0xd50] sm:$0xff]   ;;  %v14465_v5 = vld [vmem:[#allocation5 + $0xea8] sm:$0xff]   ;;  %v14469_v10 = vld [vmem:[#allocation5 + $0xea0] sm:$0xff]  }
 0x205   : > { %v12790_v19 = vpop.f32.mrf.mxu0  ;;  %13082 = vmatprep.subr.bf16.mxu0 %v14430_v13  ;;  %13103 = vmatpush3.bf16.msra.mxu1 %v14429_v9  ;;  %v14468_v9 = vld [vmem:[#allocation5 + $0xee0] sm:$0xff]   ;;  %v14470_v11 = vld [vmem:[#allocation5 + $0xe58] sm:$0xff]   ;;  %v14478_v18 = vld [vmem:[#allocation5 + $0xe48] sm:$0xff]  }
 0x206   : > { %v15507_v21 = vadd.f32 %v12810_v16, %v2576_v6  ;;  %v12812_v23 = vpop.f32.mrf.mxu1  ;;  %13104 = vmatprep.subr.bf16.mxu1 %v14432_v17  ;;  %v14472_v13 = vld [vmem:[#allocation5 + $0xed8] sm:$0xff]   ;;  %v14474_v16 = vld [vmem:[#allocation5 + $0xe50] sm:$0xff]   ;;  %v14479_v19 = vld [vmem:[#allocation5 + $0xe08] sm:$0xff]  }
 0x207   : > { %v14473_v14 = vld [vmem:[#allocation5 + $0xe98] sm:$0xff]   ;;  %v14476_v6 = vld [vmem:[#allocation5 + $0xed0] sm:$0xff]  }
 0x208   : > { %13083 = vmatpush3.bf16.msra.mxu0 %v14431_v42  ;;  %v14475_v42 = vld [vmem:[#allocation5 + $0xe10] sm:$0xff]  }
 0x209   : > { %13084 = vmatprep.subr.bf16.mxu0 %v14434_v22  ;;  %13105 = vmatpush3.bf16.msra.mxu1 %v14433_v20  ;;  %v14477_v17 = vld [vmem:[#allocation5 + $0xe90] sm:$0xff]   ;;  %v14480_v20 = vld [vmem:[#allocation5 + $0xec8] sm:$0xff]   ;;  %v14482_v22 = vld [vmem:[#allocation5 + $0xe40] sm:$0xff]  }
 0x20a   : > { %13106 = vmatprep.subr.bf16.mxu1 %v14436_v24  ;;  %v287_v23 = vld [vmem:[%s15387_s11 + $0x20] sm:$0xf] }
 0x20b   : > { %v15516_v24 = vcombine.low %v15496_v51, %v287_v23  ;;  %v14522_v23 = vld [vmem:[#allocation5 + $0x10f8] sm:$0xff]  }
 0x20c   : > { %13085 = vmatpush3.bf16.msra.mxu0 %v14435_v15  ;;  %v14484_v15 = vld [vmem:[#allocation5 + $0xec0] sm:$0xff]  }
 0x20d   : > { %13086 = vmatprep.subr.bf16.mxu0 %v14438_v26  ;;  %13107 = vmatpush3.bf16.msra.mxu1 %v14437_v25  ;;  %v14483_v25 = vld [vmem:[#allocation5 + $0xe00] sm:$0xff]   ;;  %v5212_v26 = vshrl.u32 %v15516_v24, 16 }
 0x20e   : > { %13108 = vmatprep.subr.bf16.mxu1 %v14440_v28  ;;  %v14487_v28 = vld [vmem:[#allocation5 + $0xf78] sm:$0xff]  }
 0x210   : > { %13087 = vmatpush3.bf16.msra.mxu0 %v14439_v27  ;;  %v5214_v27 = vshll.u32 %v15516_v24, 16 }
 0x211   : > { %13088 = vmatprep.subr.bf16.mxu0 %v14442_v30  ;;  %13109 = vmatpush3.bf16.msra.mxu1 %v14441_v29  ;;  %v14486_v29 = vld [vmem:[#allocation5 + $0xe80] sm:$0xff]  }
 0x212   : > { %13110 = vmatprep.subr.bf16.mxu1 %v14444_v32  ;;  %v5216_v30 = vrot.slane %v5214_v27, 1  ;;  %v14488_v32 = vld [vmem:[#allocation5 + $0xf38] sm:$0xff]  }
 0x213   : > { %v14523_v27 = vld [vmem:[#allocation5 + $0x10b8] sm:$0xff]  }
 0x214   : > { %13089 = vmatpush3.bf16.msra.mxu0 %v14443_v31  ;;  %v14489_v31 = vld [vmem:[#allocation5 + $0xff8] sm:$0xff]  }
 0x215   : > { %13090 = vmatprep.subr.bf16.mxu0 %v14446_v35  ;;  %13111 = vmatpush3.bf16.msra.mxu1 %v14445_v34  ;;  %v5217_v34 = vor.u32 %v5216_v30, %v5212_v26  ;;  %v14490_v35 = vld [vmem:[#allocation5 + $0xfb8] sm:$0xff]   ;;  %v14524_v26 = vld [vmem:[#allocation5 + $0x1070] sm:$0xff]  }
 0x216   : > { %13112 = vmatprep.subr.bf16.mxu1 %v14448_v36  ;;  %v5422_v36 = vrot.slane %v15516_v24, 1 }
 0x218   : > { %13091 = vmatpush3.bf16.msra.mxu0 %v14447_v55 }
 0x219   : > { %13092 = vmatprep.subr.bf16.mxu0 %v14450_v38  ;;  %13113 = vmatpush3.bf16.msra.mxu1 %v14449_v37  ;;  %v14491_v37 = vld [vmem:[#allocation5 + $0xf70] sm:$0xff]   ;;  %v5423_v38 = vrot.slane %v5217_v34, 1 }
 0x21a   : > { %13114 = vmatprep.subr.bf16.mxu1 %v14452_v43 }
 0x21c   : > { %13093 = vmatpush3.bf16.msra.mxu0 %v14451_v40  ;;  %v14492_v40 = vld [vmem:[#allocation5 + $0xf30] sm:$0xff]  }
 0x21d   : > { %13122 = vmatprep.subr.bf16.mxu0 %v14454_v44  ;;  %13115 = vmatpush3.bf16.msra.mxu1 %v14453_v39  ;;  %v14493_v44 = vld [vmem:[#allocation5 + $0xff0] sm:$0xff]  }
 0x21e   : > { %13144 = vmatprep.subr.bf16.mxu1 %v14456_v47  ;;  %v14494_v47 = vld [vmem:[#allocation5 + $0xfb0] sm:$0xff]  }
 0x21f   : > { %v12830_v52 = vpop.f32.mrf.mxu0  ;;  %5026 = vmatmul.mubr.bf16.vlgmr.msra.gmra.mxu0 %v4893_v46 }
 0x220   : > { %v12852_v54 = vpop.f32.mrf.mxu1  ;;  %13123 = vmatpush3.bf16.msra.mxu0 %v14455_v45  ;;  %5200 = vmatmul.mubr.bf16.vlgmr.msra.gmra.mxu1 %v5067_v49  ;;  %v5597_v45 = vrot.slane %v5217_v34, 2 }
 0x221   : > { %v12831_v57 = vpop.f32.mrf.mxu0  ;;  %13124 = vmatprep.subr.bf16.mxu0 %v14458_v50  ;;  %13145 = vmatpush3.bf16.msra.mxu1 %v14457_v48  ;;  %v14495_v50 = vld [vmem:[#allocation5 + $0xf68] sm:$0xff]  }
 0x222   : > { %v12832_v59 = vadd.f32 %v12831_v57, %v12830_v52  ;;  %v12853_v60 = vpop.f32.mrf.mxu1  ;;  %13146 = vmatprep.subr.bf16.mxu1 %v14460_v56  ;;  %5380 = vmatprep.mubr.bf16.mxu0 %v5217_v34  ;;  %v14497_v56 = vld [vmem:[#allocation5 + $0xfe8] sm:$0xff]  }
 0x223   : > { %v12833_v62 = vpop.f32.mrf.mxu0  ;;  %v12854_v63 = vadd.f32 %v12853_v60, %v12852_v54  ;;  %5554 = vmatprep.mubr.bf16.mxu1 %v5423_v38  ;;  %v14496_v54 = vld [vmem:[#allocation5 + $0xf28] sm:$0xff]   ;;  %v14499_v60 = vld [vmem:[#allocation5 + $0xf60] sm:$0xff]  }
 0x224   : > { %v2924_v0 = vadd.f32 %v12832_v59, %v15507_v21  ;;  %v12855_v2 = vpop.f32.mrf.mxu1  ;;  %13125 = vmatpush3.bf16.msra.mxu0 %v14459_v53  ;;  %v14481_v21 = vld [vmem:[#allocation5 + $0xe88] sm:$0xff]   ;;  %v14500_v62 = vld [vmem:[#allocation5 + $0xf20] sm:$0xff]  }
 0x225   : > { %v12834_v3 = vpop.f32.mrf.mxu0  ;;  %13126 = vmatprep.subr.bf16.mxu0 %v14462_v61  ;;  %13147 = vmatpush3.bf16.msra.mxu1 %v14461_v58  ;;  %v14498_v59 = vld [vmem:[#allocation5 + $0xfa8] sm:$0xff]   ;;  %v14505_v2 = vld [vmem:[#allocation5 + $0xfd8] sm:$0xff]  }
 0x226   : > { %v15512_v33 = vadd.f32 %v12854_v63, %v2924_v0  ;;  %v12856_v4 = vpop.f32.mrf.mxu1  ;;  %13148 = vmatprep.subr.bf16.mxu1 %v14464_v1  ;;  %v14501_v63 = vld [vmem:[#allocation5 + $0xfe0] sm:$0xff]   ;;  %v14503_v0 = vld [vmem:[#allocation5 + $0xf58] sm:$0xff]  }
 0x227   : > { %v14504_v1 = vld [vmem:[#allocation5 + $0xf18] sm:$0xff]   ;;  %v14510_v4 = vld [vmem:[#allocation5 + $0xf90] sm:$0xff]  }
 0x228   : > { %13127 = vmatpush3.bf16.msra.mxu0 %v14463_v41  ;;  %v14502_v41 = vld [vmem:[#allocation5 + $0xfa0] sm:$0xff]   ;;  %v14506_v3 = vld [vmem:[#allocation5 + $0xf98] sm:$0xff]  }
 0x229   : > { %13128 = vmatprep.subr.bf16.mxu0 %v14466_v7  ;;  %13149 = vmatpush3.bf16.msra.mxu1 %v14465_v5  ;;  %v14507_v5 = vld [vmem:[#allocation5 + $0xf50] sm:$0xff]  }
 0x22a   : > { %13150 = vmatprep.subr.bf16.mxu1 %v14468_v9  ;;  %v14509_v7 = vld [vmem:[#allocation5 + $0xfd0] sm:$0xff]   ;;  %v14512_v9 = vld [vmem:[#allocation5 + $0xf08] sm:$0xff]  }
 0x22c   : > { %13129 = vmatpush3.bf16.msra.mxu0 %v14467_v8  ;;  %v14511_v8 = vld [vmem:[#allocation5 + $0xf48] sm:$0xff]  }
 0x22d   : > { %13130 = vmatprep.subr.bf16.mxu0 %v14470_v11  ;;  %13151 = vmatpush3.bf16.msra.mxu1 %v14469_v10  ;;  %v14513_v10 = vld [vmem:[#allocation5 + $0xfc8] sm:$0xff]  }
 0x22e   : > { %13152 = vmatprep.subr.bf16.mxu1 %v14472_v13  ;;  %v14514_v11 = vld [vmem:[#allocation5 + $0xf88] sm:$0xff]   ;;  %v14516_v13 = vld [vmem:[#allocation5 + $0xf00] sm:$0xff]  }
 0x230   : > { %13131 = vmatpush3.bf16.msra.mxu0 %v14471_v12  ;;  %v14515_v12 = vld [vmem:[#allocation5 + $0xf40] sm:$0xff]  }
 0x231   : > { %13132 = vmatprep.subr.bf16.mxu0 %v14474_v16  ;;  %13153 = vmatpush3.bf16.msra.mxu1 %v14473_v14  ;;  %v14517_v14 = vld [vmem:[#allocation5 + $0xfc0] sm:$0xff]   ;;  %v11977_v16 = vld [vmem:[%s15387_s11 + $0x28] sm:$0xf] }
 0x232   : > { %13154 = vmatprep.subr.bf16.mxu1 %v14476_v6  ;;  %v14519_v6 = vld [vmem:[#allocation5 + $0x1078] sm:$0xff]  }
 0x234   : > { %13133 = vmatpush3.bf16.msra.mxu0 %v14475_v42  ;;  %v15527_v42 = vld [vmem:[%s15387_s11 + $0x2c] sm:$0xf] }
 0x235   : > { %13134 = vmatprep.subr.bf16.mxu0 %v14478_v18  ;;  %13155 = vmatpush3.bf16.msra.mxu1 %v14477_v17  ;;  %v15530_v17 = vcombine.low %v11977_v16, %v15527_v42  ;;  %v14518_v18 = vld [vmem:[#allocation5 + $0xf80] sm:$0xff]  }
 0x236   : > { %13156 = vmatprep.subr.bf16.mxu1 %v14480_v20 }
 0x237   : > { %v5755_v20 = vshrl.u32 %v15530_v17, 16 }
 0x238   : > { %13135 = vmatpush3.bf16.msra.mxu0 %v14479_v19  ;;  %v5596_v19 = vrot.slane %v15516_v24, 2  ;;  %v14525_v24 = vld [vmem:[#allocation5 + $0x1030] sm:$0xff]  }
 0x239   : > { %13136 = vmatprep.subr.bf16.mxu0 %v14482_v22  ;;  %13157 = vmatpush3.bf16.msra.mxu1 %v14481_v21  ;;  %v5757_v21 = vshll.u32 %v15530_v17, 16  ;;  %v14521_v22 = vld [vmem:[#allocation5 + $0x1038] sm:$0xff]  }
 0x23a   : > { %13158 = vmatprep.subr.bf16.mxu1 %v14484_v15 }
 0x23c   : > { %13137 = vmatpush3.bf16.msra.mxu0 %v14483_v25  ;;  %v5759_v25 = vrot.slane %v5757_v21, 1 }
 0x23d   : > { %13166 = vmatprep.subr.bf16.mxu0 %v14487_v28  ;;  %13159 = vmatpush3.bf16.msra.mxu1 %v14486_v29 }
 0x23e   : > { %13188 = vmatprep.subr.bf16.mxu1 %v14489_v31  ;;  %v15535_v28 = vor.u32 %v5759_v25, %v5755_v20  ;;  %v14558_v20 = vld [vmem:[#allocation5 + $0x11f0] sm:$0xff]  }
 0x23f   : > { %v12874_v55 = vpop.f32.mrf.mxu0  ;;  %5381 = vmatmul.mubr.bf16.vlgmr.msra.gmra.mxu0 %v15496_v51 }
 0x240   : > { %v12896_v39 = vpop.f32.mrf.mxu1  ;;  %13167 = vmatpush3.bf16.msra.mxu0 %v14488_v32  ;;  %5555 = vmatmul.mubr.bf16.vlgmr.msra.gmra.mxu1 %v5422_v36  ;;  %v14526_v32 = vld [vmem:[#allocation5 + $0x10f0] sm:$0xff]   ;;  %v5966_v36 = vrot.slane %v15535_v28, 1 }
 0x241   : > { %v12875_v43 = vpop.f32.mrf.mxu0  ;;  %13168 = vmatprep.subr.bf16.mxu0 %v14491_v37  ;;  %13189 = vmatpush3.bf16.msra.mxu1 %v14490_v35 }
 0x242   : > { %v12876_v46 = vadd.f32 %v12875_v43, %v12874_v55  ;;  %v12897_v49 = vpop.f32.mrf.mxu1  ;;  %5728 = vmatprep.mubr.bf16.mxu0 %v5597_v45  ;;  %13190 = vmatprep.subr.bf16.mxu1 %v14493_v44  ;;  %v14528_v55 = vld [vmem:[#allocation5 + $0x1068] sm:$0xff]   ;;  %v6140_v43 = vrot.slane %v15535_v28, 2 }
 0x243   : > { %v12877_v48 = vpop.f32.mrf.mxu0  ;;  %v12898_v53 = vadd.f32 %v12897_v49, %v12896_v39  ;;  %5923 = vmatprep.mubr.bf16.mxu1 %v15535_v28  ;;  %v14529_v44 = vld [vmem:[#allocation5 + $0x1028] sm:$0xff]  }
 0x244   : > { %v3279_v52 = vadd.f32 %v12876_v46, %v15512_v33  ;;  %v12899_v57 = vpop.f32.mrf.mxu1  ;;  %13169 = vmatpush3.bf16.msra.mxu0 %v14492_v40  ;;  %v14508_v33 = vld [vmem:[#allocation5 + $0xf10] sm:$0xff]   ;;  %v14532_v48 = vld [vmem:[#allocation5 + $0x1060] sm:$0xff]  }
 0x245   : > { %v12878_v51 = vpop.f32.mrf.mxu0  ;;  %13170 = vmatprep.subr.bf16.mxu0 %v14495_v50  ;;  %13191 = vmatpush3.bf16.msra.mxu1 %v14494_v47  ;;  %v14527_v40 = vld [vmem:[#allocation5 + $0x10b0] sm:$0xff]   ;;  %v14530_v47 = vld [vmem:[#allocation5 + $0x10e8] sm:$0xff]   ;;  %v14538_v57 = vld [vmem:[#allocation5 + $0x10d8] sm:$0xff]  }
 0x246   : > { %v15523_v58 = vadd.f32 %v12898_v53, %v3279_v52  ;;  %v12900_v61 = vpop.f32.mrf.mxu1  ;;  %13192 = vmatprep.subr.bf16.mxu1 %v14497_v56  ;;  %v14531_v50 = vld [vmem:[#allocation5 + $0x10a8] sm:$0xff]   ;;  %v14533_v52 = vld [vmem:[#allocation5 + $0x1020] sm:$0xff]   ;;  %v14537_v56 = vld [vmem:[#allocation5 + $0x1018] sm:$0xff]  }
 0x247   : > { %v14534_v53 = vld [vmem:[#allocation5 + $0x10e0] sm:$0xff]   ;;  %v14542_v61 = vld [vmem:[#allocation5 + $0x10d0] sm:$0xff]  }
 0x248   : > { %13171 = vmatpush3.bf16.msra.mxu0 %v14496_v54  ;;  %v14536_v54 = vld [vmem:[#allocation5 + $0x1058] sm:$0xff]   ;;  %v14535_v51 = vld [vmem:[#allocation5 + $0x10a0] sm:$0xff]  }
 0x249   : > { %13172 = vmatprep.subr.bf16.mxu0 %v14499_v60  ;;  %13193 = vmatpush3.bf16.msra.mxu1 %v14498_v59  ;;  %v14539_v59 = vld [vmem:[#allocation5 + $0x1098] sm:$0xff]   ;;  %v14541_v60 = vld [vmem:[#allocation5 + $0x1010] sm:$0xff]  }
 0x24a   : > { %13194 = vmatprep.subr.bf16.mxu1 %v14501_v63  ;;  %v14543_v63 = vld [vmem:[#allocation5 + $0x1090] sm:$0xff]  }
 0x24c   : > { %13173 = vmatpush3.bf16.msra.mxu0 %v14500_v62  ;;  %v14544_v62 = vld [vmem:[#allocation5 + $0x1048] sm:$0xff]  }
 0x24d   : > { %13174 = vmatprep.subr.bf16.mxu0 %v14503_v0  ;;  %13195 = vmatpush3.bf16.msra.mxu1 %v14502_v41  ;;  %v14545_v41 = vld [vmem:[#allocation5 + $0x1008] sm:$0xff]  }
 0x24e   : > { %13196 = vmatprep.subr.bf16.mxu1 %v14505_v2  ;;  %v14546_v0 = vld [vmem:[#allocation5 + $0x10c8] sm:$0xff]  }
 0x24f   : > { %v14547_v2 = vld [vmem:[#allocation5 + $0x1088] sm:$0xff]  }
 0x250   : > { %13175 = vmatpush3.bf16.msra.mxu0 %v14504_v1  ;;  %v14548_v1 = vld [vmem:[#allocation5 + $0x1040] sm:$0xff]  }
 0x251   : > { %13176 = vmatprep.subr.bf16.mxu0 %v14507_v5  ;;  %13197 = vmatpush3.bf16.msra.mxu1 %v14506_v3  ;;  %v14549_v3 = vld [vmem:[#allocation5 + $0x1000] sm:$0xff]  }
 0x252   : > { %13198 = vmatprep.subr.bf16.mxu1 %v14509_v7  ;;  %v14550_v5 = vld [vmem:[#allocation5 + $0x10c0] sm:$0xff]  }
 0x253   : > { %v14551_v7 = vld [vmem:[#allocation5 + $0x1080] sm:$0xff]  }
 0x254   : > { %13177 = vmatpush3.bf16.msra.mxu0 %v14508_v33  ;;  %v14552_v33 = vld [vmem:[#allocation5 + $0x1178] sm:$0xff]  }
 0x255   : > { %13178 = vmatprep.subr.bf16.mxu0 %v14511_v8  ;;  %13199 = vmatpush3.bf16.msra.mxu1 %v14510_v4  ;;  %v5965_v4 = vrot.slane %v15530_v17, 1  ;;  %v14553_v8 = vld [vmem:[#allocation5 + $0x1138] sm:$0xff]  }
 0x256   : > { %13200 = vmatprep.subr.bf16.mxu1 %v14513_v10 }
 0x258   : > { %13179 = vmatpush3.bf16.msra.mxu0 %v14512_v9  ;;  %v14554_v9 = vld [vmem:[#allocation5 + $0x11f8] sm:$0xff]  }
 0x259   : > { %13180 = vmatprep.subr.bf16.mxu0 %v14515_v12  ;;  %13201 = vmatpush3.bf16.msra.mxu1 %v14514_v11  ;;  %v14556_v11 = vld [vmem:[#allocation5 + $0x1170] sm:$0xff]   ;;  %v6314_v12 = vrot.slane %v15535_v28, 3  ;;  %v14561_v28 = vld [vmem:[#allocation5 + $0x1128] sm:$0xff]  }
 0x25a   : > { %13202 = vmatprep.subr.bf16.mxu1 %v14517_v14  ;;  %v14555_v14 = vld [vmem:[#allocation5 + $0x11b8] sm:$0xff]  }
 0x25c   : > { %13181 = vmatpush3.bf16.msra.mxu0 %v14516_v13  ;;  %v6139_v13 = vrot.slane %v15530_v17, 2 }
 0x25d   : > { %13210 = vmatprep.subr.bf16.mxu0 %v14519_v6  ;;  %13203 = vmatpush3.bf16.msra.mxu1 %v14518_v18  ;;  %v14557_v18 = vld [vmem:[#allocation5 + $0x1130] sm:$0xff]  }
 0x25e   : > { %13232 = vmatprep.subr.bf16.mxu1 %v14522_v23  ;;  %v14560_v23 = vld [vmem:[#allocation5 + $0x1168] sm:$0xff]  }
 0x25f   : > { %v12918_v15 = vpop.f32.mrf.mxu0  ;;  %5729 = vmatmul.mubr.bf16.vlgmr.msra.gmra.mxu0 %v5596_v19 }
 0x260   : > { %v12940_v30 = vpop.f32.mrf.mxu1  ;;  %13211 = vmatpush3.bf16.msra.mxu0 %v14521_v22  ;;  %5924 = vmatmul.mubr.bf16.vlgmr.msra.gmra.mxu1 %v11977_v16 }
 0x261   : > { %v12919_v29 = vpop.f32.mrf.mxu0  ;;  %13212 = vmatprep.subr.bf16.mxu0 %v14524_v26  ;;  %13233 = vmatpush3.bf16.msra.mxu1 %v14523_v27  ;;  %v14559_v26 = vld [vmem:[#allocation5 + $0x11b0] sm:$0xff]  }
 0x262   : > { %v12920_v31 = vadd.f32 %v12919_v29, %v12918_v15  ;;  %v12941_v35 = vpop.f32.mrf.mxu1  ;;  %6097 = vmatprep.mubr.bf16.mxu0 %v5966_v36  ;;  %13234 = vmatprep.subr.bf16.mxu1 %v14526_v32  ;;  %v14568_v36 = vld [vmem:[#allocation5 + $0x1158] sm:$0xff]  }
 0x263   : > { %v12921_v34 = vpop.f32.mrf.mxu0  ;;  %v12942_v38 = vadd.f32 %v12941_v35, %v12940_v30  ;;  %6271 = vmatprep.mubr.bf16.mxu1 %v6140_v43  ;;  %v14565_v35 = vld [vmem:[#allocation5 + $0x1120] sm:$0xff]   ;;  %v14572_v43 = vld [vmem:[#allocation5 + $0x1150] sm:$0xff]  }
 0x264   : > { %v3627_v37 = vadd.f32 %v12920_v31, %v15523_v58  ;;  %v12943_v45 = vpop.f32.mrf.mxu1  ;;  %13213 = vmatpush3.bf16.msra.mxu0 %v14525_v24  ;;  %v14540_v58 = vld [vmem:[#allocation5 + $0x1050] sm:$0xff]   ;;  %v14562_v24 = vld [vmem:[#allocation5 + $0x11e8] sm:$0xff]   ;;  %v14564_v31 = vld [vmem:[#allocation5 + $0x1160] sm:$0xff]  }
 0x265   : > { %v12922_v39 = vpop.f32.mrf.mxu0  ;;  %13214 = vmatprep.subr.bf16.mxu0 %v14528_v55  ;;  %13235 = vmatpush3.bf16.msra.mxu1 %v14527_v40  ;;  %v14563_v34 = vld [vmem:[#allocation5 + $0x11a8] sm:$0xff]   ;;  %v14566_v55 = vld [vmem:[#allocation5 + $0x11e0] sm:$0xff]   ;;  %v14570_v40 = vld [vmem:[#allocation5 + $0x11d8] sm:$0xff]  }
 0x266   : > { %v15541_v46 = vadd.f32 %v12942_v38, %v3627_v37  ;;  %v12944_v49 = vpop.f32.mrf.mxu1  ;;  %13236 = vmatprep.subr.bf16.mxu1 %v14530_v47  ;;  %v14567_v37 = vld [vmem:[#allocation5 + $0x11a0] sm:$0xff]   ;;  %v14569_v38 = vld [vmem:[#allocation5 + $0x1118] sm:$0xff]   ;;  %v14574_v45 = vld [vmem:[#allocation5 + $0x11d0] sm:$0xff]  }
 0x267   : > { %v14571_v39 = vld [vmem:[#allocation5 + $0x1198] sm:$0xff]   ;;  %v14575_v47 = vld [vmem:[#allocation5 + $0x1190] sm:$0xff]   ;;  %v14578_v49 = vld [vmem:[#allocation5 + $0x11c8] sm:$0xff]  }
 0x268   : > { %13215 = vmatpush3.bf16.msra.mxu0 %v14529_v44  ;;  %v14573_v44 = vld [vmem:[#allocation5 + $0x1110] sm:$0xff]  }
 0x269   : > { %13216 = vmatprep.subr.bf16.mxu0 %v14532_v48  ;;  %13237 = vmatpush3.bf16.msra.mxu1 %v14531_v50  ;;  %v14577_v48 = vld [vmem:[#allocation5 + $0x1108] sm:$0xff]   ;;  %v14580_v50 = vld [vmem:[#allocation5 + $0x1140] sm:$0xff]  }
 0x26a   : > { %13238 = vmatprep.subr.bf16.mxu1 %v14534_v53  ;;  %v14581_v53 = vld [vmem:[#allocation5 + $0x1100] sm:$0xff]  }
 0x26c   : > { %13217 = vmatpush3.bf16.msra.mxu0 %v14533_v52  ;;  %v14579_v52 = vld [vmem:[#allocation5 + $0x1188] sm:$0xff]  }
 0x26d   : > { %13218 = vmatprep.subr.bf16.mxu0 %v14536_v54  ;;  %13239 = vmatpush3.bf16.msra.mxu1 %v14535_v51  ;;  %v14582_v54 = vld [vmem:[#allocation5 + $0x11c0] sm:$0xff]  }
 0x26e   : > { %13240 = vmatprep.subr.bf16.mxu1 %v14538_v57  ;;  %v15550_v51 = vld [vmem:[%s15387_s11 + $0x30] sm:$0xf] }
 0x26f   : > { %v15554_v57 = vcombine.low %v15527_v42, %v15550_v51 }
 0x270   : > { %13219 = vmatpush3.bf16.msra.mxu0 %v14537_v56  ;;  %v14584_v56 = vld [vmem:[#allocation5 + $0x1278] sm:$0xff]  }
 0x271   : > { %13220 = vmatprep.subr.bf16.mxu0 %v14540_v58  ;;  %13241 = vmatpush3.bf16.msra.mxu1 %v14539_v59  ;;  %v14583_v58 = vld [vmem:[#allocation5 + $0x1180] sm:$0xff]   ;;  %v6313_v59 = vrot.slane %v15530_v17, 3 }
 0x272   : > { %13242 = vmatprep.subr.bf16.mxu1 %v14542_v61  ;;  %v6460_v61 = vshll.u32 %v15554_v57, 16 }
 0x274   : > { %13221 = vmatpush3.bf16.msra.mxu0 %v14541_v60  ;;  %v6458_v60 = vshrl.u32 %v15554_v57, 16 }
 0x275   : > { %13222 = vmatprep.subr.bf16.mxu0 %v14544_v62  ;;  %13243 = vmatpush3.bf16.msra.mxu1 %v14543_v63  ;;  %v14586_v62 = vld [vmem:[#allocation5 + $0x1238] sm:$0xff]  }
 0x276   : > { %13244 = vmatprep.subr.bf16.mxu1 %v14546_v0  ;;  %v14587_v63 = vld [vmem:[#allocation5 + $0x12f8] sm:$0xff]   ;;  %v6462_v0 = vrot.slane %v6460_v61, 1  ;;  %v14625_v61 = vld [vmem:[#allocation5 + $0x1368] sm:$0xff]  }
 0x278   : > { %13223 = vmatpush3.bf16.msra.mxu0 %v14545_v41 }
 0x279   : > { %13224 = vmatprep.subr.bf16.mxu0 %v14548_v1  ;;  %13245 = vmatpush3.bf16.msra.mxu1 %v14547_v2  ;;  %v14589_v1 = vld [vmem:[#allocation5 + $0x1270] sm:$0xff]   ;;  %v14588_v2 = vld [vmem:[#allocation5 + $0x12b8] sm:$0xff]  }
 0x27a   : > { %13246 = vmatprep.subr.bf16.mxu1 %v14550_v5 }
 0x27c   : > { %13225 = vmatpush3.bf16.msra.mxu0 %v14549_v3  ;;  %v15559_v3 = vor.u32 %v6462_v0, %v6458_v60 }
 0x27d   : > { %13254 = vmatprep.subr.bf16.mxu0 %v14552_v33  ;;  %13247 = vmatpush3.bf16.msra.mxu1 %v14551_v7  ;;  %v14590_v33 = vld [vmem:[#allocation5 + $0x1230] sm:$0xff]  }
 0x27e   : > { %13276 = vmatprep.subr.bf16.mxu1 %v14554_v9 }
 0x27f   : > { %v12962_v10 = vpop.f32.mrf.mxu0  ;;  %6098 = vmatmul.mubr.bf16.vlgmr.msra.gmra.mxu0 %v5965_v4  ;;  %v14591_v4 = vld [vmem:[#allocation5 + $0x12f0] sm:$0xff]  }
 0x280   : > { %v12984_v6 = vpop.f32.mrf.mxu1  ;;  %13255 = vmatpush3.bf16.msra.mxu0 %v14553_v8  ;;  %6445 = vmatprep.mubr.bf16.mxu0 %v6314_v12 }
 0x281   : > { %v12963_v16 = vpop.f32.mrf.mxu0  ;;  %13256 = vmatprep.subr.bf16.mxu0 %v14556_v11  ;;  %6272 = vmatmul.mubr.bf16.vlgmr.msra.gmra.mxu1 %v6139_v13  ;;  %v6669_v11 = vrot.slane %v15559_v3, 1 }
 0x282   : > { %v12964_v19 = vadd.f32 %v12963_v16, %v12962_v10  ;;  %v12985_v22 = vpop.f32.mrf.mxu1  ;;  %13277 = vmatpush3.bf16.msra.mxu1 %v14555_v14  ;;  %6626 = vmatprep.mubr.bf16.mxu1 %v15559_v3  ;;  %v14593_v10 = vld [vmem:[#allocation5 + $0x1268] sm:$0xff]   ;;  %v14592_v14 = vld [vmem:[#allocation5 + $0x12b0] sm:$0xff]   ;;  %v6843_v16 = vrot.slane %v15559_v3, 2 }
 0x283   : > { %v12965_v21 = vpop.f32.mrf.mxu0  ;;  %v12986_v25 = vadd.f32 %v12985_v22, %v12984_v6  ;;  %13278 = vmatprep.subr.bf16.mxu1 %v14558_v20  ;;  %v14597_v22 = vld [vmem:[#allocation5 + $0x1260] sm:$0xff]  }
 0x284   : > { %v3982_v15 = vadd.f32 %v12964_v19, %v15541_v46  ;;  %v12987_v29 = vpop.f32.mrf.mxu1  ;;  %13257 = vmatpush3.bf16.msra.mxu0 %v14557_v18  ;;  %v14576_v46 = vld [vmem:[#allocation5 + $0x1148] sm:$0xff]  }
 0x285   : > { %v12966_v27 = vpop.f32.mrf.mxu0  ;;  %13258 = vmatprep.subr.bf16.mxu0 %v14560_v23  ;;  %v14594_v18 = vld [vmem:[#allocation5 + $0x1228] sm:$0xff]   ;;  %v14603_v29 = vld [vmem:[#allocation5 + $0x12d8] sm:$0xff]  }
 0x286   : > { %v15547_v30 = vadd.f32 %v12986_v25, %v3982_v15  ;;  %v12988_v32 = vpop.f32.mrf.mxu1  ;;  %13279 = vmatpush3.bf16.msra.mxu1 %v14559_v26  ;;  %v14595_v21 = vld [vmem:[#allocation5 + $0x12e8] sm:$0xff]   ;;  %v14599_v25 = vld [vmem:[#allocation5 + $0x12e0] sm:$0xff]   ;;  %v14601_v26 = vld [vmem:[#allocation5 + $0x1258] sm:$0xff]  }
 0x287   : > { %13280 = vmatprep.subr.bf16.mxu1 %v14562_v24  ;;  %v14596_v15 = vld [vmem:[#allocation5 + $0x12a8] sm:$0xff]   ;;  %v14600_v27 = vld [vmem:[#allocation5 + $0x12a0] sm:$0xff]   ;;  %v14604_v24 = vld [vmem:[#allocation5 + $0x1298] sm:$0xff]  }
 0x288   : > { %13259 = vmatpush3.bf16.msra.mxu0 %v14561_v28  ;;  %v14602_v28 = vld [vmem:[#allocation5 + $0x1218] sm:$0xff]   ;;  %v14607_v32 = vld [vmem:[#allocation5 + $0x12d0] sm:$0xff]  }
 0x289   : > { %13260 = vmatprep.subr.bf16.mxu0 %v14564_v31  ;;  %v14606_v31 = vld [vmem:[#allocation5 + $0x1210] sm:$0xff]  }
 0x28a   : > { %13281 = vmatpush3.bf16.msra.mxu1 %v14563_v34  ;;  %v14609_v34 = vld [vmem:[#allocation5 + $0x1248] sm:$0xff]  }
 0x28b   : > { %13282 = vmatprep.subr.bf16.mxu1 %v14566_v55  ;;  %v14610_v55 = vld [vmem:[#allocation5 + $0x1208] sm:$0xff]  }
 0x28c   : > { %13261 = vmatpush3.bf16.msra.mxu0 %v14565_v35  ;;  %v14608_v35 = vld [vmem:[#allocation5 + $0x1290] sm:$0xff]  }
 0x28d   : > { %13262 = vmatprep.subr.bf16.mxu0 %v14568_v36  ;;  %v14611_v36 = vld [vmem:[#allocation5 + $0x12c8] sm:$0xff]  }
 0x28e   : > { %13283 = vmatpush3.bf16.msra.mxu1 %v14567_v37  ;;  %v14613_v37 = vld [vmem:[#allocation5 + $0x1240] sm:$0xff]  }
 0x28f   : > { %13284 = vmatprep.subr.bf16.mxu1 %v14570_v40  ;;  %v14614_v40 = vld [vmem:[#allocation5 + $0x1200] sm:$0xff]  }
 0x290   : > { %13263 = vmatpush3.bf16.msra.mxu0 %v14569_v38  ;;  %v14612_v38 = vld [vmem:[#allocation5 + $0x1288] sm:$0xff]  }
 0x291   : > { %13264 = vmatprep.subr.bf16.mxu0 %v14572_v43  ;;  %v14615_v43 = vld [vmem:[#allocation5 + $0x12c0] sm:$0xff]  }
 0x292   : > { %13285 = vmatpush3.bf16.msra.mxu1 %v14571_v39  ;;  %v14617_v39 = vld [vmem:[#allocation5 + $0x1378] sm:$0xff]  }
 0x293   : > { %13286 = vmatprep.subr.bf16.mxu1 %v14574_v45  ;;  %v6668_v45 = vrot.slane %v15554_v57, 1 }
 0x294   : > { %13265 = vmatpush3.bf16.msra.mxu0 %v14573_v44  ;;  %v14616_v44 = vld [vmem:[#allocation5 + $0x1280] sm:$0xff]  }
 0x295   : > { %13266 = vmatprep.subr.bf16.mxu0 %v14576_v46  ;;  %v14618_v46 = vld [vmem:[#allocation5 + $0x1338] sm:$0xff]  }
 0x296   : > { %13287 = vmatpush3.bf16.msra.mxu1 %v14575_v47  ;;  %v14619_v47 = vld [vmem:[#allocation5 + $0x13f8] sm:$0xff]  }
 0x297   : > { %13288 = vmatprep.subr.bf16.mxu1 %v14578_v49  ;;  %v7017_v49 = vrot.slane %v15559_v3, 3 }
 0x298   : > { %13267 = vmatpush3.bf16.msra.mxu0 %v14577_v48  ;;  %v14621_v48 = vld [vmem:[#allocation5 + $0x1370] sm:$0xff]  }
 0x299   : > { %13268 = vmatprep.subr.bf16.mxu0 %v14580_v50 }
 0x29a   : > { %13289 = vmatpush3.bf16.msra.mxu1 %v14579_v52  ;;  %v6842_v52 = vrot.slane %v15554_v57, 2 }
 0x29b   : > { %13290 = vmatprep.subr.bf16.mxu1 %v14582_v54  ;;  %v14622_v54 = vld [vmem:[#allocation5 + $0x1330] sm:$0xff]  }
 0x29c   : > { %13269 = vmatpush3.bf16.msra.mxu0 %v14581_v53  ;;  %v14620_v53 = vld [vmem:[#allocation5 + $0x13b8] sm:$0xff]  }
 0x29d   : > { %13298 = vmatprep.subr.bf16.mxu0 %v14584_v56 }
 0x29e   : > { %13291 = vmatpush3.bf16.msra.mxu1 %v14583_v58 }
 0x29f   : > { %v13006_v41 = vpop.f32.mrf.mxu0  ;;  %6446 = vmatmul.mubr.bf16.vlgmr.msra.gmra.mxu0 %v6313_v59  ;;  %13320 = vmatprep.subr.bf16.mxu1 %v14587_v63  ;;  %v14623_v59 = vld [vmem:[#allocation5 + $0x13f0] sm:$0xff]  }
 0x2a0   : > { %v13028_v17 = vpop.f32.mrf.mxu1  ;;  %13299 = vmatpush3.bf16.msra.mxu0 %v14586_v62  ;;  %6800 = vmatprep.mubr.bf16.mxu0 %v6669_v11  ;;  %v14633_v11 = vld [vmem:[#allocation5 + $0x1358] sm:$0xff]  }
 0x2a1   : > { %v13007_v5 = vpop.f32.mrf.mxu0  ;;  %13300 = vmatprep.subr.bf16.mxu0 %v14589_v1  ;;  %6627 = vmatmul.mubr.bf16.vlgmr.msra.gmra.mxu1 %v15527_v42  ;;  %v14598_v42 = vld [vmem:[#allocation5 + $0x1220] sm:$0xff]  }
 0x2a2   : > { %v13008_v7 = vadd.f32 %v13007_v5, %v13006_v41  ;;  %v13029_v9 = vpop.f32.mrf.mxu1  ;;  %13321 = vmatpush3.bf16.msra.mxu1 %v14588_v2  ;;  %6974 = vmatprep.mubr.bf16.mxu1 %v6843_v16  ;;  %v14624_v41 = vld [vmem:[#allocation5 + $0x13b0] sm:$0xff]   ;;  %v14626_v2 = vld [vmem:[#allocation5 + $0x1328] sm:$0xff]  }
 0x2a3   : > { %v13009_v8 = vpop.f32.mrf.mxu0  ;;  %v13030_v13 = vadd.f32 %v13029_v9, %v13028_v17  ;;  %13322 = vmatprep.subr.bf16.mxu1 %v14591_v4  ;;  %v14627_v5 = vld [vmem:[#allocation5 + $0x13e8] sm:$0xff]   ;;  %v14630_v9 = vld [vmem:[#allocation5 + $0x1320] sm:$0xff]   ;;  %v14637_v16 = vld [vmem:[#allocation5 + $0x1350] sm:$0xff]  }
 0x2a4   : > { %v4330_v12 = vadd.f32 %v13008_v7, %v15547_v30  ;;  %v13031_v19 = vpop.f32.mrf.mxu1  ;;  %13301 = vmatpush3.bf16.msra.mxu0 %v14590_v33  ;;  %v14605_v30 = vld [vmem:[#allocation5 + $0x1250] sm:$0xff]   ;;  %v14629_v7 = vld [vmem:[#allocation5 + $0x1360] sm:$0xff]   ;;  %v14628_v4 = vld [vmem:[#allocation5 + $0x13a8] sm:$0xff]  }
 0x2a5   : > { %v13010_v6 = vpop.f32.mrf.mxu0  ;;  %13302 = vmatprep.subr.bf16.mxu0 %v14593_v10  ;;  %v14631_v10 = vld [vmem:[#allocation5 + $0x13e0] sm:$0xff]   ;;  %v14639_v19 = vld [vmem:[#allocation5 + $0x13d0] sm:$0xff]  }
 0x2a6   : > { %v15566_v20 = vadd.f32 %v13030_v13, %v4330_v12  ;;  %v13032_v23 = vpop.f32.mrf.mxu1  ;;  %13323 = vmatpush3.bf16.msra.mxu1 %v14592_v14  ;;  %v14632_v12 = vld [vmem:[#allocation5 + $0x13a0] sm:$0xff]   ;;  %v14634_v13 = vld [vmem:[#allocation5 + $0x1318] sm:$0xff]  }
 0x2a7   : > { %13324 = vmatprep.subr.bf16.mxu1 %v14595_v21  ;;  %v14635_v14 = vld [vmem:[#allocation5 + $0x13d8] sm:$0xff]   ;;  %v14640_v21 = vld [vmem:[#allocation5 + $0x1390] sm:$0xff]   ;;  %v14643_v23 = vld [vmem:[#allocation5 + $0x13c8] sm:$0xff]  }
 0x2a8   : > { %13303 = vmatpush3.bf16.msra.mxu0 %v14594_v18  ;;  %v14636_v6 = vld [vmem:[#allocation5 + $0x1398] sm:$0xff]   ;;  %v14638_v18 = vld [vmem:[#allocation5 + $0x1310] sm:$0xff]  }
 0x2a9   : > { %13304 = vmatprep.subr.bf16.mxu0 %v14597_v22  ;;  %v14642_v22 = vld [vmem:[#allocation5 + $0x1308] sm:$0xff]  }
 0x2aa   : > { %13325 = vmatpush3.bf16.msra.mxu1 %v14596_v15  ;;  %v14645_v15 = vld [vmem:[#allocation5 + $0x1340] sm:$0xff]  }
 0x2ab   : > { %13326 = vmatprep.subr.bf16.mxu1 %v14599_v25  ;;  %v14646_v25 = vld [vmem:[#allocation5 + $0x1300] sm:$0xff]  }
 0x2ac   : > { %13305 = vmatpush3.bf16.msra.mxu0 %v14598_v42  ;;  %v14644_v42 = vld [vmem:[#allocation5 + $0x1388] sm:$0xff]  }
 0x2ad   : > { %13306 = vmatprep.subr.bf16.mxu0 %v14601_v26  ;;  %v14647_v26 = vld [vmem:[#allocation5 + $0x13c0] sm:$0xff]  }
 0x2ae   : > { %13327 = vmatpush3.bf16.msra.mxu1 %v14600_v27  ;;  %v15575_v27 = vld [vmem:[%s15387_s11 + $0x34] sm:$0xf] }
 0x2af   : > { %13328 = vmatprep.subr.bf16.mxu1 %v14603_v29  ;;  %v14649_v29 = vld [vmem:[#allocation5 + $0x1478] sm:$0xff]  }
 0x2b0   : > { %13307 = vmatpush3.bf16.msra.mxu0 %v14602_v28  ;;  %v14648_v28 = vld [vmem:[#allocation5 + $0x1380] sm:$0xff]  }
 0x2b1   : > { %13308 = vmatprep.subr.bf16.mxu0 %v14605_v30  ;;  %v15579_v30 = vcombine.low %v15550_v51, %v15575_v27 }
 0x2b2   : > { %13329 = vmatpush3.bf16.msra.mxu1 %v14604_v24  ;;  %v7016_v24 = vrot.slane %v15554_v57, 3 }
 0x2b3   : > { %13330 = vmatprep.subr.bf16.mxu1 %v14607_v32  ;;  %v7161_v32 = vshrl.u32 %v15579_v30, 16 }
 0x2b4   : > { %13309 = vmatpush3.bf16.msra.mxu0 %v14606_v31  ;;  %v14651_v31 = vld [vmem:[#allocation5 + $0x1438] sm:$0xff]  }
 0x2b5   : > { %13310 = vmatprep.subr.bf16.mxu0 %v14609_v34  ;;  %v7163_v34 = vshll.u32 %v15579_v30, 16 }
 0x2b6   : > { %13331 = vmatpush3.bf16.msra.mxu1 %v14608_v35  ;;  %v14652_v35 = vld [vmem:[#allocation5 + $0x14f8] sm:$0xff]  }
 0x2b7   : > { %13332 = vmatprep.subr.bf16.mxu1 %v14611_v36  ;;  %v14654_v36 = vld [vmem:[#allocation5 + $0x1470] sm:$0xff]  }
 0x2b8   : > { %13311 = vmatpush3.bf16.msra.mxu0 %v14610_v55  ;;  %v7165_v55 = vrot.slane %v7163_v34, 1  ;;  %v14689_v34 = vld [vmem:[#allocation5 + $0x15b0] sm:$0xff]  }
 0x2b9   : > { %13312 = vmatprep.subr.bf16.mxu0 %v14613_v37 }
 0x2ba   : > { %13333 = vmatpush3.bf16.msra.mxu1 %v14612_v38  ;;  %v14653_v38 = vld [vmem:[#allocation5 + $0x14b8] sm:$0xff]  }
 0x2bb   : > { %13334 = vmatprep.subr.bf16.mxu1 %v14615_v43  ;;  %v14655_v43 = vld [vmem:[#allocation5 + $0x1430] sm:$0xff]  }
 0x2bc   : > { %13313 = vmatpush3.bf16.msra.mxu0 %v14614_v40  ;;  %v15584_v40 = vor.u32 %v7165_v55, %v7161_v32 }
 0x2bd   : > { %13342 = vmatprep.subr.bf16.mxu0 %v14617_v39 }
 0x2be   : > { %13335 = vmatpush3.bf16.msra.mxu1 %v14616_v44  ;;  %v14656_v44 = vld [vmem:[#allocation5 + $0x14f0] sm:$0xff]  }
 0x2bf   : > { %v13050_v50 = vpop.f32.mrf.mxu0  ;;  %6801 = vmatmul.mubr.bf16.vlgmr.msra.gmra.mxu0 %v6668_v45  ;;  %13364 = vmatprep.subr.bf16.mxu1 %v14619_v47  ;;  %v7372_v47 = vrot.slane %v15584_v40, 1 }
 0x2c0   : > { %13343 = vmatpush3.bf16.msra.mxu0 %v14618_v46  ;;  %v13072_v58 = vpop.f32.mrf.mxu1  ;;  %7148 = vmatprep.mubr.bf16.mxu0 %v7017_v49  ;;  %v14658_v46 = vld [vmem:[#allocation5 + $0x1468] sm:$0xff]  }
 0x2c1   : > { %v13051_v56 = vpop.f32.mrf.mxu0  ;;  %13344 = vmatprep.subr.bf16.mxu0 %v14621_v48  ;;  %6975 = vmatmul.mubr.bf16.vlgmr.msra.gmra.mxu1 %v6842_v52  ;;  %v7546_v52 = vrot.slane %v15584_v40, 2 }
 0x2c2   : > { %v13052_v60 = vadd.f32 %v13051_v56, %v13050_v50  ;;  %v13073_v63 = vpop.f32.mrf.mxu1  ;;  %13365 = vmatpush3.bf16.msra.mxu1 %v14620_v53  ;;  %7329 = vmatprep.mubr.bf16.mxu1 %v15584_v40  ;;  %v14657_v50 = vld [vmem:[#allocation5 + $0x14b0] sm:$0xff]   ;;  %v14659_v56 = vld [vmem:[#allocation5 + $0x1428] sm:$0xff]  }
 0x2c3   : > { %v13053_v62 = vpop.f32.mrf.mxu0  ;;  %v13074_v1 = vadd.f32 %v13073_v63, %v13072_v58  ;;  %13366 = vmatprep.subr.bf16.mxu1 %v14623_v59  ;;  %v14660_v59 = vld [vmem:[#allocation5 + $0x14e8] sm:$0xff]  }
 0x2c4   : > { %v4685_v0 = vadd.f32 %v13052_v60, %v15566_v20  ;;  %13345 = vmatpush3.bf16.msra.mxu0 %v14622_v54  ;;  %v13075_v17 = vpop.f32.mrf.mxu1  ;;  %v14641_v20 = vld [vmem:[#allocation5 + $0x1348] sm:$0xff]  }
 0x2c5   : > { %v13054_v3 = vpop.f32.mrf.mxu0  ;;  %13346 = vmatprep.subr.bf16.mxu0 %v14625_v61  ;;  %v14661_v62 = vld [vmem:[#allocation5 + $0x14a8] sm:$0xff]   ;;  %v14670_v17 = vld [vmem:[#allocation5 + $0x1450] sm:$0xff]  }
 0x2c6   : > { %v15572_v33 = vadd.f32 %v13074_v1, %v4685_v0  ;;  %v13076_v8 = vpop.f32.mrf.mxu1  ;;  %13367 = vmatpush3.bf16.msra.mxu1 %v14624_v41  ;;  %v14663_v41 = vld [vmem:[#allocation5 + $0x1420] sm:$0xff]   ;;  %v14666_v1 = vld [vmem:[#allocation5 + $0x1458] sm:$0xff]  }
 0x2c7   : > { %13368 = vmatprep.subr.bf16.mxu1 %v14627_v5  ;;  %v14664_v0 = vld [vmem:[#allocation5 + $0x14e0] sm:$0xff]   ;;  %v14667_v3 = vld [vmem:[#allocation5 + $0x1418] sm:$0xff]   ;;  %v14674_v8 = vld [vmem:[#allocation5 + $0x1448] sm:$0xff]  }
 0x2c8   : > { %13347 = vmatpush3.bf16.msra.mxu0 %v14626_v2  ;;  %v14665_v2 = vld [vmem:[#allocation5 + $0x14a0] sm:$0xff]   ;;  %v14668_v5 = vld [vmem:[#allocation5 + $0x14d8] sm:$0xff]  }
 0x2c9   : > { %13348 = vmatprep.subr.bf16.mxu0 %v14629_v7  ;;  %v14671_v7 = vld [vmem:[#allocation5 + $0x1410] sm:$0xff]  }
 0x2ca   : > { %13369 = vmatpush3.bf16.msra.mxu1 %v14628_v4  ;;  %v14672_v4 = vld [vmem:[#allocation5 + $0x14d0] sm:$0xff]  }
 0x2cb   : > { %13370 = vmatprep.subr.bf16.mxu1 %v14631_v10  ;;  %v14675_v10 = vld [vmem:[#allocation5 + $0x1408] sm:$0xff]  }
 0x2cc   : > { %13349 = vmatpush3.bf16.msra.mxu0 %v14630_v9  ;;  %v14673_v9 = vld [vmem:[#allocation5 + $0x1490] sm:$0xff]  }
 0x2cd   : > { %13350 = vmatprep.subr.bf16.mxu0 %v14633_v11  ;;  %v14676_v11 = vld [vmem:[#allocation5 + $0x14c8] sm:$0xff]  }
 0x2ce   : > { %13371 = vmatpush3.bf16.msra.mxu1 %v14632_v12  ;;  %v14678_v12 = vld [vmem:[#allocation5 + $0x1440] sm:$0xff]  }
 0x2cf   : > { %13372 = vmatprep.subr.bf16.mxu1 %v14635_v14  ;;  %v14679_v14 = vld [vmem:[#allocation5 + $0x1400] sm:$0xff]  }
 0x2d0   : > { %13351 = vmatpush3.bf16.msra.mxu0 %v14634_v13  ;;  %v14677_v13 = vld [vmem:[#allocation5 + $0x1488] sm:$0xff]  }
 0x2d1   : > { %13352 = vmatprep.subr.bf16.mxu0 %v14637_v16  ;;  %v14680_v16 = vld [vmem:[#allocation5 + $0x14c0] sm:$0xff]  }
 0x2d2   : > { %13373 = vmatpush3.bf16.msra.mxu1 %v14636_v6  ;;  %v14682_v6 = vld [vmem:[#allocation5 + $0x1578] sm:$0xff]  }
 0x2d3   : > { %13374 = vmatprep.subr.bf16.mxu1 %v14639_v19  ;;  %v7371_v19 = vrot.slane %v15579_v30, 1 }
 0x2d4   : > { %13353 = vmatpush3.bf16.msra.mxu0 %v14638_v18  ;;  %v14681_v18 = vld [vmem:[#allocation5 + $0x1480] sm:$0xff]  }
 0x2d5   : > { %13354 = vmatprep.subr.bf16.mxu0 %v14641_v20  ;;  %v14683_v20 = vld [vmem:[#allocation5 + $0x1538] sm:$0xff]  }
 0x2d6   : > { %13375 = vmatpush3.bf16.msra.mxu1 %v14640_v21  ;;  %v14684_v21 = vld [vmem:[#allocation5 + $0x15f8] sm:$0xff]  }
 0x2d7   : > { %13376 = vmatprep.subr.bf16.mxu1 %v14643_v23  ;;  %v7720_v23 = vrot.slane %v15584_v40, 3  ;;  %v14692_v40 = vld [vmem:[#allocation5 + $0x15e8] sm:$0xff]  }
 0x2d8   : > { %13355 = vmatpush3.bf16.msra.mxu0 %v14642_v22  ;;  %v14686_v22 = vld [vmem:[#allocation5 + $0x1570] sm:$0xff]  }
 0x2d9   : > { %13356 = vmatprep.subr.bf16.mxu0 %v14645_v15  ;;  %v7545_v15 = vrot.slane %v15579_v30, 2 }
 0x2da   : > { %13377 = vmatpush3.bf16.msra.mxu1 %v14644_v42  ;;  %v14685_v42 = vld [vmem:[#allocation5 + $0x15b8] sm:$0xff]  }
 0x2db   : > { %13378 = vmatprep.subr.bf16.mxu1 %v14647_v26  ;;  %v14687_v26 = vld [vmem:[#allocation5 + $0x1530] sm:$0xff]  }
 0x2dc   : > { %13357 = vmatpush3.bf16.msra.mxu0 %v14646_v25 }
 0x2dd   : > { %13386 = vmatprep.subr.bf16.mxu0 %v14649_v29 }
 0x2de   : > { %13379 = vmatpush3.bf16.msra.mxu1 %v14648_v28  ;;  %v14688_v28 = vld [vmem:[#allocation5 + $0x15f0] sm:$0xff]  }
 0x2df   : > { %v13094_v37 = vpop.f32.mrf.mxu0  ;;  %7149 = vmatmul.mubr.bf16.vlgmr.msra.gmra.mxu0 %v7016_v24  ;;  %13408 = vmatprep.subr.bf16.mxu1 %v14652_v35 }
 0x2e0   : > { %13387 = vmatpush3.bf16.msra.mxu0 %v14651_v31  ;;  %v13116_v39 = vpop.f32.mrf.mxu1  ;;  %7503 = vmatprep.mubr.bf16.mxu0 %v7372_v47  ;;  %v14690_v31 = vld [vmem:[#allocation5 + $0x1568] sm:$0xff]  }
 0x2e1   : > { %v13095_v57 = vpop.f32.mrf.mxu0  ;;  %13388 = vmatprep.subr.bf16.mxu0 %v14654_v36  ;;  %7330 = vmatmul.mubr.bf16.vlgmr.msra.gmra.mxu1 %v15550_v51  ;;  %v14662_v51 = vld [vmem:[#allocation5 + $0x1460] sm:$0xff]   ;;  %v14691_v36 = vld [vmem:[#allocation5 + $0x1528] sm:$0xff]  }
 0x2e2   : > { %v13096_v45 = vadd.f32 %v13095_v57, %v13094_v37  ;;  %v13117_v49 = vpop.f32.mrf.mxu1  ;;  %13409 = vmatpush3.bf16.msra.mxu1 %v14653_v38  ;;  %7677 = vmatprep.mubr.bf16.mxu1 %v7546_v52  ;;  %v14694_v57 = vld [vmem:[#allocation5 + $0x1560] sm:$0xff]   ;;  %v14699_v52 = vld [vmem:[#allocation5 + $0x1518] sm:$0xff]  }
 0x2e3   : > { %v13097_v48 = vpop.f32.mrf.mxu0  ;;  %v13118_v54 = vadd.f32 %v13117_v49, %v13116_v39  ;;  %13410 = vmatprep.subr.bf16.mxu1 %v14656_v44  ;;  %v14698_v49 = vld [vmem:[#allocation5 + $0x1558] sm:$0xff]  }
 0x2e4   : > { %v5033_v53 = vadd.f32 %v13096_v45, %v15572_v33  ;;  %13389 = vmatpush3.bf16.msra.mxu0 %v14655_v43  ;;  %v13119_v60 = vpop.f32.mrf.mxu1  ;;  %v14669_v33 = vld [vmem:[#allocation5 + $0x1498] sm:$0xff]   ;;  %v14693_v45 = vld [vmem:[#allocation5 + $0x15a8] sm:$0xff]   ;;  %v14696_v48 = vld [vmem:[#allocation5 + $0x15e0] sm:$0xff]  }
 0x2e5   : > { %v13098_v58 = vpop.f32.mrf.mxu0  ;;  %13390 = vmatprep.subr.bf16.mxu0 %v14658_v46  ;;  %v14695_v46 = vld [vmem:[#allocation5 + $0x1520] sm:$0xff]   ;;  %v14706_v60 = vld [vmem:[#allocation5 + $0x1548] sm:$0xff]  }
 0x2e6   : > { %v15591_v61 = vadd.f32 %v13118_v54, %v5033_v53  ;;  %v13120_v63 = vpop.f32.mrf.mxu1  ;;  %13411 = vmatpush3.bf16.msra.mxu1 %v14657_v50  ;;  %v14697_v50 = vld [vmem:[#allocation5 + $0x15a0] sm:$0xff]   ;;  %v14700_v53 = vld [vmem:[#allocation5 + $0x15d8] sm:$0xff]   ;;  %v14702_v54 = vld [vmem:[#allocation5 + $0x1550] sm:$0xff]  }
 0x2e7   : > { %13412 = vmatprep.subr.bf16.mxu1 %v14660_v59  ;;  %v14703_v58 = vld [vmem:[#allocation5 + $0x1510] sm:$0xff]   ;;  %v14710_v63 = vld [vmem:[#allocation5 + $0x1540] sm:$0xff]  }
 0x2e8   : > { %13391 = vmatpush3.bf16.msra.mxu0 %v14659_v56  ;;  %v14701_v56 = vld [vmem:[#allocation5 + $0x1598] sm:$0xff]   ;;  %v14704_v59 = vld [vmem:[#allocation5 + $0x15d0] sm:$0xff]  }
 0x2e9   : > { %13392 = vmatprep.subr.bf16.mxu0 %v14662_v51  ;;  %v14707_v51 = vld [vmem:[#allocation5 + $0x1508] sm:$0xff]  }
 0x2ea   : > { %13413 = vmatpush3.bf16.msra.mxu1 %v14661_v62  ;;  %v14708_v62 = vld [vmem:[#allocation5 + $0x15c8] sm:$0xff]  }
 0x2eb   : > { %13414 = vmatprep.subr.bf16.mxu1 %v14664_v0  ;;  %v14711_v0 = vld [vmem:[#allocation5 + $0x1500] sm:$0xff]  }
 0x2ec   : > { %13393 = vmatpush3.bf16.msra.mxu0 %v14663_v41  ;;  %v14709_v41 = vld [vmem:[#allocation5 + $0x1588] sm:$0xff]  }
 0x2ed   : > { %13394 = vmatprep.subr.bf16.mxu0 %v14666_v1  ;;  %v14712_v1 = vld [vmem:[#allocation5 + $0x15c0] sm:$0xff]  }
 0x2ee   : > { %13415 = vmatpush3.bf16.msra.mxu1 %v14665_v2  ;;  %v14714_v2 = vld [vmem:[#allocation5 + $0x1678] sm:$0xff]  }
 0x2ef   : > { %13416 = vmatprep.subr.bf16.mxu1 %v14668_v5  ;;  %v14713_v5 = vld [vmem:[#allocation5 + $0x1580] sm:$0xff]  }
 0x2f0   : > { %13395 = vmatpush3.bf16.msra.mxu0 %v14667_v3  ;;  %v15600_v3 = vld [vmem:[%s15387_s11 + $0x38] sm:$0xf] }
 0x2f1   : > { %13396 = vmatprep.subr.bf16.mxu0 %v14670_v17  ;;  %v15604_v17 = vcombine.low %v15575_v27, %v15600_v3 }
 0x2f2   : > { %13417 = vmatpush3.bf16.msra.mxu1 %v14669_v33  ;;  %v7719_v33 = vrot.slane %v15579_v30, 3  ;;  %v14721_v30 = vld [vmem:[#allocation5 + $0x16f0] sm:$0xff]  }
 0x2f3   : > { %13418 = vmatprep.subr.bf16.mxu1 %v14672_v4  ;;  %v7864_v4 = vshrl.u32 %v15604_v17, 16 }
 0x2f4   : > { %13397 = vmatpush3.bf16.msra.mxu0 %v14671_v7  ;;  %v14716_v7 = vld [vmem:[#allocation5 + $0x1638] sm:$0xff]  }
 0x2f5   : > { %13398 = vmatprep.subr.bf16.mxu0 %v14674_v8  ;;  %v7866_v8 = vshll.u32 %v15604_v17, 16 }
 0x2f6   : > { %13419 = vmatpush3.bf16.msra.mxu1 %v14673_v9  ;;  %v14717_v9 = vld [vmem:[#allocation5 + $0x16f8] sm:$0xff]  }
 0x2f7   : > { %13420 = vmatprep.subr.bf16.mxu1 %v14676_v11  ;;  %v7868_v11 = vrot.slane %v7866_v8, 1  ;;  %v14754_v8 = vld [vmem:[#allocation5 + $0x17b0] sm:$0xff]  }
 0x2f8   : > { %13399 = vmatpush3.bf16.msra.mxu0 %v14675_v10  ;;  %v14719_v10 = vld [vmem:[#allocation5 + $0x1670] sm:$0xff]  }
 0x2f9   : > { %13400 = vmatprep.subr.bf16.mxu0 %v14678_v12  ;;  %v14718_v12 = vld [vmem:[#allocation5 + $0x16b8] sm:$0xff]  }
 0x2fa   : > { %13421 = vmatpush3.bf16.msra.mxu1 %v14677_v13 }
 0x2fb   : > { %13422 = vmatprep.subr.bf16.mxu1 %v14680_v16  ;;  %v15609_v16 = vor.u32 %v7868_v11, %v7864_v4 }
 0x2fc   : > { %13401 = vmatpush3.bf16.msra.mxu0 %v14679_v14  ;;  %v14720_v14 = vld [vmem:[#allocation5 + $0x1630] sm:$0xff]  }
 0x2fd   : > { %13430 = vmatprep.subr.bf16.mxu0 %v14682_v6 }
 0x2fe   : > { %13423 = vmatpush3.bf16.msra.mxu1 %v14681_v18  ;;  %v14723_v18 = vld [vmem:[#allocation5 + $0x1668] sm:$0xff]  }
 0x2ff   : > { %v13138_v25 = vpop.f32.mrf.mxu0  ;;  %7504 = vmatmul.mubr.bf16.vlgmr.msra.gmra.mxu0 %v7371_v19  ;;  %13452 = vmatprep.subr.bf16.mxu1 %v14684_v21  ;;  %v14722_v21 = vld [vmem:[#allocation5 + $0x16b0] sm:$0xff]  }
 0x300   : > { %13431 = vmatpush3.bf16.msra.mxu0 %v14683_v20  ;;  %v13160_v24 = vpop.f32.mrf.mxu1  ;;  %7851 = vmatprep.mubr.bf16.mxu0 %v7720_v23 }
 0x301   : > { %v13139_v29 = vpop.f32.mrf.mxu0  ;;  %13432 = vmatprep.subr.bf16.mxu0 %v14686_v22  ;;  %7678 = vmatmul.mubr.bf16.vlgmr.msra.gmra.mxu1 %v7545_v15  ;;  %v8075_v22 = vrot.slane %v15609_v16, 1  ;;  %v14724_v15 = vld [vmem:[#allocation5 + $0x1628] sm:$0xff]  }
 0x302   : > { %v13140_v32 = vadd.f32 %v13139_v29, %v13138_v25  ;;  %13453 = vmatpush3.bf16.msra.mxu1 %v14685_v42  ;;  %v13161_v55 = vpop.f32.mrf.mxu1  ;;  %8032 = vmatprep.mubr.bf16.mxu1 %v15609_v16  ;;  %v8249_v42 = vrot.slane %v15609_v16, 2 }
 0x303   : > { %v13141_v35 = vpop.f32.mrf.mxu0  ;;  %v13162_v38 = vadd.f32 %v13161_v55, %v13160_v24  ;;  %13454 = vmatprep.subr.bf16.mxu1 %v14688_v28  ;;  %v14725_v28 = vld [vmem:[#allocation5 + $0x16e8] sm:$0xff]   ;;  %v14729_v55 = vld [vmem:[#allocation5 + $0x16e0] sm:$0xff]  }
 0x304   : > { %v5388_v37 = vadd.f32 %v13140_v32, %v15591_v61  ;;  %13433 = vmatpush3.bf16.msra.mxu0 %v14687_v26  ;;  %v13163_v39 = vpop.f32.mrf.mxu1  ;;  %v14705_v61 = vld [vmem:[#allocation5 + $0x1590] sm:$0xff]   ;;  %v14726_v32 = vld [vmem:[#allocation5 + $0x16a8] sm:$0xff]   ;;  %v14728_v35 = vld [vmem:[#allocation5 + $0x1620] sm:$0xff]  }
 0x305   : > { %v13142_v43 = vpop.f32.mrf.mxu0  ;;  %13434 = vmatprep.subr.bf16.mxu0 %v14690_v31  ;;  %v14727_v31 = vld [vmem:[#allocation5 + $0x1660] sm:$0xff]   ;;  %v14734_v39 = vld [vmem:[#allocation5 + $0x1698] sm:$0xff]  }
 0x306   : > { %v15597_v44 = vadd.f32 %v13162_v38, %v5388_v37  ;;  %13455 = vmatpush3.bf16.msra.mxu1 %v14689_v34  ;;  %v13164_v47 = vpop.f32.mrf.mxu1  ;;  %v14731_v37 = vld [vmem:[#allocation5 + $0x1658] sm:$0xff]   ;;  %v14730_v38 = vld [vmem:[#allocation5 + $0x16a0] sm:$0xff]  }
 0x307   : > { %13456 = vmatprep.subr.bf16.mxu1 %v14692_v40  ;;  %v14732_v40 = vld [vmem:[#allocation5 + $0x1618] sm:$0xff]   ;;  %v14738_v47 = vld [vmem:[#allocation5 + $0x1690] sm:$0xff]  }
 0x308   : > { %13435 = vmatpush3.bf16.msra.mxu0 %v14691_v36  ;;  %v14733_v43 = vld [vmem:[#allocation5 + $0x16d8] sm:$0xff]  }
 0x309   : > { %13436 = vmatprep.subr.bf16.mxu0 %v14694_v57  ;;  %v14735_v57 = vld [vmem:[#allocation5 + $0x1650] sm:$0xff]  }
 0x30a   : > { %13457 = vmatpush3.bf16.msra.mxu1 %v14693_v45  ;;  %v14737_v45 = vld [vmem:[#allocation5 + $0x16d0] sm:$0xff]  }
 0x30b   : > { %13458 = vmatprep.subr.bf16.mxu1 %v14696_v48  ;;  %v14740_v48 = vld [vmem:[#allocation5 + $0x1608] sm:$0xff]  }
 0x30c   : > { %13437 = vmatpush3.bf16.msra.mxu0 %v14695_v46  ;;  %v14739_v46 = vld [vmem:[#allocation5 + $0x1648] sm:$0xff]  }
 0x30d   : > { %13438 = vmatprep.subr.bf16.mxu0 %v14698_v49  ;;  %v14741_v49 = vld [vmem:[#allocation5 + $0x16c8] sm:$0xff]  }
 0x30e   : > { %13459 = vmatpush3.bf16.msra.mxu1 %v14697_v50  ;;  %v14743_v50 = vld [vmem:[#allocation5 + $0x1640] sm:$0xff]  }
 0x30f   : > { %13460 = vmatprep.subr.bf16.mxu1 %v14700_v53  ;;  %v14744_v53 = vld [vmem:[#allocation5 + $0x1600] sm:$0xff]  }
 0x310   : > { %13439 = vmatpush3.bf16.msra.mxu0 %v14699_v52  ;;  %v14742_v52 = vld [vmem:[#allocation5 + $0x1688] sm:$0xff]  }
 0x311   : > { %13440 = vmatprep.subr.bf16.mxu0 %v14702_v54  ;;  %v14745_v54 = vld [vmem:[#allocation5 + $0x16c0] sm:$0xff]  }
 0x312   : > { %13461 = vmatpush3.bf16.msra.mxu1 %v14701_v56  ;;  %v14747_v56 = vld [vmem:[#allocation5 + $0x1778] sm:$0xff]  }
 0x313   : > { %13462 = vmatprep.subr.bf16.mxu1 %v14704_v59  ;;  %v8074_v59 = vrot.slane %v15604_v17, 1 }
 0x314   : > { %13441 = vmatpush3.bf16.msra.mxu0 %v14703_v58  ;;  %v14746_v58 = vld [vmem:[#allocation5 + $0x1680] sm:$0xff]  }
 0x315   : > { %13442 = vmatprep.subr.bf16.mxu0 %v14706_v60  ;;  %v14748_v60 = vld [vmem:[#allocation5 + $0x1738] sm:$0xff]  }
 0x316   : > { %13463 = vmatpush3.bf16.msra.mxu1 %v14705_v61  ;;  %v14749_v61 = vld [vmem:[#allocation5 + $0x17f8] sm:$0xff]  }
 0x317   : > { %13464 = vmatprep.subr.bf16.mxu1 %v14708_v62  ;;  %v14750_v62 = vld [vmem:[#allocation5 + $0x17b8] sm:$0xff]  }
 0x318   : > { %13443 = vmatpush3.bf16.msra.mxu0 %v14707_v51  ;;  %v14751_v51 = vld [vmem:[#allocation5 + $0x1770] sm:$0xff]  }
 0x319   : > { %13444 = vmatprep.subr.bf16.mxu0 %v14710_v63  ;;  %v8423_v63 = vrot.slane %v15609_v16, 3 }
 0x31a   : > { %13465 = vmatpush3.bf16.msra.mxu1 %v14709_v41 }
 0x31b   : > { %13466 = vmatprep.subr.bf16.mxu1 %v14712_v1  ;;  %v14752_v1 = vld [vmem:[#allocation5 + $0x1730] sm:$0xff]  }
 0x31c   : > { %13445 = vmatpush3.bf16.msra.mxu0 %v14711_v0  ;;  %v8248_v0 = vrot.slane %v15604_v17, 2 }
 0x31d   : > { %13474 = vmatprep.subr.bf16.mxu0 %v14714_v2  ;;  %v14753_v2 = vld [vmem:[#allocation5 + $0x17f0] sm:$0xff]  }
 0x31e   : > { %13467 = vmatpush3.bf16.msra.mxu1 %v14713_v5 }
 0x31f   : > { %v13182_v13 = vpop.f32.mrf.mxu0  ;;  %7852 = vmatmul.mubr.bf16.vlgmr.msra.gmra.mxu0 %v7719_v33  ;;  %13496 = vmatprep.subr.bf16.mxu1 %v14717_v9  ;;  %v14755_v33 = vld [vmem:[#allocation5 + $0x1768] sm:$0xff]  }
 0x320   : > { %13475 = vmatpush3.bf16.msra.mxu0 %v14716_v7  ;;  %v13204_v20 = vpop.f32.mrf.mxu1  ;;  %8206 = vmatprep.mubr.bf16.mxu0 %v8075_v22 }
 0x321   : > { %v13183_v6 = vpop.f32.mrf.mxu0  ;;  %13476 = vmatprep.subr.bf16.mxu0 %v14719_v10  ;;  %8033 = vmatmul.mubr.bf16.vlgmr.msra.gmra.mxu1 %v15575_v27  ;;  %v14756_v10 = vld [vmem:[#allocation5 + $0x1728] sm:$0xff]  }
 0x322   : > { %v13184_v19 = vadd.f32 %v13183_v6, %v13182_v13  ;;  %13497 = vmatpush3.bf16.msra.mxu1 %v14718_v12  ;;  %v13205_v26 = vpop.f32.mrf.mxu1  ;;  %8380 = vmatprep.mubr.bf16.mxu1 %v8249_v42  ;;  %v14757_v13 = vld [vmem:[#allocation5 + $0x17e8] sm:$0xff]   ;;  %v14764_v42 = vld [vmem:[#allocation5 + $0x1718] sm:$0xff]  }
 0x323   : > { %v13185_v23 = vpop.f32.mrf.mxu0  ;;  %v13206_v29 = vadd.f32 %v13205_v26, %v13204_v20  ;;  %13498 = vmatprep.subr.bf16.mxu1 %v14721_v30  ;;  %v14759_v30 = vld [vmem:[#allocation5 + $0x1760] sm:$0xff]   ;;  %v14758_v6 = vld [vmem:[#allocation5 + $0x17a8] sm:$0xff]   ;;  %v14767_v26 = vld [vmem:[#allocation5 + $0x1750] sm:$0xff]  }
 0x324   : > { %v5736_v25 = vadd.f32 %v13184_v19, %v15597_v44  ;;  %13477 = vmatpush3.bf16.msra.mxu0 %v14720_v14  ;;  %v13207_v34 = vpop.f32.mrf.mxu1  ;;  %v14736_v44 = vld [vmem:[#allocation5 + $0x1610] sm:$0xff]   ;;  %v14760_v20 = vld [vmem:[#allocation5 + $0x1720] sm:$0xff]   ;;  %v14763_v23 = vld [vmem:[#allocation5 + $0x1758] sm:$0xff]  }
 0x325   : > { %v13186_v24 = vpop.f32.mrf.mxu0  ;;  %13478 = vmatprep.subr.bf16.mxu0 %v14723_v18  ;;  %v14772_v34 = vld [vmem:[#allocation5 + $0x1708] sm:$0xff]  }
 0x326   : > { %v15616_v27 = vadd.f32 %v13206_v29, %v5736_v25  ;;  %13499 = vmatpush3.bf16.msra.mxu1 %v14722_v21  ;;  %v13208_v36 = vpop.f32.mrf.mxu1  ;;  %v14761_v21 = vld [vmem:[#allocation5 + $0x17e0] sm:$0xff]   ;;  %v14765_v25 = vld [vmem:[#allocation5 + $0x17d8] sm:$0xff]   ;;  %v14768_v29 = vld [vmem:[#allocation5 + $0x1710] sm:$0xff]  }
 0x327   : > { %13500 = vmatprep.subr.bf16.mxu1 %v14725_v28  ;;  %v14766_v28 = vld [vmem:[#allocation5 + $0x1798] sm:$0xff]   ;;  %v14769_v24 = vld [vmem:[#allocation5 + $0x17d0] sm:$0xff]   ;;  %v14776_v36 = vld [vmem:[#allocation5 + $0x1700] sm:$0xff]  }
 0x328   : > { %13479 = vmatpush3.bf16.msra.mxu0 %v14724_v15  ;;  %v14762_v15 = vld [vmem:[#allocation5 + $0x17a0] sm:$0xff]  }
 0x329   : > { %13480 = vmatprep.subr.bf16.mxu0 %v14727_v31  ;;  %v14771_v31 = vld [vmem:[#allocation5 + $0x1748] sm:$0xff]  }
 0x32a   : > { %13501 = vmatpush3.bf16.msra.mxu1 %v14726_v32  ;;  %v14770_v32 = vld [vmem:[#allocation5 + $0x1790] sm:$0xff]  }
 0x32b   : > { %13502 = vmatprep.subr.bf16.mxu1 %v14729_v55  ;;  %v14774_v55 = vld [vmem:[#allocation5 + $0x1788] sm:$0xff]  }
 0x32c   : > { %13481 = vmatpush3.bf16.msra.mxu0 %v14728_v35  ;;  %v14775_v35 = vld [vmem:[#allocation5 + $0x1740] sm:$0xff]  }
 0x32d   : > { %13482 = vmatprep.subr.bf16.mxu0 %v14731_v37  ;;  %v14777_v37 = vld [vmem:[#allocation5 + $0x17c0] sm:$0xff]  }
 0x32e   : > { %13503 = vmatpush3.bf16.msra.mxu1 %v14730_v38  ;;  %v14779_v38 = vld [vmem:[#allocation5 + $0x1878] sm:$0xff]  }
 0x32f   : > { %13504 = vmatprep.subr.bf16.mxu1 %v14733_v43  ;;  %v14778_v43 = vld [vmem:[#allocation5 + $0x1780] sm:$0xff]  }
 0x330   : > { %13483 = vmatpush3.bf16.msra.mxu0 %v14732_v40  ;;  %v15625_v40 = vld [vmem:[%s15387_s11 + $0x3c] sm:$0xf] }
 0x331   : > { %13484 = vmatprep.subr.bf16.mxu0 %v14735_v57  ;;  %v15629_v57 = vcombine.low %v15600_v3, %v15625_v40 }
 0x332   : > { %13505 = vmatpush3.bf16.msra.mxu1 %v14734_v39  ;;  %v8422_v39 = vrot.slane %v15604_v17, 3  ;;  %v14785_v17 = vld [vmem:[#allocation5 + $0x1830] sm:$0xff]  }
 0x333   : > { %13506 = vmatprep.subr.bf16.mxu1 %v14737_v45  ;;  %v8567_v45 = vshrl.u32 %v15629_v57, 16 }
 0x334   : > { %13485 = vmatpush3.bf16.msra.mxu0 %v14736_v44  ;;  %v14781_v44 = vld [vmem:[#allocation5 + $0x1838] sm:$0xff]  }
 0x335   : > { %13486 = vmatprep.subr.bf16.mxu0 %v14739_v46  ;;  %v8569_v46 = vshll.u32 %v15629_v57, 16 }
 0x336   : > { %13507 = vmatpush3.bf16.msra.mxu1 %v14738_v47  ;;  %v14782_v47 = vld [vmem:[#allocation5 + $0x18f8] sm:$0xff]  }
 0x337   : > { %13508 = vmatprep.subr.bf16.mxu1 %v14741_v49  ;;  %v14784_v49 = vld [vmem:[#allocation5 + $0x1870] sm:$0xff]  }
 0x338   : > { %13487 = vmatpush3.bf16.msra.mxu0 %v14740_v48  ;;  %v8571_v48 = vrot.slane %v8569_v46, 1 }
 0x339   : > { %13488 = vmatprep.subr.bf16.mxu0 %v14743_v50 }
 0x33a   : > { %13509 = vmatpush3.bf16.msra.mxu1 %v14742_v52  ;;  %v14783_v52 = vld [vmem:[#allocation5 + $0x18b8] sm:$0xff]  }
 0x33b   : > { %13510 = vmatprep.subr.bf16.mxu1 %v14745_v54 }
 0x33c   : > { %13489 = vmatpush3.bf16.msra.mxu0 %v14744_v53  ;;  %v15634_v53 = vor.u32 %v8571_v48, %v8567_v45  ;;  %v14820_v45 = vld [vmem:[#allocation5 + $0x1968] sm:$0xff]  }
 0x33d   : > { %13518 = vmatprep.subr.bf16.mxu0 %v14747_v56  ;;  %v14786_v56 = vld [vmem:[#allocation5 + $0x18f0] sm:$0xff]  }
 0x33e   : > { %13511 = vmatpush3.bf16.msra.mxu1 %v14746_v58 }
 0x33f   : > { %v13226_v41 = vpop.f32.mrf.mxu0  ;;  %8207 = vmatmul.mubr.bf16.vlgmr.msra.gmra.mxu0 %v8074_v59  ;;  %13540 = vmatprep.subr.bf16.mxu1 %v14749_v61  ;;  %v8778_v61 = vrot.slane %v15634_v53, 1 }
 0x340   : > { %13519 = vmatpush3.bf16.msra.mxu0 %v14748_v60  ;;  %8554 = vmatprep.mubr.bf16.mxu0 %v8423_v63  ;;  %v14788_v60 = vld [vmem:[#allocation5 + $0x1868] sm:$0xff]   ;;  %v8952_v63 = vrot.slane %v15634_v53, 2 }
 0x341   : > { %v13227_v5 = vpop.f32.mrf.mxu0  ;;  %13520 = vmatprep.subr.bf16.mxu0 %v14751_v51  ;;  %v13248_v4 = vpop.f32.mrf.mxu1  ;;  %8381 = vmatmul.mubr.bf16.vlgmr.msra.gmra.mxu1 %v8248_v0 }
 0x342   : > { %v13228_v7 = vadd.f32 %v13227_v5, %v13226_v41  ;;  %13541 = vmatpush3.bf16.msra.mxu1 %v14750_v62  ;;  %8735 = vmatprep.mubr.bf16.mxu1 %v15634_v53  ;;  %v14787_v62 = vld [vmem:[#allocation5 + $0x18b0] sm:$0xff]  }
 0x343   : > { %v13229_v9 = vpop.f32.mrf.mxu0  ;;  %v13249_v12 = vpop.f32.mrf.mxu1  ;;  %13542 = vmatprep.subr.bf16.mxu1 %v14753_v2 }
 0x344   : > { %v6105_v11 = vadd.f32 %v13228_v7, %v15616_v27  ;;  %13521 = vmatpush3.bf16.msra.mxu0 %v14752_v1  ;;  %v13250_v14 = vadd.f32 %v13249_v12, %v13248_v4  ;;  %v14773_v27 = vld [vmem:[#allocation5 + $0x17c8] sm:$0xff]   ;;  %v14792_v7 = vld [vmem:[#allocation5 + $0x1860] sm:$0xff]   ;;  %v14796_v12 = vld [vmem:[#allocation5 + $0x1858] sm:$0xff]  }
 0x345   : > { %v13230_v16 = vpop.f32.mrf.mxu0  ;;  %13522 = vmatprep.subr.bf16.mxu0 %v14755_v33  ;;  %v13251_v18 = vpop.f32.mrf.mxu1  ;;  %v14789_v1 = vld [vmem:[#allocation5 + $0x1828] sm:$0xff]   ;;  %v14793_v9 = vld [vmem:[#allocation5 + $0x1820] sm:$0xff]  }
 0x346   : > { %v15622_v19 = vadd.f32 %v13250_v14, %v6105_v11  ;;  %13543 = vmatpush3.bf16.msra.mxu1 %v14754_v8  ;;  %v14790_v33 = vld [vmem:[#allocation5 + $0x18e8] sm:$0xff]   ;;  %v14794_v11 = vld [vmem:[#allocation5 + $0x18e0] sm:$0xff]   ;;  %v14797_v14 = vld [vmem:[#allocation5 + $0x1818] sm:$0xff]  }
 0x347   : > { %v13252_v22 = vpop.f32.mrf.mxu1  ;;  %13544 = vmatprep.subr.bf16.mxu1 %v14757_v13  ;;  %v14791_v8 = vld [vmem:[#allocation5 + $0x18a8] sm:$0xff]   ;;  %v14795_v13 = vld [vmem:[#allocation5 + $0x18a0] sm:$0xff]   ;;  %v14798_v16 = vld [vmem:[#allocation5 + $0x18d8] sm:$0xff]  }
 0x348   : > { %13523 = vmatpush3.bf16.msra.mxu0 %v14756_v10  ;;  %v14801_v18 = vld [vmem:[#allocation5 + $0x1810] sm:$0xff]   ;;  %v14805_v22 = vld [vmem:[#allocation5 + $0x1808] sm:$0xff]  }
 0x349   : > { %13524 = vmatprep.subr.bf16.mxu0 %v14759_v30  ;;  %v14800_v30 = vld [vmem:[#allocation5 + $0x1850] sm:$0xff]  }
 0x34a   : > { %13545 = vmatpush3.bf16.msra.mxu1 %v14758_v6  ;;  %v14799_v6 = vld [vmem:[#allocation5 + $0x1898] sm:$0xff]  }
 0x34b   : > { %13546 = vmatprep.subr.bf16.mxu1 %v14761_v21  ;;  %v14803_v21 = vld [vmem:[#allocation5 + $0x1890] sm:$0xff]  }
 0x34c   : > { %13525 = vmatpush3.bf16.msra.mxu0 %v14760_v20  ;;  %v14804_v20 = vld [vmem:[#allocation5 + $0x1848] sm:$0xff]  }
 0x34d   : > { %13526 = vmatprep.subr.bf16.mxu0 %v14763_v23  ;;  %v14806_v23 = vld [vmem:[#allocation5 + $0x18c8] sm:$0xff]  }
 0x34e   : > { %13547 = vmatpush3.bf16.msra.mxu1 %v14762_v15  ;;  %v14808_v15 = vld [vmem:[#allocation5 + $0x1840] sm:$0xff]  }
 0x34f   : > { %13548 = vmatprep.subr.bf16.mxu1 %v14765_v25  ;;  %v14809_v25 = vld [vmem:[#allocation5 + $0x1800] sm:$0xff]  }
 0x350   : > { %13527 = vmatpush3.bf16.msra.mxu0 %v14764_v42  ;;  %v14807_v42 = vld [vmem:[#allocation5 + $0x1888] sm:$0xff]  }
 0x351   : > { %13528 = vmatprep.subr.bf16.mxu0 %v14767_v26  ;;  %v14810_v26 = vld [vmem:[#allocation5 + $0x18c0] sm:$0xff]  }
 0x352   : > { %13549 = vmatpush3.bf16.msra.mxu1 %v14766_v28  ;;  %v14812_v28 = vld [vmem:[#allocation5 + $0x1978] sm:$0xff]  }
 0x353   : > { %13550 = vmatprep.subr.bf16.mxu1 %v14769_v24  ;;  %v8777_v24 = vrot.slane %v15629_v57, 1 }
 0x354   : > { %13529 = vmatpush3.bf16.msra.mxu0 %v14768_v29  ;;  %v14811_v29 = vld [vmem:[#allocation5 + $0x1880] sm:$0xff]  }
 0x355   : > { %13530 = vmatprep.subr.bf16.mxu0 %v14771_v31  ;;  %v14813_v31 = vld [vmem:[#allocation5 + $0x1938] sm:$0xff]  }
 0x356   : > { %13551 = vmatpush3.bf16.msra.mxu1 %v14770_v32  ;;  %v14814_v32 = vld [vmem:[#allocation5 + $0x19f8] sm:$0xff]  }
 0x357   : > { %13552 = vmatprep.subr.bf16.mxu1 %v14773_v27  ;;  %v9126_v27 = vrot.slane %v15634_v53, 3 }
 0x358   : > { %13531 = vmatpush3.bf16.msra.mxu0 %v14772_v34  ;;  %v14816_v34 = vld [vmem:[#allocation5 + $0x1970] sm:$0xff]  }
 0x359   : > { %13532 = vmatprep.subr.bf16.mxu0 %v14775_v35 }
 0x35a   : > { %13553 = vmatpush3.bf16.msra.mxu1 %v14774_v55  ;;  %v8951_v55 = vrot.slane %v15629_v57, 2 }
 0x35b   : > { %13554 = vmatprep.subr.bf16.mxu1 %v14777_v37  ;;  %v14817_v37 = vld [vmem:[#allocation5 + $0x1930] sm:$0xff]  }
 0x35c   : > { %13533 = vmatpush3.bf16.msra.mxu0 %v14776_v36  ;;  %v14815_v36 = vld [vmem:[#allocation5 + $0x19b8] sm:$0xff]  }
 0x35d   : > { %13562 = vmatprep.subr.bf16.mxu0 %v14779_v38 }
 0x35e   : > { %13555 = vmatpush3.bf16.msra.mxu1 %v14778_v43  ;;  %v14818_v43 = vld [vmem:[#allocation5 + $0x19f0] sm:$0xff]  }
 0x35f   : > { %v13270_v50 = vpop.f32.mrf.mxu0  ;;  %8555 = vmatmul.mubr.bf16.vlgmr.msra.gmra.mxu0 %v8422_v39  ;;  %13584 = vmatprep.subr.bf16.mxu1 %v14782_v47  ;;  %v14819_v47 = vld [vmem:[#allocation5 + $0x19b0] sm:$0xff]  }
 0x360   : > { %13563 = vmatpush3.bf16.msra.mxu0 %v14781_v44  ;;  %8909 = vmatprep.mubr.bf16.mxu0 %v8778_v61 }
 0x361   : > { %v13271_v54 = vpop.f32.mrf.mxu0  ;;  %13564 = vmatprep.subr.bf16.mxu0 %v14784_v49  ;;  %v13292_v59 = vpop.f32.mrf.mxu1  ;;  %8736 = vmatmul.mubr.bf16.vlgmr.msra.gmra.mxu1 %v15600_v3 }
 0x362   : > { %v13272_v58 = vadd.f32 %v13271_v54, %v13270_v50  ;;  %13585 = vmatpush3.bf16.msra.mxu1 %v14783_v52  ;;  %9083 = vmatprep.mubr.bf16.mxu1 %v8952_v63  ;;  %v14821_v50 = vld [vmem:[#allocation5 + $0x1928] sm:$0xff]   ;;  %v14824_v54 = vld [vmem:[#allocation5 + $0x1960] sm:$0xff]  }
 0x363   : > { %v13273_v51 = vpop.f32.mrf.mxu0  ;;  %v13293_v0 = vpop.f32.mrf.mxu1  ;;  %13586 = vmatprep.subr.bf16.mxu1 %v14786_v56  ;;  %v14827_v63 = vld [vmem:[#allocation5 + $0x19a0] sm:$0xff]  }
 0x364   : > { %v6453_v41 = vadd.f32 %v13272_v58, %v15622_v19  ;;  %13565 = vmatpush3.bf16.msra.mxu0 %v14785_v17  ;;  %v13294_v2 = vadd.f32 %v13293_v0, %v13292_v59  ;;  %v14802_v19 = vld [vmem:[#allocation5 + $0x18d0] sm:$0xff]   ;;  %v14822_v17 = vld [vmem:[#allocation5 + $0x19e8] sm:$0xff]   ;;  %v14826_v51 = vld [vmem:[#allocation5 + $0x19e0] sm:$0xff]  }
 0x365   : > { %v13274_v5 = vpop.f32.mrf.mxu0  ;;  %13566 = vmatprep.subr.bf16.mxu0 %v14788_v60  ;;  %v13295_v4 = vpop.f32.mrf.mxu1  ;;  %v14823_v59 = vld [vmem:[#allocation5 + $0x19a8] sm:$0xff]   ;;  %v14825_v60 = vld [vmem:[#allocation5 + $0x1920] sm:$0xff]   ;;  %v14830_v0 = vld [vmem:[#allocation5 + $0x19d8] sm:$0xff]  }
 0x366   : > { %v15641_v3 = vadd.f32 %v13294_v2, %v6453_v41  ;;  %13587 = vmatpush3.bf16.msra.mxu1 %v14787_v62  ;;  %v14828_v62 = vld [vmem:[#allocation5 + $0x1958] sm:$0xff]   ;;  %v14833_v5 = vld [vmem:[#allocation5 + $0x1910] sm:$0xff]  }
 0x367   : > { %v13296_v10 = vpop.f32.mrf.mxu1  ;;  %13588 = vmatprep.subr.bf16.mxu1 %v14790_v33  ;;  %v14829_v41 = vld [vmem:[#allocation5 + $0x1918] sm:$0xff]   ;;  %v14834_v33 = vld [vmem:[#allocation5 + $0x19d0] sm:$0xff]  }
 0x368   : > { %13567 = vmatpush3.bf16.msra.mxu0 %v14789_v1  ;;  %v14832_v1 = vld [vmem:[#allocation5 + $0x1950] sm:$0xff]   ;;  %v14831_v2 = vld [vmem:[#allocation5 + $0x1998] sm:$0xff]   ;;  %v14839_v10 = vld [vmem:[#allocation5 + $0x1988] sm:$0xff]  }
 0x369   : > { %13568 = vmatprep.subr.bf16.mxu0 %v14792_v7  ;;  %v14836_v7 = vld [vmem:[#allocation5 + $0x1948] sm:$0xff]   ;;  %v14835_v4 = vld [vmem:[#allocation5 + $0x1990] sm:$0xff]  }
 0x36a   : > { %13589 = vmatpush3.bf16.msra.mxu1 %v14791_v8  ;;  %v14838_v8 = vld [vmem:[#allocation5 + $0x19c8] sm:$0xff]  }
 0x36b   : > { %13590 = vmatprep.subr.bf16.mxu1 %v14794_v11  ;;  %v14841_v11 = vld [vmem:[#allocation5 + $0x1900] sm:$0xff]  }
 0x36c   : > { %13569 = vmatpush3.bf16.msra.mxu0 %v14793_v9  ;;  %v14840_v9 = vld [vmem:[#allocation5 + $0x1940] sm:$0xff]  }
 0x36d   : > { %13570 = vmatprep.subr.bf16.mxu0 %v14796_v12  ;;  %v14842_v12 = vld [vmem:[#allocation5 + $0x19c0] sm:$0xff]  }
 0x36e   : > { %13591 = vmatpush3.bf16.msra.mxu1 %v14795_v13  ;;  %v14844_v13 = vld [vmem:[#allocation5 + $0x1a78] sm:$0xff]  }
 0x36f   : > { %13592 = vmatprep.subr.bf16.mxu1 %v14798_v16  ;;  %v14843_v16 = vld [vmem:[#allocation5 + $0x1980] sm:$0xff]  }
 0x370   : > { %13571 = vmatpush3.bf16.msra.mxu0 %v14797_v14  ;;  %v15650_v14 = vld [vmem:[%s15387_s11 + $0x40] sm:$0xf] }
 0x371   : > { %13572 = vmatprep.subr.bf16.mxu0 %v14800_v30  ;;  %v9125_v30 = vrot.slane %v15629_v57, 3  ;;  %v14850_v57 = vld [vmem:[#allocation5 + $0x1a30] sm:$0xff]  }
 0x372   : > { %13593 = vmatpush3.bf16.msra.mxu1 %v14799_v6  ;;  %v15655_v6 = vcombine.low %v15625_v40, %v15650_v14 }
 0x373   : > { %13594 = vmatprep.subr.bf16.mxu1 %v14802_v19 }
 0x374   : > { %13573 = vmatpush3.bf16.msra.mxu0 %v14801_v18  ;;  %v14846_v18 = vld [vmem:[#allocation5 + $0x1a38] sm:$0xff]   ;;  %v9270_v19 = vshrl.u32 %v15655_v6, 16 }
 0x375   : > { %13574 = vmatprep.subr.bf16.mxu0 %v14804_v20  ;;  %v9272_v20 = vshll.u32 %v15655_v6, 16 }
 0x376   : > { %13595 = vmatpush3.bf16.msra.mxu1 %v14803_v21  ;;  %v14847_v21 = vld [vmem:[#allocation5 + $0x1af8] sm:$0xff]  }
 0x377   : > { %13596 = vmatprep.subr.bf16.mxu1 %v14806_v23 }
 0x378   : > { %13575 = vmatpush3.bf16.msra.mxu0 %v14805_v22  ;;  %v14849_v22 = vld [vmem:[#allocation5 + $0x1a70] sm:$0xff]  }
 0x379   : > { %13576 = vmatprep.subr.bf16.mxu0 %v14808_v15  ;;  %v9274_v15 = vrot.slane %v9272_v20, 1 }
 0x37a   : > { %13597 = vmatpush3.bf16.msra.mxu1 %v14807_v42  ;;  %v14848_v42 = vld [vmem:[#allocation5 + $0x1ab8] sm:$0xff]  }
 0x37b   : > { %13598 = vmatprep.subr.bf16.mxu1 %v14810_v26 }
 0x37c   : > { %13577 = vmatpush3.bf16.msra.mxu0 %v14809_v25  ;;  %v15659_v25 = vor.u32 %v9274_v15, %v9270_v19  ;;  %v14885_v19 = vld [vmem:[#allocation5 + $0x1b68] sm:$0xff]  }
 0x37d   : > { %13606 = vmatprep.subr.bf16.mxu0 %v14812_v28  ;;  %v14851_v28 = vld [vmem:[#allocation5 + $0x1af0] sm:$0xff]   ;;  %v14886_v15 = vld [vmem:[#allocation5 + $0x1b28] sm:$0xff]  }
 0x37e   : > { %13599 = vmatpush3.bf16.msra.mxu1 %v14811_v29 }
 0x37f   : > { %v13314_v35 = vpop.f32.mrf.mxu0  ;;  %8910 = vmatmul.mubr.bf16.vlgmr.msra.gmra.mxu0 %v8777_v24  ;;  %13628 = vmatprep.subr.bf16.mxu1 %v14814_v32 }
 0x380   : > { %13607 = vmatpush3.bf16.msra.mxu0 %v14813_v31  ;;  %9257 = vmatprep.mubr.bf16.mxu0 %v9126_v27  ;;  %v14853_v31 = vld [vmem:[#allocation5 + $0x1a68] sm:$0xff]   ;;  %v9481_v27 = vrot.slane %v15659_v25, 1 }
 0x381   : > { %v13315_v38 = vpop.f32.mrf.mxu0  ;;  %13608 = vmatprep.subr.bf16.mxu0 %v14816_v34  ;;  %v13336_v44 = vpop.f32.mrf.mxu1  ;;  %9084 = vmatmul.mubr.bf16.vlgmr.msra.gmra.mxu1 %v8951_v55  ;;  %v14852_v34 = vld [vmem:[#allocation5 + $0x1ab0] sm:$0xff]  }
 0x382   : > { %v13316_v39 = vadd.f32 %v13315_v38, %v13314_v35  ;;  %13629 = vmatpush3.bf16.msra.mxu1 %v14815_v36  ;;  %9438 = vmatprep.mubr.bf16.mxu1 %v15659_v25  ;;  %v14854_v36 = vld [vmem:[#allocation5 + $0x1a28] sm:$0xff]  }
 0x383   : > { %v13317_v46 = vpop.f32.mrf.mxu0  ;;  %v13337_v49 = vpop.f32.mrf.mxu1  ;;  %13630 = vmatprep.subr.bf16.mxu1 %v14818_v43 }
 0x384   : > { %v6808_v48 = vadd.f32 %v13316_v39, %v15641_v3  ;;  %13609 = vmatpush3.bf16.msra.mxu0 %v14817_v37  ;;  %v13338_v52 = vadd.f32 %v13337_v49, %v13336_v44  ;;  %v14837_v3 = vld [vmem:[#allocation5 + $0x1908] sm:$0xff]   ;;  %v9655_v37 = vrot.slane %v15659_v25, 2  ;;  %v14857_v44 = vld [vmem:[#allocation5 + $0x1a60] sm:$0xff]  }
 0x385   : > { %v13318_v53 = vpop.f32.mrf.mxu0  ;;  %13610 = vmatprep.subr.bf16.mxu0 %v14820_v45  ;;  %v13339_v56 = vpop.f32.mrf.mxu1  ;;  %v14855_v39 = vld [vmem:[#allocation5 + $0x1ae8] sm:$0xff]   ;;  %v14859_v49 = vld [vmem:[#allocation5 + $0x1ae0] sm:$0xff]  }
 0x386   : > { %v15647_v58 = vadd.f32 %v13338_v52, %v6808_v48  ;;  %13631 = vmatpush3.bf16.msra.mxu1 %v14819_v47  ;;  %v14856_v47 = vld [vmem:[#allocation5 + $0x1aa8] sm:$0xff]   ;;  %v14860_v52 = vld [vmem:[#allocation5 + $0x1aa0] sm:$0xff]   ;;  %v14862_v53 = vld [vmem:[#allocation5 + $0x1a18] sm:$0xff]  }
 0x387   : > { %v13340_v61 = vpop.f32.mrf.mxu1  ;;  %13632 = vmatprep.subr.bf16.mxu1 %v14822_v17  ;;  %v14863_v17 = vld [vmem:[#allocation5 + $0x1ad8] sm:$0xff]  }
 0x388   : > { %13611 = vmatpush3.bf16.msra.mxu0 %v14821_v50  ;;  %v14861_v50 = vld [vmem:[#allocation5 + $0x1a58] sm:$0xff]   ;;  %v14868_v61 = vld [vmem:[#allocation5 + $0x1a90] sm:$0xff]  }
 0x389   : > { %13612 = vmatprep.subr.bf16.mxu0 %v14824_v54  ;;  %v14865_v54 = vld [vmem:[#allocation5 + $0x1a50] sm:$0xff]   ;;  %v14864_v56 = vld [vmem:[#allocation5 + $0x1a98] sm:$0xff]  }
 0x38a   : > { %13633 = vmatpush3.bf16.msra.mxu1 %v14823_v59  ;;  %v14867_v59 = vld [vmem:[#allocation5 + $0x1ad0] sm:$0xff]  }
 0x38b   : > { %13634 = vmatprep.subr.bf16.mxu1 %v14826_v51  ;;  %v14870_v51 = vld [vmem:[#allocation5 + $0x1a08] sm:$0xff]  }
 0x38c   : > { %13613 = vmatpush3.bf16.msra.mxu0 %v14825_v60  ;;  %v14869_v60 = vld [vmem:[#allocation5 + $0x1a48] sm:$0xff]  }
 0x38d   : > { %13614 = vmatprep.subr.bf16.mxu0 %v14828_v62  ;;  %v14871_v62 = vld [vmem:[#allocation5 + $0x1ac8] sm:$0xff]  }
 0x38e   : > { %13635 = vmatpush3.bf16.msra.mxu1 %v14827_v63  ;;  %v14873_v63 = vld [vmem:[#allocation5 + $0x1a40] sm:$0xff]  }
 0x38f   : > { %13636 = vmatprep.subr.bf16.mxu1 %v14830_v0  ;;  %v14874_v0 = vld [vmem:[#allocation5 + $0x1a00] sm:$0xff]  }
 0x390   : > { %13615 = vmatpush3.bf16.msra.mxu0 %v14829_v41  ;;  %v14872_v41 = vld [vmem:[#allocation5 + $0x1a88] sm:$0xff]  }
 0x391   : > { %13616 = vmatprep.subr.bf16.mxu0 %v14832_v1  ;;  %v14875_v1 = vld [vmem:[#allocation5 + $0x1ac0] sm:$0xff]  }
 0x392   : > { %13637 = vmatpush3.bf16.msra.mxu1 %v14831_v2  ;;  %v14877_v2 = vld [vmem:[#allocation5 + $0x1b78] sm:$0xff]  }
 0x393   : > { %13638 = vmatprep.subr.bf16.mxu1 %v14834_v33  ;;  %v9480_v33 = vrot.slane %v15655_v6, 1 }
 0x394   : > { %13617 = vmatpush3.bf16.msra.mxu0 %v14833_v5  ;;  %v14876_v5 = vld [vmem:[#allocation5 + $0x1a80] sm:$0xff]  }
 0x395   : > { %13618 = vmatprep.subr.bf16.mxu0 %v14836_v7  ;;  %v14878_v7 = vld [vmem:[#allocation5 + $0x1b38] sm:$0xff]  }
 0x396   : > { %13639 = vmatpush3.bf16.msra.mxu1 %v14835_v4  ;;  %v9829_v4 = vrot.slane %v15659_v25, 3  ;;  %v14887_v25 = vld [vmem:[#allocation5 + $0x1be8] sm:$0xff]  }
 0x397   : > { %13640 = vmatprep.subr.bf16.mxu1 %v14838_v8  ;;  %v14881_v8 = vld [vmem:[#allocation5 + $0x1b70] sm:$0xff]  }
 0x398   : > { %13619 = vmatpush3.bf16.msra.mxu0 %v14837_v3  ;;  %v14879_v3 = vld [vmem:[#allocation5 + $0x1bf8] sm:$0xff]  }
 0x399   : > { %13620 = vmatprep.subr.bf16.mxu0 %v14840_v9 }
 0x39a   : > { %13641 = vmatpush3.bf16.msra.mxu1 %v14839_v10  ;;  %v14880_v10 = vld [vmem:[#allocation5 + $0x1bb8] sm:$0xff]  }
 0x39b   : > { %13642 = vmatprep.subr.bf16.mxu1 %v14842_v12  ;;  %v14882_v12 = vld [vmem:[#allocation5 + $0x1b30] sm:$0xff]  }
 0x39c   : > { %13621 = vmatpush3.bf16.msra.mxu0 %v14841_v11  ;;  %v9654_v11 = vrot.slane %v15655_v6, 2 }
 0x39d   : > { %13650 = vmatprep.subr.bf16.mxu0 %v14844_v13 }
 0x39e   : > { %13643 = vmatpush3.bf16.msra.mxu1 %v14843_v16  ;;  %v14883_v16 = vld [vmem:[#allocation5 + $0x1bf0] sm:$0xff]  }
 0x39f   : > { %v13358_v23 = vpop.f32.mrf.mxu0  ;;  %9258 = vmatmul.mubr.bf16.vlgmr.msra.gmra.mxu0 %v9125_v30  ;;  %13672 = vmatprep.subr.bf16.mxu1 %v14847_v21  ;;  %v14884_v21 = vld [vmem:[#allocation5 + $0x1bb0] sm:$0xff]  }
 0x3a0   : > { %13651 = vmatpush3.bf16.msra.mxu0 %v14846_v18  ;;  %9612 = vmatprep.mubr.bf16.mxu0 %v9481_v27  ;;  %v14893_v27 = vld [vmem:[#allocation5 + $0x1b58] sm:$0xff]  }
 0x3a1   : > { %v13359_v26 = vpop.f32.mrf.mxu0  ;;  %13652 = vmatprep.subr.bf16.mxu0 %v14849_v22  ;;  %v13380_v24 = vpop.f32.mrf.mxu1  ;;  %9439 = vmatmul.mubr.bf16.vlgmr.msra.gmra.mxu1 %v15625_v40  ;;  %v14858_v40 = vld [vmem:[#allocation5 + $0x1a20] sm:$0xff]  }
 0x3a2   : > { %v13360_v29 = vadd.f32 %v13359_v26, %v13358_v23  ;;  %13673 = vmatpush3.bf16.msra.mxu1 %v14848_v42  ;;  %9786 = vmatprep.mubr.bf16.mxu1 %v9655_v37  ;;  %v14889_v26 = vld [vmem:[#allocation5 + $0x1b60] sm:$0xff]   ;;  %v14897_v37 = vld [vmem:[#allocation5 + $0x1b50] sm:$0xff]  }
 0x3a3   : > { %v13361_v32 = vpop.f32.mrf.mxu0  ;;  %v13381_v55 = vpop.f32.mrf.mxu1  ;;  %13674 = vmatprep.subr.bf16.mxu1 %v14851_v28 }
 0x3a4   : > { %v7156_v35 = vadd.f32 %v13360_v29, %v15647_v58  ;;  %13653 = vmatpush3.bf16.msra.mxu0 %v14850_v57  ;;  %v13382_v38 = vadd.f32 %v13381_v55, %v13380_v24  ;;  %v14866_v58 = vld [vmem:[#allocation5 + $0x1a10] sm:$0xff]   ;;  %v14888_v24 = vld [vmem:[#allocation5 + $0x1ba8] sm:$0xff]   ;;  %v14894_v55 = vld [vmem:[#allocation5 + $0x1b18] sm:$0xff]  }
 0x3a5   : > { %v13362_v43 = vpop.f32.mrf.mxu0  ;;  %13654 = vmatprep.subr.bf16.mxu0 %v14853_v31  ;;  %v13383_v45 = vpop.f32.mrf.mxu1  ;;  %v14890_v31 = vld [vmem:[#allocation5 + $0x1b20] sm:$0xff]  }
 0x3a6   : > { %v15666_v46 = vadd.f32 %v13382_v38, %v7156_v35  ;;  %13675 = vmatpush3.bf16.msra.mxu1 %v14852_v34  ;;  %v14891_v34 = vld [vmem:[#allocation5 + $0x1be0] sm:$0xff]   ;;  %v14896_v38 = vld [vmem:[#allocation5 + $0x1b98] sm:$0xff]   ;;  %v14898_v43 = vld [vmem:[#allocation5 + $0x1b10] sm:$0xff]  }
 0x3a7   : > { %v13384_v48 = vpop.f32.mrf.mxu1  ;;  %13676 = vmatprep.subr.bf16.mxu1 %v14855_v39  ;;  %v14892_v35 = vld [vmem:[#allocation5 + $0x1ba0] sm:$0xff]   ;;  %v14899_v39 = vld [vmem:[#allocation5 + $0x1bd0] sm:$0xff]  }
 0x3a8   : > { %13655 = vmatpush3.bf16.msra.mxu0 %v14854_v36  ;;  %v14895_v36 = vld [vmem:[#allocation5 + $0x1bd8] sm:$0xff]   ;;  %v14900_v45 = vld [vmem:[#allocation5 + $0x1b90] sm:$0xff]   ;;  %v14904_v48 = vld [vmem:[#allocation5 + $0x1b88] sm:$0xff]  }
 0x3a9   : > { %13656 = vmatprep.subr.bf16.mxu0 %v14857_v44  ;;  %v14901_v44 = vld [vmem:[#allocation5 + $0x1b48] sm:$0xff]  }
 0x3aa   : > { %13677 = vmatpush3.bf16.msra.mxu1 %v14856_v47  ;;  %v14903_v47 = vld [vmem:[#allocation5 + $0x1bc8] sm:$0xff]  }
 0x3ab   : > { %13678 = vmatprep.subr.bf16.mxu1 %v14859_v49  ;;  %v14906_v49 = vld [vmem:[#allocation5 + $0x1b00] sm:$0xff]  }
 0x3ac   : > { %13657 = vmatpush3.bf16.msra.mxu0 %v14858_v40  ;;  %v14905_v40 = vld [vmem:[#allocation5 + $0x1b40] sm:$0xff]  }
 0x3ad   : > { %13658 = vmatprep.subr.bf16.mxu0 %v14861_v50  ;;  %v14907_v50 = vld [vmem:[#allocation5 + $0x1bc0] sm:$0xff]  }
 0x3ae   : > { %13679 = vmatpush3.bf16.msra.mxu1 %v14860_v52  ;;  %v14909_v52 = vld [vmem:[#allocation5 + $0x1c78] sm:$0xff]  }
 0x3af   : > { %13680 = vmatprep.subr.bf16.mxu1 %v14863_v17  ;;  %v14908_v17 = vld [vmem:[#allocation5 + $0x1b80] sm:$0xff]  }
 0x3b0   : > { %13659 = vmatpush3.bf16.msra.mxu0 %v14862_v53  ;;  %v15675_v53 = vld [vmem:[%s15387_s11 + $0x44] sm:$0xf] }
 0x3b1   : > { %13660 = vmatprep.subr.bf16.mxu0 %v14865_v54  ;;  %v9828_v54 = vrot.slane %v15655_v6, 3  ;;  %v14915_v6 = vld [vmem:[#allocation5 + $0x1c30] sm:$0xff]  }
 0x3b2   : > { %13681 = vmatpush3.bf16.msra.mxu1 %v14864_v56  ;;  %v15680_v56 = vcombine.low %v15650_v14, %v15675_v53 }
 0x3b3   : > { %13682 = vmatprep.subr.bf16.mxu1 %v14867_v59 }
 0x3b4   : > { %13661 = vmatpush3.bf16.msra.mxu0 %v14866_v58  ;;  %v14911_v58 = vld [vmem:[#allocation5 + $0x1c38] sm:$0xff]   ;;  %v9973_v59 = vshrl.u32 %v15680_v56, 16 }
 0x3b5   : > { %13662 = vmatprep.subr.bf16.mxu0 %v14869_v60  ;;  %v9975_v60 = vshll.u32 %v15680_v56, 16 }
 0x3b6   : > { %13683 = vmatpush3.bf16.msra.mxu1 %v14868_v61  ;;  %v14912_v61 = vld [vmem:[#allocation5 + $0x1cf8] sm:$0xff]  }
 0x3b7   : > { %13684 = vmatprep.subr.bf16.mxu1 %v14871_v62  ;;  %v9977_v62 = vrot.slane %v9975_v60, 1  ;;  %v14950_v60 = vld [vmem:[#allocation5 + $0x1d68] sm:$0xff]  }
 0x3b8   : > { %13663 = vmatpush3.bf16.msra.mxu0 %v14870_v51 }
 0x3b9   : > { %13664 = vmatprep.subr.bf16.mxu0 %v14873_v63  ;;  %v14914_v63 = vld [vmem:[#allocation5 + $0x1c70] sm:$0xff]  }
 0x3ba   : > { %13685 = vmatpush3.bf16.msra.mxu1 %v14872_v41  ;;  %v15684_v41 = vor.u32 %v9977_v62, %v9973_v59 }
 0x3bb   : > { %13686 = vmatprep.subr.bf16.mxu1 %v14875_v1  ;;  %v14913_v1 = vld [vmem:[#allocation5 + $0x1cb8] sm:$0xff]  }
 0x3bc   : > { %13665 = vmatpush3.bf16.msra.mxu0 %v14874_v0 }
 0x3bd   : > { %13694 = vmatprep.subr.bf16.mxu0 %v14877_v2 }
 0x3be   : > { %13687 = vmatpush3.bf16.msra.mxu1 %v14876_v5  ;;  %v14916_v5 = vld [vmem:[#allocation5 + $0x1cf0] sm:$0xff]  }
 0x3bf   : > { %v13402_v9 = vpop.f32.mrf.mxu0  ;;  %9613 = vmatmul.mubr.bf16.vlgmr.msra.gmra.mxu0 %v9480_v33  ;;  %13716 = vmatprep.subr.bf16.mxu1 %v14879_v3  ;;  %v10184_v3 = vrot.slane %v15684_v41, 1 }
 0x3c0   : > { %13695 = vmatpush3.bf16.msra.mxu0 %v14878_v7  ;;  %9960 = vmatprep.mubr.bf16.mxu0 %v9829_v4  ;;  %v14918_v4 = vld [vmem:[#allocation5 + $0x1c68] sm:$0xff]  }
 0x3c1   : > { %v13403_v13 = vpop.f32.mrf.mxu0  ;;  %13696 = vmatprep.subr.bf16.mxu0 %v14881_v8  ;;  %v13424_v18 = vpop.f32.mrf.mxu1  ;;  %9787 = vmatmul.mubr.bf16.vlgmr.msra.gmra.mxu1 %v9654_v11 }
 0x3c2   : > { %v13404_v30 = vadd.f32 %v13403_v13, %v13402_v9  ;;  %13717 = vmatpush3.bf16.msra.mxu1 %v14880_v10  ;;  %10141 = vmatprep.mubr.bf16.mxu1 %v15684_v41  ;;  %v14919_v9 = vld [vmem:[#allocation5 + $0x1c28] sm:$0xff]   ;;  %v10358_v10 = vrot.slane %v15684_v41, 2  ;;  %v14917_v13 = vld [vmem:[#allocation5 + $0x1cb0] sm:$0xff]  }
 0x3c3   : > { %v13405_v20 = vpop.f32.mrf.mxu0  ;;  %v13425_v23 = vpop.f32.mrf.mxu1  ;;  %13718 = vmatprep.subr.bf16.mxu1 %v14883_v16 }
 0x3c4   : > { %v7511_v22 = vadd.f32 %v13404_v30, %v15666_v46  ;;  %13697 = vmatpush3.bf16.msra.mxu0 %v14882_v12  ;;  %v13426_v42 = vadd.f32 %v13425_v23, %v13424_v18  ;;  %v14902_v46 = vld [vmem:[#allocation5 + $0x1b08] sm:$0xff]   ;;  %v14922_v18 = vld [vmem:[#allocation5 + $0x1c60] sm:$0xff]  }
 0x3c5   : > { %v13406_v57 = vpop.f32.mrf.mxu0  ;;  %13698 = vmatprep.subr.bf16.mxu0 %v14885_v19  ;;  %v13427_v28 = vpop.f32.mrf.mxu1  ;;  %v14920_v30 = vld [vmem:[#allocation5 + $0x1ce8] sm:$0xff]   ;;  %v14924_v23 = vld [vmem:[#allocation5 + $0x1ce0] sm:$0xff]  }
 0x3c6   : > { %v15672_v29 = vadd.f32 %v13426_v42, %v7511_v22  ;;  %13719 = vmatpush3.bf16.msra.mxu1 %v14884_v21  ;;  %v14921_v21 = vld [vmem:[#allocation5 + $0x1ca8] sm:$0xff]   ;;  %v14927_v42 = vld [vmem:[#allocation5 + $0x1c18] sm:$0xff]   ;;  %v14925_v57 = vld [vmem:[#allocation5 + $0x1ca0] sm:$0xff]  }
 0x3c7   : > { %v13428_v32 = vpop.f32.mrf.mxu1  ;;  %13720 = vmatprep.subr.bf16.mxu1 %v14887_v25  ;;  %v14928_v25 = vld [vmem:[#allocation5 + $0x1cd8] sm:$0xff]   ;;  %v14931_v28 = vld [vmem:[#allocation5 + $0x1c10] sm:$0xff]  }
 0x3c8   : > { %13699 = vmatpush3.bf16.msra.mxu0 %v14886_v15  ;;  %v14926_v15 = vld [vmem:[#allocation5 + $0x1c58] sm:$0xff]   ;;  %v14935_v32 = vld [vmem:[#allocation5 + $0x1c08] sm:$0xff]  }
 0x3c9   : > { %13700 = vmatprep.subr.bf16.mxu0 %v14889_v26  ;;  %v14930_v26 = vld [vmem:[#allocation5 + $0x1c50] sm:$0xff]  }
 0x3ca   : > { %13721 = vmatpush3.bf16.msra.mxu1 %v14888_v24  ;;  %v14932_v24 = vld [vmem:[#allocation5 + $0x1cd0] sm:$0xff]  }
 0x3cb   : > { %13722 = vmatprep.subr.bf16.mxu1 %v14891_v34  ;;  %v14933_v34 = vld [vmem:[#allocation5 + $0x1c90] sm:$0xff]  }
 0x3cc   : > { %13701 = vmatpush3.bf16.msra.mxu0 %v14890_v31  ;;  %v14934_v31 = vld [vmem:[#allocation5 + $0x1c48] sm:$0xff]  }
 0x3cd   : > { %13702 = vmatprep.subr.bf16.mxu0 %v14893_v27  ;;  %v14936_v27 = vld [vmem:[#allocation5 + $0x1cc8] sm:$0xff]  }
 0x3ce   : > { %13723 = vmatpush3.bf16.msra.mxu1 %v14892_v35  ;;  %v14938_v35 = vld [vmem:[#allocation5 + $0x1c40] sm:$0xff]  }
 0x3cf   : > { %13724 = vmatprep.subr.bf16.mxu1 %v14895_v36  ;;  %v14937_v36 = vld [vmem:[#allocation5 + $0x1c88] sm:$0xff]  }
 0x3d0   : > { %13703 = vmatpush3.bf16.msra.mxu0 %v14894_v55  ;;  %v14939_v55 = vld [vmem:[#allocation5 + $0x1c00] sm:$0xff]  }
 0x3d1   : > { %13704 = vmatprep.subr.bf16.mxu0 %v14897_v37  ;;  %v14940_v37 = vld [vmem:[#allocation5 + $0x1cc0] sm:$0xff]  }
 0x3d2   : > { %13725 = vmatpush3.bf16.msra.mxu1 %v14896_v38  ;;  %v10183_v38 = vrot.slane %v15680_v56, 1 }
 0x3d3   : > { %13726 = vmatprep.subr.bf16.mxu1 %v14899_v39  ;;  %v14943_v39 = vld [vmem:[#allocation5 + $0x1d38] sm:$0xff]  }
 0x3d4   : > { %13705 = vmatpush3.bf16.msra.mxu0 %v14898_v43  ;;  %v14942_v43 = vld [vmem:[#allocation5 + $0x1d78] sm:$0xff]  }
 0x3d5   : > { %13706 = vmatprep.subr.bf16.mxu0 %v14901_v44  ;;  %v10532_v44 = vrot.slane %v15684_v41, 3 }
 0x3d6   : > { %13727 = vmatpush3.bf16.msra.mxu1 %v14900_v45  ;;  %v14941_v45 = vld [vmem:[#allocation5 + $0x1c80] sm:$0xff]  }
 0x3d7   : > { %13728 = vmatprep.subr.bf16.mxu1 %v14903_v47 }
 0x3d8   : > { %13707 = vmatpush3.bf16.msra.mxu0 %v14902_v46  ;;  %v14944_v46 = vld [vmem:[#allocation5 + $0x1df8] sm:$0xff]  }
 0x3d9   : > { %13708 = vmatprep.subr.bf16.mxu0 %v14905_v40  ;;  %v14946_v40 = vld [vmem:[#allocation5 + $0x1d70] sm:$0xff]  }
 0x3da   : > { %13729 = vmatpush3.bf16.msra.mxu1 %v14904_v48  ;;  %v10357_v48 = vrot.slane %v15680_v56, 2 }
 0x3db   : > { %13730 = vmatprep.subr.bf16.mxu1 %v14907_v50 }
 0x3dc   : > { %13709 = vmatpush3.bf16.msra.mxu0 %v14906_v49  ;;  %v14947_v49 = vld [vmem:[#allocation5 + $0x1d30] sm:$0xff]  }
 0x3dd   : > { %13738 = vmatprep.subr.bf16.mxu0 %v14909_v52  ;;  %v14945_v52 = vld [vmem:[#allocation5 + $0x1db8] sm:$0xff]  }
 0x3de   : > { %13731 = vmatpush3.bf16.msra.mxu1 %v14908_v17 }
 0x3df   : > { %v13446_v51 = vpop.f32.mrf.mxu0  ;;  %9961 = vmatmul.mubr.bf16.vlgmr.msra.gmra.mxu0 %v9828_v54  ;;  %13760 = vmatprep.subr.bf16.mxu1 %v14912_v61  ;;  %v14948_v54 = vld [vmem:[#allocation5 + $0x1df0] sm:$0xff]  }
 0x3e0   : > { %13739 = vmatpush3.bf16.msra.mxu0 %v14911_v58  ;;  %10315 = vmatprep.mubr.bf16.mxu0 %v10184_v3  ;;  %v14956_v3 = vld [vmem:[#allocation5 + $0x1de0] sm:$0xff]  }
 0x3e1   : > { %v13447_v0 = vpop.f32.mrf.mxu0  ;;  %13740 = vmatprep.subr.bf16.mxu0 %v14914_v63  ;;  %v13468_v33 = vpop.f32.mrf.mxu1  ;;  %10142 = vmatmul.mubr.bf16.vlgmr.msra.gmra.mxu1 %v15650_v14  ;;  %v14923_v14 = vld [vmem:[#allocation5 + $0x1c20] sm:$0xff]  }
 0x3e2   : > { %v13448_v2 = vadd.f32 %v13447_v0, %v13446_v51  ;;  %13761 = vmatpush3.bf16.msra.mxu1 %v14913_v1  ;;  %10489 = vmatprep.mubr.bf16.mxu1 %v10358_v10  ;;  %v14951_v51 = vld [vmem:[#allocation5 + $0x1d28] sm:$0xff]   ;;  %v14954_v1 = vld [vmem:[#allocation5 + $0x1d60] sm:$0xff]  }
 0x3e3   : > { %v13449_v7 = vpop.f32.mrf.mxu0  ;;  %v13469_v11 = vpop.f32.mrf.mxu1  ;;  %13762 = vmatprep.subr.bf16.mxu1 %v14916_v5  ;;  %v14952_v0 = vld [vmem:[#allocation5 + $0x1de8] sm:$0xff]   ;;  %v14957_v10 = vld [vmem:[#allocation5 + $0x1da0] sm:$0xff]  }
 0x3e4   : > { %v7859_v8 = vadd.f32 %v13448_v2, %v15672_v29  ;;  %13741 = vmatpush3.bf16.msra.mxu0 %v14915_v6  ;;  %v13470_v16 = vadd.f32 %v13469_v11, %v13468_v33  ;;  %v14929_v29 = vld [vmem:[#allocation5 + $0x1c98] sm:$0xff]   ;;  %v14949_v6 = vld [vmem:[#allocation5 + $0x1db0] sm:$0xff]   ;;  %v14955_v33 = vld [vmem:[#allocation5 + $0x1d20] sm:$0xff]  }
 0x3e5   : > { %v13450_v12 = vpop.f32.mrf.mxu0  ;;  %13742 = vmatprep.subr.bf16.mxu0 %v14918_v4  ;;  %v13471_v19 = vpop.f32.mrf.mxu1  ;;  %v14953_v7 = vld [vmem:[#allocation5 + $0x1da8] sm:$0xff]   ;;  %v14960_v11 = vld [vmem:[#allocation5 + $0x1dd8] sm:$0xff]  }
 0x3e6   : > { %v15691_v20 = vadd.f32 %v13470_v16, %v7859_v8  ;;  %13763 = vmatpush3.bf16.msra.mxu1 %v14917_v13  ;;  %v14958_v8 = vld [vmem:[#allocation5 + $0x1d58] sm:$0xff]   ;;  %v14962_v12 = vld [vmem:[#allocation5 + $0x1d50] sm:$0xff]   ;;  %v14967_v19 = vld [vmem:[#allocation5 + $0x1d08] sm:$0xff]  }
 0x3e7   : > { %v13472_v22 = vpop.f32.mrf.mxu1  ;;  %13764 = vmatprep.subr.bf16.mxu1 %v14920_v30  ;;  %v14963_v13 = vld [vmem:[#allocation5 + $0x1d10] sm:$0xff]   ;;  %v14961_v16 = vld [vmem:[#allocation5 + $0x1d98] sm:$0xff]  }
 0x3e8   : > { %13743 = vmatpush3.bf16.msra.mxu0 %v14919_v9  ;;  %v14959_v9 = vld [vmem:[#allocation5 + $0x1d18] sm:$0xff]   ;;  %v14964_v30 = vld [vmem:[#allocation5 + $0x1dd0] sm:$0xff]   ;;  %v14971_v22 = vld [vmem:[#allocation5 + $0x1d00] sm:$0xff]  }
 0x3e9   : > { %13744 = vmatprep.subr.bf16.mxu0 %v14922_v18  ;;  %v14966_v18 = vld [vmem:[#allocation5 + $0x1d48] sm:$0xff]  }
 0x3ea   : > { %13765 = vmatpush3.bf16.msra.mxu1 %v14921_v21  ;;  %v14970_v21 = vld [vmem:[#allocation5 + $0x1d40] sm:$0xff]  }
 0x3eb   : > { %13766 = vmatprep.subr.bf16.mxu1 %v14924_v23  ;;  %v14969_v23 = vld [vmem:[#allocation5 + $0x1d88] sm:$0xff]  }
 0x3ec   : > { %13745 = vmatpush3.bf16.msra.mxu0 %v14923_v14  ;;  %v14968_v14 = vld [vmem:[#allocation5 + $0x1dc8] sm:$0xff]  }
 0x3ed   : > { %13746 = vmatprep.subr.bf16.mxu0 %v14926_v15  ;;  %v14972_v15 = vld [vmem:[#allocation5 + $0x1dc0] sm:$0xff]  }
 0x3ee   : > { %13767 = vmatpush3.bf16.msra.mxu1 %v14925_v57  ;;  %v14974_v57 = vld [vmem:[#allocation5 + $0x1e78] sm:$0xff]  }
 0x3ef   : > { %13768 = vmatprep.subr.bf16.mxu1 %v14928_v25  ;;  %v11985_v25 = vld [vmem:[%s15387_s11 + $0x48] sm:$0xf] }
 0x3f0   : > { %13747 = vmatpush3.bf16.msra.mxu0 %v14927_v42  ;;  %v10531_v42 = vrot.slane %v15680_v56, 3 }
 0x3f1   : > { %13748 = vmatprep.subr.bf16.mxu0 %v14930_v26  ;;  %v15702_v26 = vcombine.low %v15675_v53, %v11985_v25 }
 0x3f2   : > { %13769 = vmatpush3.bf16.msra.mxu1 %v14929_v29  ;;  %v14973_v29 = vld [vmem:[#allocation5 + $0x1d80] sm:$0xff]  }
 0x3f3   : > { %13770 = vmatprep.subr.bf16.mxu1 %v14932_v24  ;;  %v10676_v24 = vshrl.u32 %v15702_v26, 16 }
 0x3f4   : > { %13749 = vmatpush3.bf16.msra.mxu0 %v14931_v28  ;;  %v14976_v28 = vld [vmem:[#allocation5 + $0x1e38] sm:$0xff]  }
 0x3f5   : > { %13750 = vmatprep.subr.bf16.mxu0 %v14934_v31  ;;  %v10678_v31 = vshll.u32 %v15702_v26, 16 }
 0x3f6   : > { %13771 = vmatpush3.bf16.msra.mxu1 %v14933_v34  ;;  %v14979_v34 = vld [vmem:[#allocation5 + $0x1e70] sm:$0xff]  }
 0x3f7   : > { %13772 = vmatprep.subr.bf16.mxu1 %v14936_v27  ;;  %v10680_v56 = vrot.slane %v10678_v31, 1 }
 0x3f8   : > { %13751 = vmatpush3.bf16.msra.mxu0 %v14935_v32  ;;  %v14977_v32 = vld [vmem:[#allocation5 + $0x1ef8] sm:$0xff]  }
 0x3f9   : > { %13752 = vmatprep.subr.bf16.mxu0 %v14938_v35  ;;  %v14980_v35 = vld [vmem:[#allocation5 + $0x1e30] sm:$0xff]  }
 0x3fa   : > { %13773 = vmatpush3.bf16.msra.mxu1 %v14937_v36  ;;  %v14978_v36 = vld [vmem:[#allocation5 + $0x1eb8] sm:$0xff]  }
 0x3fb   : > { %13774 = vmatprep.subr.bf16.mxu1 %v14940_v37  ;;  %v10681_v37 = vor.u32 %v10680_v56, %v10676_v24  ;;  %v15013_v56 = vld [vmem:[#allocation8 + $0x8] sm:$0xff]  }
 0x3fc   : > { %13753 = vmatpush3.bf16.msra.mxu0 %v14939_v55 }
 0x3fd   : > { %13782 = vmatprep.subr.bf16.mxu0 %v14942_v43  ;;  %v14981_v43 = vld [vmem:[#allocation5 + $0x1ef0] sm:$0xff]  }
 0x3fe   : > { %13775 = vmatpush3.bf16.msra.mxu1 %v14941_v45  ;;  %v14983_v45 = vld [vmem:[#allocation5 + $0x1e68] sm:$0xff]  }
 0x3ff   : > { %v13490_v47 = vpop.f32.mrf.mxu0  ;;  %10316 = vmatmul.mubr.bf16.vlgmr.msra.gmra.mxu0 %v10183_v38  ;;  %13804 = vmatprep.subr.bf16.mxu1 %v14944_v46 }
 0x400   : > { %13783 = vmatpush3.bf16.msra.mxu0 %v14943_v39  ;;  %10663 = vmatprep.mubr.bf16.mxu0 %v10532_v44 }
 0x401   : > { %v13491_v50 = vpop.f32.mrf.mxu0  ;;  %13784 = vmatprep.subr.bf16.mxu0 %v14946_v40  ;;  %v13512_v58 = vpop.f32.mrf.mxu1  ;;  %10490 = vmatmul.mubr.bf16.vlgmr.msra.gmra.mxu1 %v10357_v48  ;;  %v10887_v40 = vrot.slane %v10681_v37, 1 }
 0x402   : > { %v13492_v17 = vadd.f32 %v13491_v50, %v13490_v47  ;;  %13805 = vmatpush3.bf16.msra.mxu1 %v14945_v52  ;;  %10844 = vmatprep.mubr.bf16.mxu1 %v10681_v37  ;;  %v14984_v47 = vld [vmem:[#allocation5 + $0x1e28] sm:$0xff]   ;;  %v14982_v50 = vld [vmem:[#allocation5 + $0x1eb0] sm:$0xff]   ;;  %v11061_v52 = vrot.slane %v10681_v37, 2 }
 0x403   : > { %v13493_v59 = vpop.f32.mrf.mxu0  ;;  %v13513_v62 = vpop.f32.mrf.mxu1  ;;  %13806 = vmatprep.subr.bf16.mxu1 %v14948_v54  ;;  %v14985_v54 = vld [vmem:[#allocation5 + $0x1ee8] sm:$0xff]  }
 0x404   : > { %v8214_v61 = vadd.f32 %v13492_v17, %v15691_v20  ;;  %13785 = vmatpush3.bf16.msra.mxu0 %v14947_v49  ;;  %v13514_v41 = vadd.f32 %v13513_v62, %v13512_v58  ;;  %v14965_v20 = vld [vmem:[#allocation5 + $0x1d90] sm:$0xff]   ;;  %v14987_v58 = vld [vmem:[#allocation5 + $0x1e60] sm:$0xff]  }
 0x405   : > { %v13494_v63 = vpop.f32.mrf.mxu0  ;;  %13786 = vmatprep.subr.bf16.mxu0 %v14950_v60  ;;  %v13515_v2 = vpop.f32.mrf.mxu1 }
 0x406   : > { %v15697_v5 = vadd.f32 %v13514_v41, %v8214_v61  ;;  %13807 = vmatpush3.bf16.msra.mxu1 %v14949_v6  ;;  %v14988_v61 = vld [vmem:[#allocation5 + $0x1e20] sm:$0xff]   ;;  %v14991_v63 = vld [vmem:[#allocation5 + $0x1e58] sm:$0xff]   ;;  %v14996_v2 = vld [vmem:[#allocation5 + $0x1e10] sm:$0xff]  }
 0x407   : > { %v13516_v4 = vpop.f32.mrf.mxu1  ;;  %13808 = vmatprep.subr.bf16.mxu1 %v14952_v0  ;;  %v14992_v6 = vld [vmem:[#allocation5 + $0x1e18] sm:$0xff]   ;;  %v14990_v41 = vld [vmem:[#allocation5 + $0x1ea0] sm:$0xff]  }
 0x408   : > { %13787 = vmatpush3.bf16.msra.mxu0 %v14951_v51  ;;  %v14986_v51 = vld [vmem:[#allocation5 + $0x1ea8] sm:$0xff]   ;;  %v14993_v0 = vld [vmem:[#allocation5 + $0x1ed8] sm:$0xff]  }
 0x409   : > { %13788 = vmatprep.subr.bf16.mxu0 %v14954_v1  ;;  %v14995_v1 = vld [vmem:[#allocation5 + $0x1e50] sm:$0xff]   ;;  %v15000_v4 = vld [vmem:[#allocation5 + $0x1e08] sm:$0xff]  }
 0x40a   : > { %13809 = vmatpush3.bf16.msra.mxu1 %v14953_v7  ;;  %v14999_v7 = vld [vmem:[#allocation5 + $0x1e48] sm:$0xff]  }
 0x40b   : > { %13810 = vmatprep.subr.bf16.mxu1 %v14956_v3  ;;  %v14998_v3 = vld [vmem:[#allocation5 + $0x1e90] sm:$0xff]  }
 0x40c   : > { %13789 = vmatpush3.bf16.msra.mxu0 %v14955_v33  ;;  %v14997_v33 = vld [vmem:[#allocation5 + $0x1ed0] sm:$0xff]  }
 0x40d   : > { %13790 = vmatprep.subr.bf16.mxu0 %v14958_v8  ;;  %v15001_v8 = vld [vmem:[#allocation5 + $0x1ec8] sm:$0xff]  }
 0x40e   : > { %13811 = vmatpush3.bf16.msra.mxu1 %v14957_v10  ;;  %v15004_v10 = vld [vmem:[#allocation5 + $0x1e00] sm:$0xff]  }
 0x40f   : > { %13812 = vmatprep.subr.bf16.mxu1 %v14960_v11  ;;  %v15002_v11 = vld [vmem:[#allocation5 + $0x1e88] sm:$0xff]  }
 0x410   : > { %13791 = vmatpush3.bf16.msra.mxu0 %v14959_v9  ;;  %v15003_v9 = vld [vmem:[#allocation5 + $0x1e40] sm:$0xff]  }
 0x411   : > { %13792 = vmatprep.subr.bf16.mxu0 %v14962_v12  ;;  %v15005_v12 = vld [vmem:[#allocation5 + $0x1ec0] sm:$0xff]  }
 0x412   : > { %13813 = vmatpush3.bf16.msra.mxu1 %v14961_v16  ;;  %v15007_v16 = vld [vmem:[#allocation8 + $0x38] sm:$0xff]  }
 0x413   : > { %13814 = vmatprep.subr.bf16.mxu1 %v14964_v30  ;;  %v15218_v30 = vmov 0.0  }
 0x414   : > { %13793 = vmatpush3.bf16.msra.mxu0 %v14963_v13  ;;  %v10886_v13 = vrot.slane %v15702_v26, 1 }
 0x415   : > { %13794 = vmatprep.subr.bf16.mxu0 %v14966_v18  ;;  %v15006_v18 = vld [vmem:[#allocation5 + $0x1e80] sm:$0xff]  }
 0x416   : > { %13815 = vmatpush3.bf16.msra.mxu1 %v14965_v20  ;;  %v15008_v20 = vld [vmem:[#allocation8 + $0x30] sm:$0xff]  }
 0x417   : > { %13816 = vmatprep.subr.bf16.mxu1 %v14968_v14 }
 0x418   : > { %13795 = vmatpush3.bf16.msra.mxu0 %v14967_v19 }
 0x419   : > { %13796 = vmatprep.subr.bf16.mxu0 %v14970_v21  ;;  %v11060_v21 = vrot.slane %v15702_v26, 2 }
 0x41a   : > { %13817 = vmatpush3.bf16.msra.mxu1 %v14969_v23 }
 0x41b   : > { %13818 = vmatprep.subr.bf16.mxu1 %v14972_v15 }
 0x41c   : > { %13797 = vmatpush3.bf16.msra.mxu0 %v14971_v22 }
 0x41d   : > { %13826 = vmatprep.subr.bf16.mxu0 %v14974_v57  ;;  %v15009_v57 = vld [vmem:[#allocation8 + $0x28] sm:$0xff]  }
 0x41e   : > { %13819 = vmatpush3.bf16.msra.mxu1 %v14973_v29 }
 0x41f   : > { %v13534_v27 = vpop.f32.mrf.mxu0  ;;  %10664 = vmatmul.mubr.bf16.vlgmr.msra.gmra.mxu0 %v10531_v42  ;;  %13848 = vmatprep.subr.bf16.mxu1 %v14977_v32  ;;  %v15010_v32 = vld [vmem:[#allocation8 + $0x20] sm:$0xff]  }
 0x420   : > { %13827 = vmatpush3.bf16.msra.mxu0 %v14976_v28  ;;  %11018 = vmatprep.mubr.bf16.mxu0 %v10887_v40 }
 0x421   : > { %v13535_v55 = vpop.f32.mrf.mxu0  ;;  %13828 = vmatprep.subr.bf16.mxu0 %v14979_v34  ;;  %v13556_v39 = vpop.f32.mrf.mxu1  ;;  %10845 = vmatmul.mubr.bf16.vlgmr.msra.gmra.mxu1 %v15675_v53  ;;  %v14989_v53 = vld [vmem:[#allocation5 + $0x1ee0] sm:$0xff]  }
 0x422   : > { %v13536_v38 = vadd.f32 %v13535_v55, %v13534_v27  ;;  %13849 = vmatpush3.bf16.msra.mxu1 %v14978_v36  ;;  %11192 = vmatprep.mubr.bf16.mxu1 %v11061_v52  ;;  %v15011_v34 = vld [vmem:[#allocation8 + $0x18] sm:$0xff]   ;;  %v15012_v27 = vld [vmem:[#allocation8 + $0x10] sm:$0xff]   ;;  %v15014_v55 = vld [vmem:[#allocation8] sm:$0xff]  }
 0x423   : > { %v13537_v44 = vpop.f32.mrf.mxu0  ;;  %v13557_v48 = vpop.f32.mrf.mxu1  ;;  %13850 = vmatprep.subr.bf16.mxu1 %v14981_v43 }
 0x424   : > { %v8562_v46 = vadd.f32 %v13536_v38, %v15697_v5  ;;  %13829 = vmatpush3.bf16.msra.mxu0 %v14980_v35  ;;  %v13558_v17 = vadd.f32 %v13557_v48, %v13556_v39  ;;  %v14994_v5 = vld [vmem:[#allocation5 + $0x1e98] sm:$0xff]  }
 0x425   : > { %v13538_v49 = vpop.f32.mrf.mxu0  ;;  %13830 = vmatprep.subr.bf16.mxu0 %v14983_v45  ;;  %v13559_v59 = vpop.f32.mrf.mxu1  ;;  %v15015_v35 = vld [vmem:[%s15387_s11 + $0xc] sm:$0xff]  }
 0x426   : > { %v8743_v60 = vadd.f32 %v13558_v17, %v8562_v46  ;;  %13851 = vmatpush3.bf16.msra.mxu1 %v14982_v50  ;;  %v11229_v36 = vrot.slane %v15015_v35, 3 }
 0x427   : > { %v13560_v62 = vpop.f32.mrf.mxu1  ;;  %13852 = vmatprep.subr.bf16.mxu1 %v14985_v54 }
 0x428   : > { %13831 = vmatpush3.bf16.msra.mxu0 %v14984_v47 }
 0x429   : > { %13832 = vmatprep.subr.bf16.mxu0 %v14987_v58 }
 0x42a   : > { %13853 = vmatpush3.bf16.msra.mxu1 %v14986_v51 }
 0x42b   : > { %13854 = vmatprep.subr.bf16.mxu1 %v14989_v53 }
 0x42c   : > { %13833 = vmatpush3.bf16.msra.mxu0 %v14988_v61 }
 0x42d   : > { %13834 = vmatprep.subr.bf16.mxu0 %v14991_v63 }
 0x42e   : > { %13855 = vmatpush3.bf16.msra.mxu1 %v14990_v41 }
 0x42f   : > { %13856 = vmatprep.subr.bf16.mxu1 %v14993_v0 }
 0x430   : > { %13835 = vmatpush3.bf16.msra.mxu0 %v14992_v6 }
 0x431   : > { %13836 = vmatprep.subr.bf16.mxu0 %v14995_v1 }
 0x432   : > { %13857 = vmatpush3.bf16.msra.mxu1 %v14994_v5 }
 0x433   : > { %13858 = vmatprep.subr.bf16.mxu1 %v14997_v33 }
 0x434   : > { %13837 = vmatpush3.bf16.msra.mxu0 %v14996_v2 }
 0x435   : > { %13838 = vmatprep.subr.bf16.mxu0 %v14999_v7 }
 0x436   : > { %13859 = vmatpush3.bf16.msra.mxu1 %v14998_v3 }
 0x437   : > { %13860 = vmatprep.subr.bf16.mxu1 %v15001_v8 }
 0x438   : > { %13839 = vmatpush3.bf16.msra.mxu0 %v15000_v4 }
 0x439   : > { %13840 = vmatprep.subr.bf16.mxu0 %v15003_v9 }
 0x43a   : > { %13861 = vmatpush3.bf16.msra.mxu1 %v15002_v11 }
 0x43b   : > { %13862 = vmatprep.subr.bf16.mxu1 %v15005_v12 }
 0x43c   : > { %13841 = vmatpush3.bf16.msra.mxu0 %v15004_v10 }
 0x43d   : > { %13879 = vmatprep.subr.bf16.mxu0 %v15218_v30 }
 0x43e   : > { %13863 = vmatpush3.bf16.msra.mxu1 %v15006_v18 }
 0x43f   : > { %v13578_v19 = vpop.f32.mrf.mxu0  ;;  %11019 = vmatmul.mubr.bf16.vlgmr.msra.gmra.mxu0 %v10886_v13 }
 0x440   : > { %13880 = vmatpush3.bf16.msra.mxu0 %v15007_v16  ;;  %13895 = vmatprep.mubr.msk.bf16.mxu0 %vm15219_vm0, %v15218_v30 }
 0x441   : > { %v13579_v14 = vpop.f32.mrf.mxu0  ;;  %13881 = vmatprep.subr.bf16.mxu0 %v15218_v30  ;;  %v13600_v23 = vpop.f32.mrf.mxu1  ;;  %11193 = vmatmul.mubr.bf16.vlgmr.msra.gmra.mxu1 %v11060_v21 }
 0x442   : > { %v13580_v22 = vadd.f32 %v13579_v14, %v13578_v19 }
 0x443   : > { %v13581_v15 = vpop.f32.mrf.mxu0  ;;  %v13601_v25 = vpop.f32.mrf.mxu1 }
 0x444   : > { %v8917_v42 = vadd.f32 %v13580_v22, %v8743_v60  ;;  %13882 = vmatpush3.bf16.msra.mxu0 %v15008_v20  ;;  %v13602_v29 = vadd.f32 %v13601_v25, %v13600_v23 }
 0x445   : > { %v13582_v28 = vpop.f32.mrf.mxu0  ;;  %13883 = vmatprep.subr.bf16.mxu0 %v15218_v30  ;;  %v13603_v24 = vpop.f32.mrf.mxu1 }
 0x446   : > { %v9091_v31 = vadd.f32 %v13602_v29, %v8917_v42 }
 0x447   : > { %v13604_v26 = vpop.f32.mrf.mxu1 }
 0x448   : > { %13884 = vmatpush3.bf16.msra.mxu0 %v15009_v57 }
 0x449   : > { %13885 = vmatprep.subr.bf16.mxu0 %v15218_v30 }
 0x44c   : > { %13886 = vmatpush3.bf16.msra.mxu0 %v15010_v32 }
 0x44d   : > { %13887 = vmatprep.subr.bf16.mxu0 %v15218_v30 }
 0x450   : > { %13888 = vmatpush3.bf16.msra.mxu0 %v15011_v34 }
 0x451   : > { %13889 = vmatprep.subr.bf16.mxu0 %v15218_v30 }
 0x454   : > { %13890 = vmatpush3.bf16.msra.mxu0 %v15012_v27 }
 0x455   : > { %13891 = vmatprep.subr.bf16.mxu0 %v15218_v30 }
 0x458   : > { %13892 = vmatpush3.bf16.msra.mxu0 %v15013_v56 }
 0x459   : > { %13893 = vmatprep.subr.bf16.mxu0 %v15218_v30 }
 0x45c   : > { %13894 = vmatpush3.bf16.msra.mxu0 %v15014_v55 }
 0x45f   : > { %v13622_v37 = vpop.f32.mrf.mxu0  ;;  %13896 = vmatmul.mubr.bf16.vlgmr.msra.gmra.mxu0 %v11229_v36 }
 0x461   : > { %v13623_v38 = vpop.f32.mrf.mxu0  ;;  %v13644_v45 = vpop.f32.mrf.mxu1 }
 0x462   : > { %v13624_v43 = vadd.f32 %v13623_v38, %v13622_v37 }
 0x463   : > { %v13625_v39 = vpop.f32.mrf.mxu0  ;;  %v13645_v47 = vpop.f32.mrf.mxu1 }
 0x464   : > { %v9265_v44 = vadd.f32 %v13624_v43, %v9091_v31  ;;  %v13646_v40 = vadd.f32 %v13645_v47, %v13644_v45 }
 0x465   : > { %v13626_v46 = vpop.f32.mrf.mxu0  ;;  %v13647_v48 = vpop.f32.mrf.mxu1 }
 0x466   : > { %v9446_v49 = vadd.f32 %v13646_v40, %v9265_v44  ;;  %v12501_v40 = vld [vmem:[#allocation7] ss:$0 sm:$0xff] }
 0x467   : > { %v13648_v50 = vpop.f32.mrf.mxu1 }
 0x47f   : > { %v13666_v52 = vpop.f32.mrf.mxu0 }
 0x481   : > { %v13667_v17 = vpop.f32.mrf.mxu0  ;;  %v13688_v60 = vpop.f32.mrf.mxu1 }
 0x482   : > { %v13668_v54 = vadd.f32 %v13667_v17, %v13666_v52 }
 0x483   : > { %v13669_v58 = vpop.f32.mrf.mxu0  ;;  %v13689_v51 = vpop.f32.mrf.mxu1 }
 0x484   : > { %v9620_v59 = vadd.f32 %v13668_v54, %v9446_v49  ;;  %v13690_v62 = vadd.f32 %v13689_v51, %v13688_v60 }
 0x485   : > { %v13670_v61 = vpop.f32.mrf.mxu0  ;;  %v13691_v53 = vpop.f32.mrf.mxu1 }
 0x486   : > { %v9794_v63 = vadd.f32 %v13690_v62, %v9620_v59 }
 0x487   : > { %v13692_v6 = vpop.f32.mrf.mxu1 }
 0x49f   : > { %v13710_v41 = vpop.f32.mrf.mxu0 }
 0x4a1   : > { %v13711_v0 = vpop.f32.mrf.mxu0  ;;  %v13732_v33 = vpop.f32.mrf.mxu1 }
 0x4a2   : > { %v13712_v1 = vadd.f32 %v13711_v0, %v13710_v41 }
 0x4a3   : > { %v13713_v2 = vpop.f32.mrf.mxu0  ;;  %v13733_v4 = vpop.f32.mrf.mxu1 }
 0x4a4   : > { %v9968_v5 = vadd.f32 %v13712_v1, %v9794_v63  ;;  %v13734_v3 = vadd.f32 %v13733_v4, %v13732_v33 }
 0x4a5   : > { %v13714_v7 = vpop.f32.mrf.mxu0  ;;  %v13735_v8 = vpop.f32.mrf.mxu1 }
 0x4a6   : > { %v10149_v9 = vadd.f32 %v13734_v3, %v9968_v5 }
 0x4a7   : > { %v13736_v10 = vpop.f32.mrf.mxu1 }
 0x4bf   : > { %v13754_v11 = vpop.f32.mrf.mxu0 }
 0x4c1   : > { %v13755_v12 = vpop.f32.mrf.mxu0  ;;  %v13776_v18 = vpop.f32.mrf.mxu1 }
 0x4c2   : > { %v13756_v13 = vadd.f32 %v13755_v12, %v13754_v11 }
 0x4c3   : > { %v13757_v16 = vpop.f32.mrf.mxu0  ;;  %v13777_v20 = vpop.f32.mrf.mxu1 }
 0x4c4   : > { %v10323_v30 = vadd.f32 %v13756_v13, %v10149_v9  ;;  %v13778_v14 = vadd.f32 %v13777_v20, %v13776_v18 }
 0x4c5   : > { %v13758_v19 = vpop.f32.mrf.mxu0  ;;  %v13779_v21 = vpop.f32.mrf.mxu1 }
 0x4c6   : > { %v10497_v22 = vadd.f32 %v13778_v14, %v10323_v30 }
 0x4c7   : > { %v13780_v23 = vpop.f32.mrf.mxu1 }
 0x4df   : > { %v13798_v15 = vpop.f32.mrf.mxu0 }
 0x4e1   : > { %v13799_v42 = vpop.f32.mrf.mxu0  ;;  %v13820_v25 = vpop.f32.mrf.mxu1 }
 0x4e2   : > { %v13800_v37 = vadd.f32 %v13799_v42, %v13798_v15 }
 0x4e3   : > { %v13801_v57 = vpop.f32.mrf.mxu0  ;;  %v13821_v29 = vpop.f32.mrf.mxu1 }
 0x4e4   : > { %v10671_v38 = vadd.f32 %v13800_v37, %v10497_v22  ;;  %v13822_v43 = vadd.f32 %v13821_v29, %v13820_v25 }
 0x4e5   : > { %v13802_v28 = vpop.f32.mrf.mxu0  ;;  %v13823_v24 = vpop.f32.mrf.mxu1 }
 0x4e6   : > { %v10852_v44 = vadd.f32 %v13822_v43, %v10671_v38 }
 0x4e7   : > { %v13824_v31 = vpop.f32.mrf.mxu1 }
 0x4ff   : > { %v13842_v32 = vpop.f32.mrf.mxu0 }
 0x501   : > { %v13843_v26 = vpop.f32.mrf.mxu0  ;;  %v13864_v27 = vpop.f32.mrf.mxu1 }
 0x502   : > { %v13844_v39 = vadd.f32 %v13843_v26, %v13842_v32 }
 0x503   : > { %v13845_v34 = vpop.f32.mrf.mxu0  ;;  %v13865_v35 = vpop.f32.mrf.mxu1 }
 0x504   : > { %v11026_v45 = vadd.f32 %v13844_v39, %v10852_v44  ;;  %v13866_v46 = vadd.f32 %v13865_v35, %v13864_v27 }
 0x505   : > { %v13846_v56 = vpop.f32.mrf.mxu0  ;;  %v13867_v55 = vpop.f32.mrf.mxu1 }
 0x506   : > { %v11200_v47 = vadd.f32 %v13866_v46, %v11026_v45 }
 0x507   : > { %v13868_v36 = vpop.f32.mrf.mxu1 }
 0x508   : > { %v11325_v48 = vadd.f32 %v12501_v40, %v11200_v47 }
 0x51f   : > { %v11313_v49 = vpop.f32.mrf.mxu0 }
 0x520   : > { %v11326_v50 = vadd.f32 %v11325_v48, %v11313_v49 }
 0x521   : > { %v13897_v52 = vpop.f32.mrf.mxu0 }
 0x522   : > { %v11327_v17 = vmax.f32 %v11326_v50, 0.0 }
 0x523   : > { %v11316_v54 = vpop.f32.mrf.mxu0 }
 0x524   : > { %v11328_v58 = vpack.c.bf16 %v11327_v17, %v11327_v17 }
 0x525   : > { %v13898_v59 = vpop.f32.mrf.mxu0 }
 0x526   : > { %11329 = vst [vmem:[%s271_s27] sm:$0xf] %v11328_v58 }
 0x527   : > { %15135 = shalt.err (!%p15132_p0)
}
 0x528   : > { %s15136_s13 = scalar_lea.hbm %s15716_s22, 64  ;;  %s15140_s12 = scalar_lea.hbm %s15762_s4, 128 }
 0x529   : > { %p15137_p10 = scmp.ne.s32.totalorder %s15716_s22, %s15136_s13  ;;  %p15141_p6 = scmp.lt.s32.totalorder %s15716_s22, %s15762_s4 }
 0x52a   : > { %p15142_p12 = scmp.lt.s32.totalorder %s15140_s12, %s15136_s13 }
 0x52b   : > { %p15138_p1 = pnand %p15137_p10, %p15352_p8 }
 0x52c   : > { %p15143_p5 = por %p15142_p12, %p15141_p6 }
 0x52d   : > { %p15139_p4 = pneg %p15138_p1 }
 0x52f   : > { %p15144_p3 = pnand %p15143_p5, %p15139_p4 }
 0x531   : > { %15147 = shalt.err (!%p15144_p3)
}
 0x532   : > { %13916 = dma.vmem_to_hbm [thread:$0]  (%p15352_p8), %s11346_s10, 64, %s15716_s22, %s11331_s28  }
 0x533 PF: > { %s11357_s11 = sand.u32 1, %s15190_s15   ;;  %p15786_p11 = scmp.ne.s32.totalorder %s15774_s26, 0 }
 0x534   : > { %p15787_p2 = scmp.ge.s32.totalorder %s15210_s20, 2  ;;  %s11358_s23 = scalar_lea.sflag [#allocation4], %s11357_s11 }
 0x536   : > { %p13933_p7 = pnand %p15787_p2, %p15786_p11 }
 0x538   : > { %p13934_p9 = pneg %p13933_p7 }
 0x53a   : > { %15185 = dma.done.wait (%p13934_p9), %s11358_s23, 64  }
 0x53b   : > { %15187 = vsyncadd (%p13934_p9), %s11358_s23, 4294967232  ;;  %s22_s20 = sadd.s32 1, %s15210_s20   ;;  %s15788_s15 = smov %s15194_s16 }
 0x53c   : > { %p19_p13 = scmp.ge.s32.totalorder %s22_s20, 4   ;;  %s15789_s16 = smov %s15198_s17 }
 0x53d   : > { %s15790_s17 = smov %s15368_s24  ;;  %s15791_s18 = smov %s15206_s19 }
 0x53e   : > { %s15792_s19 = smov %s15794_s30  ;;  %21 = sbr.rel (!%p19_p13) target bundleno = 11 (0xb), region = 157 }
 0x543   :  { %11363 = vsyncpa [#allocation3], 1 }
 0x544   :  { %11365 = vsyncpa [#allocation3 + $0x1], 1 }
 0x545   :  { %11366 = vsyncpa [#allocation6], 1 }
 0x546   :  { %11367 = vsyncpa [#allocation9], 1 }
 0x547   :  { %11368 = vsyncpa [#allocation4], 1 }
 0x548   :  { %11370 = vsyncpa [#allocation4 + $0x1], 1 }

</bundles_post_ra>
